<compile_context>
chip_gen: v6e
topology: v6e:2x2x1
jax: 0.10.0
libtpu: 0.0.40
codegen_flags: <defaults>
</compile_context>

<pallas_src>
import functools
from functools import partial

import jax
import jax.numpy as jnp
from jax.experimental import pallas as pl
from jax.experimental.pallas import tpu as pltpu

PATCH = 32                      # stride-32 backbone (matches h/32, w/32 pooling)
LANE = 128                      # kernel-side channel padding target
VMEM_LIMIT_BYTES = 32 * 1024 * 1024
TM_MAX_ROWS = 1024              # row budget per backbone grid step


def _round_up(x, m):
    return (x + m - 1) // m * m


def _sigmoid(x):
    # Exact sigmoid (exp on the EUP slot); matches torch.sigmoid numerically.
    return 1.0 / (1.0 + jnp.exp(-x))


# ----------------------------------------------------------------------------
# Pallas kernels
# ----------------------------------------------------------------------------
def _backbone_kernel(x_ref, w1_ref, b1_ref, w2_ref, b2_ref, wc_ref, bc_ref,
                     gs_ref, cam_ref, *, ipb, spp, method):
    """Fused backbone: patch-embed -> ReLU6 -> 1x1 -> ReLU6 -> per-position CAM
    (classifier + sigmoid) AND per-image pooled score (pool + classifier +
    sigmoid).  One grid step handles `ipb` whole images (tm = ipb*spp rows)."""
    x = x_ref[...]                                               # (tm, K) bf16
    hid = jnp.dot(x, w1_ref[...], preferred_element_type=jnp.float32)
    hid = jnp.clip(hid + b1_ref[...], 0.0, 6.0)                  # ReLU6
    ga = jnp.dot(hid.astype(jnp.bfloat16), w2_ref[...],
                 preferred_element_type=jnp.float32)
    ga = jnp.clip(ga + b2_ref[...], 0.0, 6.0)                    # (tm, nf_p) f32

    wc = wc_ref[...]
    bc = bc_ref[...]

    # Per-position CAM scores (lane-dense (tm, 128) store).
    cam_logits = jnp.dot(ga.astype(jnp.bfloat16), wc,
                         preferred_element_type=jnp.float32) + bc
    cam_ref[...] = _sigmoid(cam_logits)

    # Fused feats_pooling over the spp positions of each image + classifier.
    ga3 = ga.reshape(ipb, spp, ga.shape[-1])                     # (ipb, spp, nf_p)
    if method == "avg":
        pooled = jnp.sum(ga3, axis=1) * (1.0 / spp)
    elif method == "max":
        pooled = jnp.max(ga3, axis=1)
    else:  # 'gwp'
        pooled = (jnp.sum(ga3, axis=1) * (1.0 / spp) + jnp.max(ga3, axis=1)) * 0.5
    gs_logits = jnp.dot(pooled.astype(jnp.bfloat16), wc,
                        preferred_element_type=jnp.float32) + bc
    gs_ref[...] = _sigmoid(gs_logits)                            # (ipb, 128)


def backbone_fused(images_bf16, pk, gh, gw, nc, method, tm_max=TM_MAX_ROWS):
    """images_bf16: (n, c, H, W) bf16.  Returns (gs (n, nc) f32, cam (n*spp, nc) f32)."""
    n, c, H, W = images_bf16.shape
    spp = gh * gw
    K = c * PATCH * PATCH
    c_mid_p = pk["w1"].shape[1]
    nf_p = pk["w2"].shape[1]
    nc_p = pk["wc"].shape[1]

    # images per grid step (multiple of 8 so all blocks are (8,128)-aligned)
    budget = max(1, tm_max // spp)
    if budget >= 8:
        ipb = min((budget // 8) * 8, _round_up(n, 8))
    else:
        ipb = 8  # very large spp: one 8-image block still fits comfortably in VMEM
    n_pad = _round_up(n, ipb)
    # v7x megacore: aim for >=2 steps on the parallel axis when there is work
    if n_pad == ipb and n > 8 and ipb > 8:
        ipb = max(8, _round_up((n + 1) // 2, 8))
        n_pad = _round_up(n, ipb)
    tm = ipb * spp

    if n_pad != n:
        images_bf16 = jnp.pad(images_bf16, ((0, n_pad - n), (0, 0), (0, 0), (0, 0)))
    patches = extract_patches(images_bf16, PATCH)                # (n_pad*spp, K) bf16

    kernel = functools.partial(_backbone_kernel, ipb=ipb, spp=spp, method=method)
    gs_pad, cam_pad = pl.pallas_call(
        kernel,
        out_shape=(jax.ShapeDtypeStruct((n_pad, nc_p), jnp.float32),
                   jax.ShapeDtypeStruct((n_pad * spp, nc_p), jnp.float32)),
        grid=(n_pad // ipb,),
        in_specs=[
            pl.BlockSpec((tm, K), lambda i: (i, 0)),
            pl.BlockSpec((K, c_mid_p), lambda i: (0, 0)),
            pl.BlockSpec((1, c_mid_p), lambda i: (0, 0)),
            pl.BlockSpec((c_mid_p, nf_p), lambda i: (0, 0)),
            pl.BlockSpec((1, nf_p), lambda i: (0, 0)),
            pl.BlockSpec((nf_p, nc_p), lambda i: (0, 0)),
            pl.BlockSpec((1, nc_p), lambda i: (0, 0)),
        ],
        out_specs=(
            pl.BlockSpec((ipb, nc_p), lambda i: (i, 0)),
            pl.BlockSpec((tm, nc_p), lambda i: (i, 0)),
        ),
        compiler_params=pltpu.CompilerParams(
            dimension_semantics=("parallel",),
            vmem_limit_bytes=VMEM_LIMIT_BYTES),
    )(patches, pk["w1"], pk["b1"], pk["w2"], pk["b2"], pk["wc"], pk["bc"])
    return gs_pad[:n, :nc], cam_pad[:n * spp, :nc]


def _cam_profile_kernel(cam_ref, wy_ref, wxt_ref, wmax_ref, hmax_ref, *, bt, gh):
    """Bilinear upsample (align_corners=True) of bt CAMs + row/col max profiles.

    The wxt contraction is done once for the whole block; per CAM only the wy
    contraction and two max reductions remain.  wscore = sublane max, hscore =
    cross-lane (XLU) max stored lane-dense."""
    # (bt*gh, gw) @ (gw, w) -> (bt*gh, w): one batched MXU call for the block.
    tmp = jnp.dot(cam_ref[...], wxt_ref[...], preferred_element_type=jnp.float32)
    wy = wy_ref[...]                                             # (h, gh)
    for i in range(bt):                                          # small, bounded bodies
        up = jnp.dot(wy, tmp[i * gh:(i + 1) * gh, :],
                     preferred_element_type=jnp.float32)         # (h, w)
        wmax_ref[pl.ds(i, 1), :] = jnp.max(up, axis=0, keepdims=True)   # max over h
        hmax_ref[pl.ds(i, 1), :] = jnp.max(up, axis=1)[None, :]         # max over w


def cam_profiles(cam_bghgw, wy, wxt, h, w, bt=8):
    """Per-class CAM -> upsampled (h,w) -> wscore (max over h), hscore (max over w)."""
    B, gh, gw = cam_bghgw.shape
    b_pad = _round_up(B, bt)
    if b_pad != B:
        cam_bghgw = jnp.pad(cam_bghgw, ((0, b_pad - B), (0, 0), (0, 0)))
    cam_flat = cam_bghgw.reshape(b_pad * gh, gw)                 # rows grouped per CAM
    wmax, hmax = pl.pallas_call(
        functools.partial(_cam_profile_kernel, bt=bt, gh=gh),
        out_shape=(jax.ShapeDtypeStruct((b_pad, w), jnp.float32),
                   jax.ShapeDtypeStruct((b_pad, h), jnp.float32)),
        grid=(b_pad // bt,),
        in_specs=[
            pl.BlockSpec((bt * gh, gw), lambda i: (i, 0)),
            pl.BlockSpec((h, gh), lambda i: (0, 0)),
            pl.BlockSpec((gw, w), lambda i: (0, 0)),
        ],
        out_specs=(
            pl.BlockSpec((bt, w), lambda i: (i, 0)),
            pl.BlockSpec((bt, h), lambda i: (i, 0)),
        ),
        compiler_params=pltpu.CompilerParams(
            dimension_semantics=("parallel",),
            vmem_limit_bytes=VMEM_LIMIT_BYTES),
    )(cam_flat, wy, wxt)
    return wmax[:B], hmax[:B]


# ----------------------------------------------------------------------------
# JAX glue
# ----------------------------------------------------------------------------
def upsample_matrix(out_size, in_size):
    """Row-interp matrix for bilinear, align_corners=True."""
    if in_size == 1:
        return jnp.ones((out_size, 1), jnp.float32)
    src = jnp.arange(out_size, dtype=jnp.float32) * (in_size - 1) / (out_size - 1)
    p0 = jnp.clip(jnp.floor(src).astype(jnp.int32), 0, in_size - 2)
    wgt = src - p0.astype(jnp.float32)
    W = (jax.nn.one_hot(p0, in_size) * (1.0 - wgt)[:, None]
         + jax.nn.one_hot(p0 + 1, in_size) * wgt[:, None])
    return W.astype(jnp.float32)


def extract_patches(x_nchw, patch):
    # TODO(synk): gather patches straight from HBM via a multi-dim grid +
    # index_map in backbone_fused to avoid materializing this (M, C*P*P) array.
    b, c, h, w = x_nchw.shape
    gh, gw = h // patch, w // patch
    x = x_nchw.reshape(b, c, gh, patch, gw, patch)
    x = x.transpose(0, 2, 4, 1, 3, 5)                 # (b, gh, gw, c, P, P)
    return x.reshape(b * gh * gw, c * patch * patch)


def obj_loc_jax(s, threshold):
    # TODO(synk): the original MCAR `obj_loc` (contiguous-segment search) was not
    # provided; simplified to [first, last] index whose normalized score >= threshold.
    n = s.shape[0]
    mask = s >= threshold
    any_above = jnp.any(mask)
    first = jnp.argmax(mask)
    last = n - 1 - jnp.argmax(mask[::-1])
    lo = jnp.where(any_above, first, 0).astype(jnp.int32)
    hi = jnp.where(any_above, last + 1, n).astype(jnp.int32)
    return lo, hi


def crop_resize_bilinear(img, y_lo, y_hi, x_lo, x_hi, out_h, out_w):
    """F.interpolate(img[:, y_lo:y_hi, x_lo:x_hi], (out_h,out_w), bilinear, align_corners=True)."""
    c, H, W = img.shape
    in_h = (y_hi - y_lo).astype(jnp.float32)
    in_w = (x_hi - x_lo).astype(jnp.float32)
    yy = y_lo.astype(jnp.float32) + jnp.arange(out_h, dtype=jnp.float32) * (in_h - 1.0) / float(out_h - 1)
    xx = x_lo.astype(jnp.float32) + jnp.arange(out_w, dtype=jnp.float32) * (in_w - 1.0) / float(out_w - 1)
    y0 = jnp.clip(jnp.floor(yy), 0, H - 1).astype(jnp.int32)
    x0 = jnp.clip(jnp.floor(xx), 0, W - 1).astype(jnp.int32)
    y1 = jnp.clip(y0 + 1, 0, H - 1)
    x1 = jnp.clip(x0 + 1, 0, W - 1)
    wy = (yy - y0.astype(jnp.float32))[:, None]
    wx = (xx - x0.astype(jnp.float32))[None, :]
    g00 = img[:, y0[:, None], x0[None, :]]
    g01 = img[:, y0[:, None], x1[None, :]]
    g10 = img[:, y1[:, None], x0[None, :]]
    g11 = img[:, y1[:, None], x1[None, :]]
    top = g00 * (1.0 - wx) + g01 * wx
    bot = g10 * (1.0 - wx) + g11 * wx
    return top * (1.0 - wy) + bot * wy


def _norm_profile(s):
    """PyTorch min/max normalization with a guard against 0/0."""
    smax = s.max(axis=-1, keepdims=True)
    smin = s.min(axis=-1, keepdims=True)
    rng = smax - smin
    flat = rng == 0
    denom = jnp.where(flat, jnp.maximum(smax, 1e-12), rng)
    num = jnp.where(flat, s, s - smin)
    return num / denom


def _pack_params(params):
    """bf16 weights / f32 row biases, zero-padded to 128-lane channel dims."""
    K, c_mid = params["w1"].shape
    nf = params["w2"].shape[1]
    nc = params["wc"].shape[1]
    c_mid_p = _round_up(c_mid, LANE)
    nf_p = _round_up(nf, LANE)
    nc_p = _round_up(nc, LANE)

    def pad2(a, rows, cols):
        return jnp.pad(a, ((0, rows - a.shape[0]), (0, cols - a.shape[1])))

    return dict(
        w1=pad2(params["w1"], K, c_mid_p).astype(jnp.bfloat16),
        b1=pad2(params["b1"].reshape(1, -1), 1, c_mid_p).astype(jnp.float32),
        w2=pad2(params["w2"], c_mid_p, nf_p).astype(jnp.bfloat16),
        b2=pad2(params["b2"].reshape(1, -1), 1, nf_p).astype(jnp.float32),
        wc=pad2(params["wc"], nf_p, nc_p).astype(jnp.bfloat16),
        bc=pad2(params["bc"].reshape(1, -1), 1, nc_p).astype(jnp.float32),
    )


@partial(jax.jit, static_argnames=("ps", "topN", "threshold"))
def mcar_forward(inputs, params, *, ps="avg", topN=4, threshold=0.5):
    b, c, h, w = inputs.shape
    gh, gw = h // PATCH, w // PATCH
    spp = gh * gw
    nc = params["wc"].shape[1]
    pk = _pack_params(params)

    inputs_bf16 = inputs.astype(jnp.bfloat16)

    # ---- global branch: fused backbone (per-position CAM + pooled scores) ----
    gs, cam = backbone_fused(inputs_bf16, pk, gh, gw, nc, ps)     # (b,nc), (b*spp,nc)

    # ---- CAM bilinear upsample + row/col max profiles ----
    cam = cam.reshape(b, gh, gw, nc).transpose(0, 3, 1, 2)        # (b, nc, gh, gw)
    wy = upsample_matrix(h, gh)                                   # (h, gh)
    wxt = upsample_matrix(w, gw).T                                # (gw, w)
    wscore, hscore = cam_profiles(cam.reshape(b * nc, gh, gw), wy, wxt, h, w)
    wscore = wscore.reshape(b, nc, w)                             # max over height
    hscore = hscore.reshape(b, nc, h)                             # max over width

    # ---- top-N class selection and region localization ----
    gs_ind = jnp.argsort(-gs, axis=1)[:, :topN]                   # (b, topN)
    xs = jnp.take_along_axis(wscore, gs_ind[:, :, None], axis=1)  # (b, topN, w)
    ys = jnp.take_along_axis(hscore, gs_ind[:, :, None], axis=1)  # (b, topN, h)

    xs = _norm_profile(xs).reshape(b * topN, w)
    ys = _norm_profile(ys).reshape(b * topN, h)
    x1, x2 = jax.vmap(lambda s: obj_loc_jax(s, threshold))(xs)
    y1, y2 = jax.vmap(lambda s: obj_loc_jax(s, threshold))(ys)

    # Crop straight from the single input copy (no topN-fold jnp.repeat).
    crop_one = lambda im, a, bb, cc, dd: crop_resize_bilinear(im, a, bb, cc, dd, h, w)
    crop_topn = jax.vmap(crop_one, in_axes=(None, 0, 0, 0, 0))
    linputs = jax.vmap(crop_topn)(
        inputs,
        y1.reshape(b, topN), y2.reshape(b, topN),
        x1.reshape(b, topN), x2.reshape(b, topN))                 # (b, topN, c, h, w)
    linputs = linputs.reshape(b * topN, c, h, w)

    # ---- local branch (CAM output unused; pooled scores only) ----
    ls_scores, _ = backbone_fused(linputs.astype(jnp.bfloat16), pk, gh, gw, nc, ps)
    ls = jnp.max(ls_scores.reshape(b, topN, nc), axis=1)          # (b, nc)
    return gs, ls


def init_params(key, c_in=3, patch=PATCH, c_mid=32, num_features=64, num_classes=8):
    ks = jax.random.split(key, 4)
    return dict(
        w1=jax.random.normal(ks[0], (c_in * patch * patch, c_mid), jnp.float32) * 0.02,
        b1=jnp.zeros((c_mid,), jnp.float32),
        w2=jax.random.normal(ks[1], (c_mid, num_features), jnp.float32) * 0.1,
        b2=jnp.zeros((num_features,), jnp.float32),
        wc=jax.random.normal(ks[2], (num_features, num_classes), jnp.float32) * 0.1,
        bc=jax.random.normal(ks[3], (num_classes,), jnp.float32) * 0.1,
    )


if __name__ == "__main__":
    key = jax.random.PRNGKey(0)
    pkey, xkey = jax.random.split(key)

    b, c, h, w = 2, 3, 64, 64          # RGB inputs; h, w multiples of 32
    num_classes = 8
    params = init_params(pkey, num_classes=num_classes)
    inputs = jax.random.normal(xkey, (b, c, h, w), jnp.float32)

    gs, ls = mcar_forward(inputs, params, ps="avg", topN=4, threshold=0.5)
    jax.block_until_ready((gs, ls))

    assert gs.shape == (b, num_classes) and ls.shape == (b, num_classes)
    assert bool(jnp.all(jnp.isfinite(gs))) and bool(jnp.all(jnp.isfinite(ls)))
    assert bool(jnp.all((gs > 0) & (gs < 1))) and bool(jnp.all((ls > 0) & (ls < 1)))
    print("KERNEL_OK")
</pallas_src>

<mosaic_0001>
module attributes {stable_mosaic.version = 11 : i64} {
  func.func @_backbone_kernel(%arg0: i32, %arg1: memref<32x3072xbf16, #tpu.memory_space<vmem>>, %arg2: memref<3072x128xbf16, #tpu.memory_space<vmem>>, %arg3: memref<1x128xf32, #tpu.memory_space<vmem>>, %arg4: memref<128x128xbf16, #tpu.memory_space<vmem>>, %arg5: memref<1x128xf32, #tpu.memory_space<vmem>>, %arg6: memref<128x128xbf16, #tpu.memory_space<vmem>>, %arg7: memref<1x128xf32, #tpu.memory_space<vmem>>, %arg8: memref<8x128xf32, #tpu.memory_space<vmem>>, %arg9: memref<32x128xf32, #tpu.memory_space<vmem>>) attributes {dimension_semantics = [#tpu.dimension_semantics<parallel>], iteration_bounds = array<i64: 1>, scalar_prefetch = 0 : i64, scratch_operands = 0 : i64, tpu.core_type = #tpu.core_type<tc>, window_params = [{transform_indices = @transform_0, window_bounds = array<i64: 32, 3072>}, {pipeline_mode = #tpu.pipeline_mode<synchronous>, transform_indices = @transform_1, window_bounds = array<i64: 3072, 128>}, {pipeline_mode = #tpu.pipeline_mode<synchronous>, transform_indices = @transform_2, window_bounds = array<i64: 1, 128>}, {pipeline_mode = #tpu.pipeline_mode<synchronous>, transform_indices = @transform_3, window_bounds = array<i64: 128, 128>}, {pipeline_mode = #tpu.pipeline_mode<synchronous>, transform_indices = @transform_4, window_bounds = array<i64: 1, 128>}, {pipeline_mode = #tpu.pipeline_mode<synchronous>, transform_indices = @transform_5, window_bounds = array<i64: 128, 128>}, {pipeline_mode = #tpu.pipeline_mode<synchronous>, transform_indices = @transform_6, window_bounds = array<i64: 1, 128>}, {transform_indices = @transform_7, window_bounds = array<i64: 8, 128>}, {transform_indices = @transform_8, window_bounds = array<i64: 32, 128>}]} {
    %c0 = arith.constant 0 : index
    %c0_0 = arith.constant 0 : index
    %0 = vector.load %arg1[%c0, %c0_0] : memref<32x3072xbf16, #tpu.memory_space<vmem>>, vector<32x3072xbf16>
    %c0_1 = arith.constant 0 : index
    %c0_2 = arith.constant 0 : index
    %1 = vector.load %arg2[%c0_1, %c0_2] : memref<3072x128xbf16, #tpu.memory_space<vmem>>, vector<3072x128xbf16>
    %cst = arith.constant dense<0.000000e+00> : vector<32x128xf32>
    %2 = tpu.matmul %0, %1, %cst {dimension_numbers = #tpu.dot_dimension_numbers<[1], [0], [0], [1], [0, 0, 1, 1], [], []>} : vector<32x3072xbf16>, vector<3072x128xbf16>, vector<32x128xf32> -> vector<32x128xf32>
    %c0_3 = arith.constant 0 : index
    %c0_4 = arith.constant 0 : index
    %3 = vector.load %arg3[%c0_3, %c0_4] : memref<1x128xf32, #tpu.memory_space<vmem>>, vector<1x128xf32>
    %4 = vector.broadcast %3 : vector<1x128xf32> to vector<32x128xf32>
    %5 = arith.addf %2, %4 : vector<32x128xf32>
    %cst_5 = arith.constant 0.000000e+00 : f32
    %cst_6 = arith.constant 6.000000e+00 : f32
    %6 = vector.broadcast %cst_5 : f32 to vector<32x128xf32>
    %7 = arith.maximumf %6, %5 : vector<32x128xf32>
    %8 = vector.broadcast %cst_6 : f32 to vector<32x128xf32>
    %9 = arith.minimumf %8, %7 : vector<32x128xf32>
    %10 = arith.truncf %9 : vector<32x128xf32> to vector<32x128xbf16>
    %c0_7 = arith.constant 0 : index
    %c0_8 = arith.constant 0 : index
    %11 = vector.load %arg4[%c0_7, %c0_8] : memref<128x128xbf16, #tpu.memory_space<vmem>>, vector<128x128xbf16>
    %cst_9 = arith.constant dense<0.000000e+00> : vector<32x128xf32>
    %12 = tpu.matmul %10, %11, %cst_9 {dimension_numbers = #tpu.dot_dimension_numbers<[1], [0], [0], [1], [0, 0, 1, 1], [], []>} : vector<32x128xbf16>, vector<128x128xbf16>, vector<32x128xf32> -> vector<32x128xf32>
    %c0_10 = arith.constant 0 : index
    %c0_11 = arith.constant 0 : index
    %13 = vector.load %arg5[%c0_10, %c0_11] : memref<1x128xf32, #tpu.memory_space<vmem>>, vector<1x128xf32>
    %14 = vector.broadcast %13 : vector<1x128xf32> to vector<32x128xf32>
    %15 = arith.addf %12, %14 : vector<32x128xf32>
    %cst_12 = arith.constant 0.000000e+00 : f32
    %cst_13 = arith.constant 6.000000e+00 : f32
    %16 = vector.broadcast %cst_12 : f32 to vector<32x128xf32>
    %17 = arith.maximumf %16, %15 : vector<32x128xf32>
    %18 = vector.broadcast %cst_13 : f32 to vector<32x128xf32>
    %19 = arith.minimumf %18, %17 : vector<32x128xf32>
    %c0_14 = arith.constant 0 : index
    %c0_15 = arith.constant 0 : index
    %20 = vector.load %arg6[%c0_14, %c0_15] : memref<128x128xbf16, #tpu.memory_space<vmem>>, vector<128x128xbf16>
    %c0_16 = arith.constant 0 : index
    %c0_17 = arith.constant 0 : index
    %21 = vector.load %arg7[%c0_16, %c0_17] : memref<1x128xf32, #tpu.memory_space<vmem>>, vector<1x128xf32>
    %22 = arith.truncf %19 : vector<32x128xf32> to vector<32x128xbf16>
    %cst_18 = arith.constant dense<0.000000e+00> : vector<32x128xf32>
    %23 = tpu.matmul %22, %20, %cst_18 {dimension_numbers = #tpu.dot_dimension_numbers<[1], [0], [0], [1], [0, 0, 1, 1], [], []>} : vector<32x128xbf16>, vector<128x128xbf16>, vector<32x128xf32> -> vector<32x128xf32>
    %24 = vector.broadcast %21 : vector<1x128xf32> to vector<32x128xf32>
    %25 = arith.addf %23, %24 : vector<32x128xf32>
    %cst_19 = arith.constant 0.000000e+00 : f32
    %26 = vector.broadcast %cst_19 : f32 to vector<32x128xf32>
    %27 = arith.subf %26, %25 : vector<32x128xf32>
    %28 = math.exp %27 : vector<32x128xf32>
    %cst_20 = arith.constant 1.000000e+00 : f32
    %29 = vector.broadcast %cst_20 : f32 to vector<32x128xf32>
    %30 = arith.addf %29, %28 : vector<32x128xf32>
    %cst_21 = arith.constant 1.000000e+00 : f32
    %31 = vector.broadcast %cst_21 : f32 to vector<32x128xf32>
    %32 = arith.divf %31, %30 : vector<32x128xf32>
    %c0_22 = arith.constant 0 : index
    %c0_23 = arith.constant 0 : index
    %33 = vector.load %arg9[%c0_22, %c0_23] : memref<32x128xf32, #tpu.memory_space<vmem>>, vector<32x128xf32>
    tpu.vector_store %arg9[%c0_22, %c0_23], %32 {strides = array<i32>} : memref<32x128xf32, #tpu.memory_space<vmem>>, vector<32x128xf32>,
    %34 = vector.shape_cast %19 : vector<32x128xf32> to vector<8x4x128xf32>
    %cst_24 = arith.constant dense<0.000000e+00> : vector<8x128xf32>
    %35 = vector.multi_reduction <add>, %34, %cst_24 [1] : vector<8x4x128xf32> to vector<8x128xf32>
    %cst_25 = arith.constant 2.500000e-01 : f32
    %36 = vector.broadcast %cst_25 : f32 to vector<8x128xf32>
    %37 = arith.mulf %35, %36 : vector<8x128xf32>
    %38 = arith.truncf %37 : vector<8x128xf32> to vector<8x128xbf16>
    %cst_26 = arith.constant dense<0.000000e+00> : vector<8x128xf32>
    %39 = tpu.matmul %38, %20, %cst_26 {dimension_numbers = #tpu.dot_dimension_numbers<[1], [0], [0], [1], [0, 0, 1, 1], [], []>} : vector<8x128xbf16>, vector<128x128xbf16>, vector<8x128xf32> -> vector<8x128xf32>
    %40 = vector.broadcast %21 : vector<1x128xf32> to vector<8x128xf32>
    %41 = arith.addf %39, %40 : vector<8x128xf32>
    %cst_27 = arith.constant 0.000000e+00 : f32
    %42 = vector.broadcast %cst_27 : f32 to vector<8x128xf32>
    %43 = arith.subf %42, %41 : vector<8x128xf32>
    %44 = math.exp %43 : vector<8x128xf32>
    %cst_28 = arith.constant 1.000000e+00 : f32
    %45 = vector.broadcast %cst_28 : f32 to vector<8x128xf32>
    %46 = arith.addf %45, %44 : vector<8x128xf32>
    %cst_29 = arith.constant 1.000000e+00 : f32
    %47 = vector.broadcast %cst_29 : f32 to vector<8x128xf32>
    %48 = arith.divf %47, %46 : vector<8x128xf32>
    %c0_30 = arith.constant 0 : index
    %c0_31 = arith.constant 0 : index
    %49 = vector.load %arg8[%c0_30, %c0_31] : memref<8x128xf32, #tpu.memory_space<vmem>>, vector<8x128xf32>
    tpu.vector_store %arg8[%c0_30, %c0_31], %48 {strides = array<i32>} : memref<8x128xf32, #tpu.memory_space<vmem>>, vector<8x128xf32>,
    return
  }
  func.func @transform_0(%arg0: i32) -> (i32, i32) {
    %c0_i32 = arith.constant 0 : i32
    %c0_i32_0 = arith.constant 0 : i32
    return %arg0, %c0_i32 : i32, i32
  }
  func.func @transform_1(%arg0: i32) -> (i32, i32) {
    %c0_i32 = arith.constant 0 : i32
    %c0_i32_0 = arith.constant 0 : i32
    %c0_i32_1 = arith.constant 0 : i32
    return %c0_i32, %c0_i32_0 : i32, i32
  }
  func.func @transform_2(%arg0: i32) -> (i32, i32) {
    %c0_i32 = arith.constant 0 : i32
    %c0_i32_0 = arith.constant 0 : i32
    %c0_i32_1 = arith.constant 0 : i32
    return %c0_i32, %c0_i32_0 : i32, i32
  }
  func.func @transform_3(%arg0: i32) -> (i32, i32) {
    %c0_i32 = arith.constant 0 : i32
    %c0_i32_0 = arith.constant 0 : i32
    %c0_i32_1 = arith.constant 0 : i32
    return %c0_i32, %c0_i32_0 : i32, i32
  }
  func.func @transform_4(%arg0: i32) -> (i32, i32) {
    %c0_i32 = arith.constant 0 : i32
    %c0_i32_0 = arith.constant 0 : i32
    %c0_i32_1 = arith.constant 0 : i32
    return %c0_i32, %c0_i32_0 : i32, i32
  }
  func.func @transform_5(%arg0: i32) -> (i32, i32) {
    %c0_i32 = arith.constant 0 : i32
    %c0_i32_0 = arith.constant 0 : i32
    %c0_i32_1 = arith.constant 0 : i32
    return %c0_i32, %c0_i32_0 : i32, i32
  }
  func.func @transform_6(%arg0: i32) -> (i32, i32) {
    %c0_i32 = arith.constant 0 : i32
    %c0_i32_0 = arith.constant 0 : i32
    %c0_i32_1 = arith.constant 0 : i32
    return %c0_i32, %c0_i32_0 : i32, i32
  }
  func.func @transform_7(%arg0: i32) -> (i32, i32) {
    %c0_i32 = arith.constant 0 : i32
    %c0_i32_0 = arith.constant 0 : i32
    return %arg0, %c0_i32 : i32, i32
  }
  func.func @transform_8(%arg0: i32) -> (i32, i32) {
    %c0_i32 = arith.constant 0 : i32
    %c0_i32_0 = arith.constant 0 : i32
    return %arg0, %c0_i32 : i32, i32
  }
}

module attributes {stable_mosaic.version = 11 : i64} {
  func.func @_cam_profile_kernel(%arg0: i32, %arg1: memref<16x2xf32, #tpu.memory_space<vmem>>, %arg2: memref<64x2xf32, #tpu.memory_space<vmem>>, %arg3: memref<2x64xf32, #tpu.memory_space<vmem>>, %arg4: memref<8x64xf32, #tpu.memory_space<vmem>>, %arg5: memref<8x64xf32, #tpu.memory_space<vmem>>) attributes {dimension_semantics = [#tpu.dimension_semantics<parallel>], iteration_bounds = array<i64: 2>, scalar_prefetch = 0 : i64, scratch_operands = 0 : i64, tpu.core_type = #tpu.core_type<tc>, window_params = [{transform_indices = @transform_0, window_bounds = array<i64: 16, 2>}, {pipeline_mode = #tpu.pipeline_mode<synchronous>, transform_indices = @transform_1, window_bounds = array<i64: 64, 2>}, {pipeline_mode = #tpu.pipeline_mode<synchronous>, transform_indices = @transform_2, window_bounds = array<i64: 2, 64>}, {transform_indices = @transform_3, window_bounds = array<i64: 8, 64>}, {transform_indices = @transform_4, window_bounds = array<i64: 8, 64>}]} {
    %c0 = arith.constant 0 : index
    %c0_0 = arith.constant 0 : index
    %0 = vector.load %arg1[%c0, %c0_0] : memref<16x2xf32, #tpu.memory_space<vmem>>, vector<16x2xf32>
    %c0_1 = arith.constant 0 : index
    %c0_2 = arith.constant 0 : index
    %1 = vector.load %arg3[%c0_1, %c0_2] : memref<2x64xf32, #tpu.memory_space<vmem>>, vector<2x64xf32>
    %cst = arith.constant dense<0.000000e+00> : vector<16x64xf32>
    %2 = tpu.matmul %0, %1, %cst {dimension_numbers = #tpu.dot_dimension_numbers<[1], [0], [0], [1], [0, 0, 1, 1], [], []>} : vector<16x2xf32>, vector<2x64xf32>, vector<16x64xf32> -> vector<16x64xf32>
    %c0_3 = arith.constant 0 : index
    %c0_4 = arith.constant 0 : index
    %3 = vector.load %arg2[%c0_3, %c0_4] : memref<64x2xf32, #tpu.memory_space<vmem>>, vector<64x2xf32>
    %4 = vector.extract_strided_slice %2 {offsets = [0, 0], sizes = [2, 64], strides = [1, 1]} : vector<16x64xf32> to vector<2x64xf32>
    %cst_5 = arith.constant dense<0.000000e+00> : vector<64x64xf32>
    %5 = tpu.matmul %3, %4, %cst_5 {dimension_numbers = #tpu.dot_dimension_numbers<[1], [0], [0], [1], [0, 0, 1, 1], [], []>} : vector<64x2xf32>, vector<2x64xf32>, vector<64x64xf32> -> vector<64x64xf32>
    %cst_6 = arith.constant dense<0xFF800000> : vector<64xf32>
    %6 = vector.multi_reduction <maximumf>, %5, %cst_6 [0] : vector<64x64xf32> to vector<64xf32>
    %7 = vector.shape_cast %6 : vector<64xf32> to vector<1x64xf32>
    %c0_7 = arith.constant 0 : index
    %c0_8 = arith.constant 0 : index
    %8 = vector.load %arg4[%c0_7, %c0_8] : memref<8x64xf32, #tpu.memory_space<vmem>>, vector<1x64xf32>
    tpu.vector_store %arg4[%c0_7, %c0_8], %7 {strides = array<i32>} : memref<8x64xf32, #tpu.memory_space<vmem>>, vector<1x64xf32>,
    %cst_9 = arith.constant dense<0xFF800000> : vector<64xf32>
    %9 = vector.multi_reduction <maximumf>, %5, %cst_9 [1] : vector<64x64xf32> to vector<64xf32>
    %10 = vector.shape_cast %9 : vector<64xf32> to vector<1x64xf32>
    %c0_10 = arith.constant 0 : index
    %c0_11 = arith.constant 0 : index
    %11 = vector.load %arg5[%c0_10, %c0_11] : memref<8x64xf32, #tpu.memory_space<vmem>>, vector<1x64xf32>
    tpu.vector_store %arg5[%c0_10, %c0_11], %10 {strides = array<i32>} : memref<8x64xf32, #tpu.memory_space<vmem>>, vector<1x64xf32>,
    %12 = vector.extract_strided_slice %2 {offsets = [2, 0], sizes = [2, 64], strides = [1, 1]} : vector<16x64xf32> to vector<2x64xf32>
    %cst_12 = arith.constant dense<0.000000e+00> : vector<64x64xf32>
    %13 = tpu.matmul %3, %12, %cst_12 {dimension_numbers = #tpu.dot_dimension_numbers<[1], [0], [0], [1], [0, 0, 1, 1], [], []>} : vector<64x2xf32>, vector<2x64xf32>, vector<64x64xf32> -> vector<64x64xf32>
    %cst_13 = arith.constant dense<0xFF800000> : vector<64xf32>
    %14 = vector.multi_reduction <maximumf>, %13, %cst_13 [0] : vector<64x64xf32> to vector<64xf32>
    %15 = vector.shape_cast %14 : vector<64xf32> to vector<1x64xf32>
    %c1 = arith.constant 1 : index
    %c0_14 = arith.constant 0 : index
    %16 = vector.load %arg4[%c1, %c0_14] : memref<8x64xf32, #tpu.memory_space<vmem>>, vector<1x64xf32>
    tpu.vector_store %arg4[%c1, %c0_14], %15 {strides = array<i32>} : memref<8x64xf32, #tpu.memory_space<vmem>>, vector<1x64xf32>,
    %cst_15 = arith.constant dense<0xFF800000> : vector<64xf32>
    %17 = vector.multi_reduction <maximumf>, %13, %cst_15 [1] : vector<64x64xf32> to vector<64xf32>
    %18 = vector.shape_cast %17 : vector<64xf32> to vector<1x64xf32>
    %c1_16 = arith.constant 1 : index
    %c0_17 = arith.constant 0 : index
    %19 = vector.load %arg5[%c1_16, %c0_17] : memref<8x64xf32, #tpu.memory_space<vmem>>, vector<1x64xf32>
    tpu.vector_store %arg5[%c1_16, %c0_17], %18 {strides = array<i32>} : memref<8x64xf32, #tpu.memory_space<vmem>>, vector<1x64xf32>,
    %20 = vector.extract_strided_slice %2 {offsets = [4, 0], sizes = [2, 64], strides = [1, 1]} : vector<16x64xf32> to vector<2x64xf32>
    %cst_18 = arith.constant dense<0.000000e+00> : vector<64x64xf32>
    %21 = tpu.matmul %3, %20, %cst_18 {dimension_numbers = #tpu.dot_dimension_numbers<[1], [0], [0], [1], [0, 0, 1, 1], [], []>} : vector<64x2xf32>, vector<2x64xf32>, vector<64x64xf32> -> vector<64x64xf32>
    %cst_19 = arith.constant dense<0xFF800000> : vector<64xf32>
    %22 = vector.multi_reduction <maximumf>, %21, %cst_19 [0] : vector<64x64xf32> to vector<64xf32>
    %23 = vector.shape_cast %22 : vector<64xf32> to vector<1x64xf32>
    %c2 = arith.constant 2 : index
    %c0_20 = arith.constant 0 : index
    %24 = vector.load %arg4[%c2, %c0_20] : memref<8x64xf32, #tpu.memory_space<vmem>>, vector<1x64xf32>
    tpu.vector_store %arg4[%c2, %c0_20], %23 {strides = array<i32>} : memref<8x64xf32, #tpu.memory_space<vmem>>, vector<1x64xf32>,
    %cst_21 = arith.constant dense<0xFF800000> : vector<64xf32>
    %25 = vector.multi_reduction <maximumf>, %21, %cst_21 [1] : vector<64x64xf32> to vector<64xf32>
    %26 = vector.shape_cast %25 : vector<64xf32> to vector<1x64xf32>
    %c2_22 = arith.constant 2 : index
    %c0_23 = arith.constant 0 : index
    %27 = vector.load %arg5[%c2_22, %c0_23] : memref<8x64xf32, #tpu.memory_space<vmem>>, vector<1x64xf32>
    tpu.vector_store %arg5[%c2_22, %c0_23], %26 {strides = array<i32>} : memref<8x64xf32, #tpu.memory_space<vmem>>, vector<1x64xf32>,
    %28 = vector.extract_strided_slice %2 {offsets = [6, 0], sizes = [2, 64], strides = [1, 1]} : vector<16x64xf32> to vector<2x64xf32>
    %cst_24 = arith.constant dense<0.000000e+00> : vector<64x64xf32>
    %29 = tpu.matmul %3, %28, %cst_24 {dimension_numbers = #tpu.dot_dimension_numbers<[1], [0], [0], [1], [0, 0, 1, 1], [], []>} : vector<64x2xf32>, vector<2x64xf32>, vector<64x64xf32> -> vector<64x64xf32>
    %cst_25 = arith.constant dense<0xFF800000> : vector<64xf32>
    %30 = vector.multi_reduction <maximumf>, %29, %cst_25 [0] : vector<64x64xf32> to vector<64xf32>
    %31 = vector.shape_cast %30 : vector<64xf32> to vector<1x64xf32>
    %c3 = arith.constant 3 : index
    %c0_26 = arith.constant 0 : index
    %32 = vector.load %arg4[%c3, %c0_26] : memref<8x64xf32, #tpu.memory_space<vmem>>, vector<1x64xf32>
    tpu.vector_store %arg4[%c3, %c0_26], %31 {strides = array<i32>} : memref<8x64xf32, #tpu.memory_space<vmem>>, vector<1x64xf32>,
    %cst_27 = arith.constant dense<0xFF800000> : vector<64xf32>
    %33 = vector.multi_reduction <maximumf>, %29, %cst_27 [1] : vector<64x64xf32> to vector<64xf32>
    %34 = vector.shape_cast %33 : vector<64xf32> to vector<1x64xf32>
    %c3_28 = arith.constant 3 : index
    %c0_29 = arith.constant 0 : index
    %35 = vector.load %arg5[%c3_28, %c0_29] : memref<8x64xf32, #tpu.memory_space<vmem>>, vector<1x64xf32>
    tpu.vector_store %arg5[%c3_28, %c0_29], %34 {strides = array<i32>} : memref<8x64xf32, #tpu.memory_space<vmem>>, vector<1x64xf32>,
    %36 = vector.extract_strided_slice %2 {offsets = [8, 0], sizes = [2, 64], strides = [1, 1]} : vector<16x64xf32> to vector<2x64xf32>
    %cst_30 = arith.constant dense<0.000000e+00> : vector<64x64xf32>
    %37 = tpu.matmul %3, %36, %cst_30 {dimension_numbers = #tpu.dot_dimension_numbers<[1], [0], [0], [1], [0, 0, 1, 1], [], []>} : vector<64x2xf32>, vector<2x64xf32>, vector<64x64xf32> -> vector<64x64xf32>
    %cst_31 = arith.constant dense<0xFF800000> : vector<64xf32>
    %38 = vector.multi_reduction <maximumf>, %37, %cst_31 [0] : vector<64x64xf32> to vector<64xf32>
    %39 = vector.shape_cast %38 : vector<64xf32> to vector<1x64xf32>
    %c4 = arith.constant 4 : index
    %c0_32 = arith.constant 0 : index
    %40 = vector.load %arg4[%c4, %c0_32] : memref<8x64xf32, #tpu.memory_space<vmem>>, vector<1x64xf32>
    tpu.vector_store %arg4[%c4, %c0_32], %39 {strides = array<i32>} : memref<8x64xf32, #tpu.memory_space<vmem>>, vector<1x64xf32>,
    %cst_33 = arith.constant dense<0xFF800000> : vector<64xf32>
    %41 = vector.multi_reduction <maximumf>, %37, %cst_33 [1] : vector<64x64xf32> to vector<64xf32>
    %42 = vector.shape_cast %41 : vector<64xf32> to vector<1x64xf32>
    %c4_34 = arith.constant 4 : index
    %c0_35 = arith.constant 0 : index
    %43 = vector.load %arg5[%c4_34, %c0_35] : memref<8x64xf32, #tpu.memory_space<vmem>>, vector<1x64xf32>
    tpu.vector_store %arg5[%c4_34, %c0_35], %42 {strides = array<i32>} : memref<8x64xf32, #tpu.memory_space<vmem>>, vector<1x64xf32>,
    %44 = vector.extract_strided_slice %2 {offsets = [10, 0], sizes = [2, 64], strides = [1, 1]} : vector<16x64xf32> to vector<2x64xf32>
    %cst_36 = arith.constant dense<0.000000e+00> : vector<64x64xf32>
    %45 = tpu.matmul %3, %44, %cst_36 {dimension_numbers = #tpu.dot_dimension_numbers<[1], [0], [0], [1], [0, 0, 1, 1], [], []>} : vector<64x2xf32>, vector<2x64xf32>, vector<64x64xf32> -> vector<64x64xf32>
    %cst_37 = arith.constant dense<0xFF800000> : vector<64xf32>
    %46 = vector.multi_reduction <maximumf>, %45, %cst_37 [0] : vector<64x64xf32> to vector<64xf32>
    %47 = vector.shape_cast %46 : vector<64xf32> to vector<1x64xf32>
    %c5 = arith.constant 5 : index
    %c0_38 = arith.constant 0 : index
    %48 = vector.load %arg4[%c5, %c0_38] : memref<8x64xf32, #tpu.memory_space<vmem>>, vector<1x64xf32>
    tpu.vector_store %arg4[%c5, %c0_38], %47 {strides = array<i32>} : memref<8x64xf32, #tpu.memory_space<vmem>>, vector<1x64xf32>,
    %cst_39 = arith.constant dense<0xFF800000> : vector<64xf32>
    %49 = vector.multi_reduction <maximumf>, %45, %cst_39 [1] : vector<64x64xf32> to vector<64xf32>
    %50 = vector.shape_cast %49 : vector<64xf32> to vector<1x64xf32>
    %c5_40 = arith.constant 5 : index
    %c0_41 = arith.constant 0 : index
    %51 = vector.load %arg5[%c5_40, %c0_41] : memref<8x64xf32, #tpu.memory_space<vmem>>, vector<1x64xf32>
    tpu.vector_store %arg5[%c5_40, %c0_41], %50 {strides = array<i32>} : memref<8x64xf32, #tpu.memory_space<vmem>>, vector<1x64xf32>,
    %52 = vector.extract_strided_slice %2 {offsets = [12, 0], sizes = [2, 64], strides = [1, 1]} : vector<16x64xf32> to vector<2x64xf32>
    %cst_42 = arith.constant dense<0.000000e+00> : vector<64x64xf32>
    %53 = tpu.matmul %3, %52, %cst_42 {dimension_numbers = #tpu.dot_dimension_numbers<[1], [0], [0], [1], [0, 0, 1, 1], [], []>} : vector<64x2xf32>, vector<2x64xf32>, vector<64x64xf32> -> vector<64x64xf32>
    %cst_43 = arith.constant dense<0xFF800000> : vector<64xf32>
    %54 = vector.multi_reduction <maximumf>, %53, %cst_43 [0] : vector<64x64xf32> to vector<64xf32>
    %55 = vector.shape_cast %54 : vector<64xf32> to vector<1x64xf32>
    %c6 = arith.constant 6 : index
    %c0_44 = arith.constant 0 : index
    %56 = vector.load %arg4[%c6, %c0_44] : memref<8x64xf32, #tpu.memory_space<vmem>>, vector<1x64xf32>
    tpu.vector_store %arg4[%c6, %c0_44], %55 {strides = array<i32>} : memref<8x64xf32, #tpu.memory_space<vmem>>, vector<1x64xf32>,
    %cst_45 = arith.constant dense<0xFF800000> : vector<64xf32>
    %57 = vector.multi_reduction <maximumf>, %53, %cst_45 [1] : vector<64x64xf32> to vector<64xf32>
    %58 = vector.shape_cast %57 : vector<64xf32> to vector<1x64xf32>
    %c6_46 = arith.constant 6 : index
    %c0_47 = arith.constant 0 : index
    %59 = vector.load %arg5[%c6_46, %c0_47] : memref<8x64xf32, #tpu.memory_space<vmem>>, vector<1x64xf32>
    tpu.vector_store %arg5[%c6_46, %c0_47], %58 {strides = array<i32>} : memref<8x64xf32, #tpu.memory_space<vmem>>, vector<1x64xf32>,
    %60 = vector.extract_strided_slice %2 {offsets = [14, 0], sizes = [2, 64], strides = [1, 1]} : vector<16x64xf32> to vector<2x64xf32>
    %cst_48 = arith.constant dense<0.000000e+00> : vector<64x64xf32>
    %61 = tpu.matmul %3, %60, %cst_48 {dimension_numbers = #tpu.dot_dimension_numbers<[1], [0], [0], [1], [0, 0, 1, 1], [], []>} : vector<64x2xf32>, vector<2x64xf32>, vector<64x64xf32> -> vector<64x64xf32>
    %cst_49 = arith.constant dense<0xFF800000> : vector<64xf32>
    %62 = vector.multi_reduction <maximumf>, %61, %cst_49 [0] : vector<64x64xf32> to vector<64xf32>
    %63 = vector.shape_cast %62 : vector<64xf32> to vector<1x64xf32>
    %c7 = arith.constant 7 : index
    %c0_50 = arith.constant 0 : index
    %64 = vector.load %arg4[%c7, %c0_50] : memref<8x64xf32, #tpu.memory_space<vmem>>, vector<1x64xf32>
    tpu.vector_store %arg4[%c7, %c0_50], %63 {strides = array<i32>} : memref<8x64xf32, #tpu.memory_space<vmem>>, vector<1x64xf32>,
    %cst_51 = arith.constant dense<0xFF800000> : vector<64xf32>
    %65 = vector.multi_reduction <maximumf>, %61, %cst_51 [1] : vector<64x64xf32> to vector<64xf32>
    %66 = vector.shape_cast %65 : vector<64xf32> to vector<1x64xf32>
    %c7_52 = arith.constant 7 : index
    %c0_53 = arith.constant 0 : index
    %67 = vector.load %arg5[%c7_52, %c0_53] : memref<8x64xf32, #tpu.memory_space<vmem>>, vector<1x64xf32>
    tpu.vector_store %arg5[%c7_52, %c0_53], %66 {strides = array<i32>} : memref<8x64xf32, #tpu.memory_space<vmem>>, vector<1x64xf32>,
    return
  }
  func.func @transform_0(%arg0: i32) -> (i32, i32) {
    %c0_i32 = arith.constant 0 : i32
    %c0_i32_0 = arith.constant 0 : i32
    return %arg0, %c0_i32 : i32, i32
  }
  func.func @transform_1(%arg0: i32) -> (i32, i32) {
    %c0_i32 = arith.constant 0 : i32
    %c0_i32_0 = arith.constant 0 : i32
    %c0_i32_1 = arith.constant 0 : i32
    return %c0_i32, %c0_i32_0 : i32, i32
  }
  func.func @transform_2(%arg0: i32) -> (i32, i32) {
    %c0_i32 = arith.constant 0 : i32
    %c0_i32_0 = arith.constant 0 : i32
    %c0_i32_1 = arith.constant 0 : i32
    return %c0_i32, %c0_i32_0 : i32, i32
  }
  func.func @transform_3(%arg0: i32) -> (i32, i32) {
    %c0_i32 = arith.constant 0 : i32
    %c0_i32_0 = arith.constant 0 : i32
    return %arg0, %c0_i32 : i32, i32
  }
  func.func @transform_4(%arg0: i32) -> (i32, i32) {
    %c0_i32 = arith.constant 0 : i32
    %c0_i32_0 = arith.constant 0 : i32
    return %arg0, %c0_i32 : i32, i32
  }
}

module attributes {stable_mosaic.version = 11 : i64} {
  func.func @_backbone_kernel(%arg0: i32, %arg1: memref<32x3072xbf16, #tpu.memory_space<vmem>>, %arg2: memref<3072x128xbf16, #tpu.memory_space<vmem>>, %arg3: memref<1x128xf32, #tpu.memory_space<vmem>>, %arg4: memref<128x128xbf16, #tpu.memory_space<vmem>>, %arg5: memref<1x128xf32, #tpu.memory_space<vmem>>, %arg6: memref<128x128xbf16, #tpu.memory_space<vmem>>, %arg7: memref<1x128xf32, #tpu.memory_space<vmem>>, %arg8: memref<8x128xf32, #tpu.memory_space<vmem>>, %arg9: memref<32x128xf32, #tpu.memory_space<vmem>>) attributes {dimension_semantics = [#tpu.dimension_semantics<parallel>], iteration_bounds = array<i64: 1>, scalar_prefetch = 0 : i64, scratch_operands = 0 : i64, tpu.core_type = #tpu.core_type<tc>, window_params = [{transform_indices = @transform_0, window_bounds = array<i64: 32, 3072>}, {pipeline_mode = #tpu.pipeline_mode<synchronous>, transform_indices = @transform_1, window_bounds = array<i64: 3072, 128>}, {pipeline_mode = #tpu.pipeline_mode<synchronous>, transform_indices = @transform_2, window_bounds = array<i64: 1, 128>}, {pipeline_mode = #tpu.pipeline_mode<synchronous>, transform_indices = @transform_3, window_bounds = array<i64: 128, 128>}, {pipeline_mode = #tpu.pipeline_mode<synchronous>, transform_indices = @transform_4, window_bounds = array<i64: 1, 128>}, {pipeline_mode = #tpu.pipeline_mode<synchronous>, transform_indices = @transform_5, window_bounds = array<i64: 128, 128>}, {pipeline_mode = #tpu.pipeline_mode<synchronous>, transform_indices = @transform_6, window_bounds = array<i64: 1, 128>}, {transform_indices = @transform_7, window_bounds = array<i64: 8, 128>}, {transform_indices = @transform_8, window_bounds = array<i64: 32, 128>}]} {
    %c0 = arith.constant 0 : index
    %c0_0 = arith.constant 0 : index
    %0 = vector.load %arg1[%c0, %c0_0] : memref<32x3072xbf16, #tpu.memory_space<vmem>>, vector<32x3072xbf16>
    %c0_1 = arith.constant 0 : index
    %c0_2 = arith.constant 0 : index
    %1 = vector.load %arg2[%c0_1, %c0_2] : memref<3072x128xbf16, #tpu.memory_space<vmem>>, vector<3072x128xbf16>
    %cst = arith.constant dense<0.000000e+00> : vector<32x128xf32>
    %2 = tpu.matmul %0, %1, %cst {dimension_numbers = #tpu.dot_dimension_numbers<[1], [0], [0], [1], [0, 0, 1, 1], [], []>} : vector<32x3072xbf16>, vector<3072x128xbf16>, vector<32x128xf32> -> vector<32x128xf32>
    %c0_3 = arith.constant 0 : index
    %c0_4 = arith.constant 0 : index
    %3 = vector.load %arg3[%c0_3, %c0_4] : memref<1x128xf32, #tpu.memory_space<vmem>>, vector<1x128xf32>
    %4 = vector.broadcast %3 : vector<1x128xf32> to vector<32x128xf32>
    %5 = arith.addf %2, %4 : vector<32x128xf32>
    %cst_5 = arith.constant 0.000000e+00 : f32
    %cst_6 = arith.constant 6.000000e+00 : f32
    %6 = vector.broadcast %cst_5 : f32 to vector<32x128xf32>
    %7 = arith.maximumf %6, %5 : vector<32x128xf32>
    %8 = vector.broadcast %cst_6 : f32 to vector<32x128xf32>
    %9 = arith.minimumf %8, %7 : vector<32x128xf32>
    %10 = arith.truncf %9 : vector<32x128xf32> to vector<32x128xbf16>
    %c0_7 = arith.constant 0 : index
    %c0_8 = arith.constant 0 : index
    %11 = vector.load %arg4[%c0_7, %c0_8] : memref<128x128xbf16, #tpu.memory_space<vmem>>, vector<128x128xbf16>
    %cst_9 = arith.constant dense<0.000000e+00> : vector<32x128xf32>
    %12 = tpu.matmul %10, %11, %cst_9 {dimension_numbers = #tpu.dot_dimension_numbers<[1], [0], [0], [1], [0, 0, 1, 1], [], []>} : vector<32x128xbf16>, vector<128x128xbf16>, vector<32x128xf32> -> vector<32x128xf32>
    %c0_10 = arith.constant 0 : index
    %c0_11 = arith.constant 0 : index
    %13 = vector.load %arg5[%c0_10, %c0_11] : memref<1x128xf32, #tpu.memory_space<vmem>>, vector<1x128xf32>
    %14 = vector.broadcast %13 : vector<1x128xf32> to vector<32x128xf32>
    %15 = arith.addf %12, %14 : vector<32x128xf32>
    %cst_12 = arith.constant 0.000000e+00 : f32
    %cst_13 = arith.constant 6.000000e+00 : f32
    %16 = vector.broadcast %cst_12 : f32 to vector<32x128xf32>
    %17 = arith.maximumf %16, %15 : vector<32x128xf32>
    %18 = vector.broadcast %cst_13 : f32 to vector<32x128xf32>
    %19 = arith.minimumf %18, %17 : vector<32x128xf32>
    %c0_14 = arith.constant 0 : index
    %c0_15 = arith.constant 0 : index
    %20 = vector.load %arg6[%c0_14, %c0_15] : memref<128x128xbf16, #tpu.memory_space<vmem>>, vector<128x128xbf16>
    %c0_16 = arith.constant 0 : index
    %c0_17 = arith.constant 0 : index
    %21 = vector.load %arg7[%c0_16, %c0_17] : memref<1x128xf32, #tpu.memory_space<vmem>>, vector<1x128xf32>
    %22 = arith.truncf %19 : vector<32x128xf32> to vector<32x128xbf16>
    %cst_18 = arith.constant dense<0.000000e+00> : vector<32x128xf32>
    %23 = tpu.matmul %22, %20, %cst_18 {dimension_numbers = #tpu.dot_dimension_numbers<[1], [0], [0], [1], [0, 0, 1, 1], [], []>} : vector<32x128xbf16>, vector<128x128xbf16>, vector<32x128xf32> -> vector<32x128xf32>
    %24 = vector.broadcast %21 : vector<1x128xf32> to vector<32x128xf32>
    %25 = arith.addf %23, %24 : vector<32x128xf32>
    %cst_19 = arith.constant 0.000000e+00 : f32
    %26 = vector.broadcast %cst_19 : f32 to vector<32x128xf32>
    %27 = arith.subf %26, %25 : vector<32x128xf32>
    %28 = math.exp %27 : vector<32x128xf32>
    %cst_20 = arith.constant 1.000000e+00 : f32
    %29 = vector.broadcast %cst_20 : f32 to vector<32x128xf32>
    %30 = arith.addf %29, %28 : vector<32x128xf32>
    %cst_21 = arith.constant 1.000000e+00 : f32
    %31 = vector.broadcast %cst_21 : f32 to vector<32x128xf32>
    %32 = arith.divf %31, %30 : vector<32x128xf32>
    %c0_22 = arith.constant 0 : index
    %c0_23 = arith.constant 0 : index
    %33 = vector.load %arg9[%c0_22, %c0_23] : memref<32x128xf32, #tpu.memory_space<vmem>>, vector<32x128xf32>
    tpu.vector_store %arg9[%c0_22, %c0_23], %32 {strides = array<i32>} : memref<32x128xf32, #tpu.memory_space<vmem>>, vector<32x128xf32>,
    %34 = vector.shape_cast %19 : vector<32x128xf32> to vector<8x4x128xf32>
    %cst_24 = arith.constant dense<0.000000e+00> : vector<8x128xf32>
    %35 = vector.multi_reduction <add>, %34, %cst_24 [1] : vector<8x4x128xf32> to vector<8x128xf32>
    %cst_25 = arith.constant 2.500000e-01 : f32
    %36 = vector.broadcast %cst_25 : f32 to vector<8x128xf32>
    %37 = arith.mulf %35, %36 : vector<8x128xf32>
    %38 = arith.truncf %37 : vector<8x128xf32> to vector<8x128xbf16>
    %cst_26 = arith.constant dense<0.000000e+00> : vector<8x128xf32>
    %39 = tpu.matmul %38, %20, %cst_26 {dimension_numbers = #tpu.dot_dimension_numbers<[1], [0], [0], [1], [0, 0, 1, 1], [], []>} : vector<8x128xbf16>, vector<128x128xbf16>, vector<8x128xf32> -> vector<8x128xf32>
    %40 = vector.broadcast %21 : vector<1x128xf32> to vector<8x128xf32>
    %41 = arith.addf %39, %40 : vector<8x128xf32>
    %cst_27 = arith.constant 0.000000e+00 : f32
    %42 = vector.broadcast %cst_27 : f32 to vector<8x128xf32>
    %43 = arith.subf %42, %41 : vector<8x128xf32>
    %44 = math.exp %43 : vector<8x128xf32>
    %cst_28 = arith.constant 1.000000e+00 : f32
    %45 = vector.broadcast %cst_28 : f32 to vector<8x128xf32>
    %46 = arith.addf %45, %44 : vector<8x128xf32>
    %cst_29 = arith.constant 1.000000e+00 : f32
    %47 = vector.broadcast %cst_29 : f32 to vector<8x128xf32>
    %48 = arith.divf %47, %46 : vector<8x128xf32>
    %c0_30 = arith.constant 0 : index
    %c0_31 = arith.constant 0 : index
    %49 = vector.load %arg8[%c0_30, %c0_31] : memref<8x128xf32, #tpu.memory_space<vmem>>, vector<8x128xf32>
    tpu.vector_store %arg8[%c0_30, %c0_31], %48 {strides = array<i32>} : memref<8x128xf32, #tpu.memory_space<vmem>>, vector<8x128xf32>,
    return
  }
  func.func @transform_0(%arg0: i32) -> (i32, i32) {
    %c0_i32 = arith.constant 0 : i32
    %c0_i32_0 = arith.constant 0 : i32
    return %arg0, %c0_i32 : i32, i32
  }
  func.func @transform_1(%arg0: i32) -> (i32, i32) {
    %c0_i32 = arith.constant 0 : i32
    %c0_i32_0 = arith.constant 0 : i32
    %c0_i32_1 = arith.constant 0 : i32
    return %c0_i32, %c0_i32_0 : i32, i32
  }
  func.func @transform_2(%arg0: i32) -> (i32, i32) {
    %c0_i32 = arith.constant 0 : i32
    %c0_i32_0 = arith.constant 0 : i32
    %c0_i32_1 = arith.constant 0 : i32
    return %c0_i32, %c0_i32_0 : i32, i32
  }
  func.func @transform_3(%arg0: i32) -> (i32, i32) {
    %c0_i32 = arith.constant 0 : i32
    %c0_i32_0 = arith.constant 0 : i32
    %c0_i32_1 = arith.constant 0 : i32
    return %c0_i32, %c0_i32_0 : i32, i32
  }
  func.func @transform_4(%arg0: i32) -> (i32, i32) {
    %c0_i32 = arith.constant 0 : i32
    %c0_i32_0 = arith.constant 0 : i32
    %c0_i32_1 = arith.constant 0 : i32
    return %c0_i32, %c0_i32_0 : i32, i32
  }
  func.func @transform_5(%arg0: i32) -> (i32, i32) {
    %c0_i32 = arith.constant 0 : i32
    %c0_i32_0 = arith.constant 0 : i32
    %c0_i32_1 = arith.constant 0 : i32
    return %c0_i32, %c0_i32_0 : i32, i32
  }
  func.func @transform_6(%arg0: i32) -> (i32, i32) {
    %c0_i32 = arith.constant 0 : i32
    %c0_i32_0 = arith.constant 0 : i32
    %c0_i32_1 = arith.constant 0 : i32
    return %c0_i32, %c0_i32_0 : i32, i32
  }
  func.func @transform_7(%arg0: i32) -> (i32, i32) {
    %c0_i32 = arith.constant 0 : i32
    %c0_i32_0 = arith.constant 0 : i32
    return %arg0, %c0_i32 : i32, i32
  }
  func.func @transform_8(%arg0: i32) -> (i32, i32) {
    %c0_i32 = arith.constant 0 : i32
    %c0_i32_0 = arith.constant 0 : i32
    return %arg0, %c0_i32 : i32, i32
  }
}

</mosaic_0001>

<bundles_post_ra>
// kernel: mcar_forward.4
= control target key start
LH: loop header
LB: loop body
LE: loop exit
PB: predicated region body
PF: predicated region fallthrough
CT: control target
= control target key end

     0   :  { %s2311_s15 = smov 0   ;;  %s2913_s0 = inlined_call_operand.vmem [shape: f32[32,2], index: 0, kind: input, shape index: {}]   ;;  %s2914_s1 = inlined_call_operand.vmem [shape: f32[64,2], index: 1, kind: input, shape index: {}]   ;;  %s2915_s2 = inlined_call_operand.vmem [shape: f32[2,64], index: 2, kind: input, shape index: {}]   ;;  %s2916_s3 = inlined_call_operand.vmem [shape: f32[16,64], index: 3, kind: output, shape index: {0}]   ;;  %s2917_s4 = inlined_call_operand.vmem [shape: f32[16,64], index: 4, kind: output, shape index: {1}]  }
   0x1 LB: > { %s2317_s16 = sadd.s32 4294967295, %s2284_s15   ;;  %p1996_p0 = scmp.ge.s32.totalorder %s2284_s15, 1  ;;  %s2284_s15 = sphi %s2311_s15, %s15_s15  }
   0x2   : > { %p166_p1 = scmp.lt.s32.totalorder %s2284_s15, 3 }
   0x4   : > { %p167_p2 = pnand %p1996_p0, %p166_p1 }
   0x5   : > { %s1997_s19 = sshll.u32 (!%p167_p2), %s2317_s16, 1  ;;  %p201_p4 = scmp.lt.s32.totalorder (!%p167_p2), %s2317_s16, 1 }
   0x6   : > { %170 = sbr.rel (%p167_p2) target bundleno = 675 (0x2a3), region = 32  ;;  %p196_p3 = scmp.lt.s32.totalorder (!%p167_p2), %s1997_s19, 3 }
   0xb   : > { %v211_v0 = vld [vmem:[%s2915_s2] sm:$0x3]  ;;  %vm219_vm0 = vcmask 1041408   ;;  %s2919_s19 = smov (!%p196_p3, %s1997_s19), 3  ;;  %vm212_vm1 = vcmask 15360   ;;  %v2346_v6 = vld [vmem:[%s2914_s1 + $0x8] sm:$0xff] }
   0xc   : > { %2153 = vmatprep.subr.msk.mxu0 %vm219_vm0, %v211_v0  ;;  %s1998_s20 = sshll.u32 %s2919_s19, 3  ;;  %v2335_v3 = vld [vmem:[%s2914_s1] sm:$0xff]  ;;  %v2358_v10 = vld [vmem:[%s2914_s1 + $0x10] sm:$0xff]  ;;  %v2366_v11 = vld [vmem:[%s2914_s1 + $0x18] sm:$0xff]  ;;  %vm438_vm2 = vcmask 523264   ;;  %s2921_s16 = smov (!%p201_p4, %s2317_s16), 1 }
   0xd   : > { %2154 = vmatpush3.msk.msra.mxu0 %vm219_vm0, %v211_v0  ;;  %s199_s23 = scalar_lea.vmem %s2913_s0, %s1998_s20  ;;  %2160 = vmatprep.mubr.msk.f32.mxu1 %vm212_vm1, %v2335_v3  ;;  %v2375_v13 = vld [vmem:[%s2914_s1 + $0x20] sm:$0xff]  ;;  %v2390_v14 = vld [vmem:[%s2914_s1 + $0x28] sm:$0xff]  ;;  %v304_v15 = vld [vmem:[%s2914_s1 + $0x30] sm:$0xff]  ;;  %vm460_vm3 = vcmask 516096   ;;  %s1999_s14 = sshll.u32 %s2921_s16, 3  ;;  %vm497_vm4 = vcmask 130112  }
   0xe   : > { %v209_v1 = vld [vmem:[%s199_s23] sm:$0xff]  ;;  %v210_v2 = vld [vmem:[%s199_s23 + $0x8] sm:$0xff]  ;;  %v305_v16 = vld [vmem:[%s2914_s1 + $0x38] sm:$0xff]  ;;  %s2562_s19 = scalar_lea.vmem %s2916_s3, %s1999_s14  ;;  %vm504_vm5 = vcmask 195712   ;;  %vm511_vm6 = vcmask 261312   ;;  %vm518_vm7 = vcmask 326912   ;;  %s2795_s22 = scalar_lea.vmem %s2917_s4, %s1999_s14 }
   0xf   : > { %2155 = vmatprep.mubr.msk.f32.mxu0 %vm212_vm1, %v209_v1  ;;  %vm525_vm8 = vcmask 392512   ;;  %vm532_vm9 = vcmask 458112   ;;  %vm539_vm10 = vcmask 523712  }
  0x10   : > { %2156 = vmatmul.mubr.msk.f32.vlgmr.msra.gmra.mxu0 %vm212_vm1, %v210_v2 }
  0x11   : > { %2174 = vmatprep.mubr.msk.f32.mxu0 %vm212_vm1, %v2335_v3 }
  0xd0   : > { %v2341_v4 = vpop.f32.mrf.mxu0 }
  0xd1   : > { %v1323_v12 = vrot.slane %v2341_v4, 2  ;;  %v1518_v17 = vrot.slane %v2341_v4, 4  ;;  %v1713_v18 = vrot.slane %v2341_v4, 6 }
  0xd2   : > { %v289_v5 = vpop.f32.mrf.mxu0 }
  0xd3   : > { %2158 = vmatprep.subr.msk.mxu1 %vm219_vm0, %v289_v5  ;;  %v543_v7 = vrot.slane %v289_v5, 2  ;;  %v738_v8 = vrot.slane %v289_v5, 4  ;;  %v933_v9 = vrot.slane %v289_v5, 6 }
  0xd4   : > { %2159 = vmatpush3.msk.msra.mxu1 %vm219_vm0, %v289_v5 }
  0xd5   : > { %2161 = vmatmul.mubr.msk.f32.vlgmr.msra.gmra.mxu1 %vm212_vm1, %v2346_v6  ;;  %2172 = vmatprep.subr.msk.mxu0 %vm219_vm0, %v543_v7 }
  0xd6   : > { %2186 = vmatprep.subr.msk.mxu1 %vm219_vm0, %v738_v8  ;;  %2173 = vmatpush3.msk.msra.mxu0 %vm219_vm0, %v543_v7 }
  0xd7   : > { %2187 = vmatpush3.msk.msra.mxu1 %vm219_vm0, %v738_v8  ;;  %2175 = vmatmul.mubr.msk.f32.vlgmr.msra.gmra.mxu0 %vm212_vm1, %v2346_v6 }
  0xd8   : > { %2200 = vmatprep.subr.msk.mxu0 %vm219_vm0, %v933_v9  ;;  %2214 = vmatprep.subr.msk.mxu1 %vm219_vm0, %v2341_v4 }
  0xd9   : > { %2163 = vmatprep.mubr.msk.f32.mxu1 %vm212_vm1, %v2358_v10  ;;  %2201 = vmatpush3.msk.msra.mxu0 %vm219_vm0, %v933_v9 }
  0xda   : > { %2164 = vmatmul.mubr.msk.f32.gmra.mxu1 %vm212_vm1, %v2366_v11  ;;  %2228 = vmatprep.subr.msk.mxu0 %vm219_vm0, %v1323_v12 }
  0xdb   : > { %2177 = vmatprep.mubr.msk.f32.mxu0 %vm212_vm1, %v2358_v10  ;;  %2166 = vmatprep.mubr.msk.f32.mxu1 %vm212_vm1, %v2375_v13 }
  0xdc   : > { %2178 = vmatmul.mubr.msk.f32.gmra.mxu0 %vm212_vm1, %v2366_v11 }
  0xdd   : > { %2180 = vmatprep.mubr.msk.f32.mxu0 %vm212_vm1, %v2375_v13 }
  0xde   : > { %2167 = vmatmul.mubr.msk.f32.gmra.mxu1 %vm212_vm1, %v2390_v14 }
  0xdf   : > { %2169 = vmatprep.mubr.msk.f32.mxu1 %vm212_vm1, %v304_v15 }
  0xe0   : > { %2181 = vmatmul.mubr.msk.f32.gmra.mxu0 %vm212_vm1, %v2390_v14 }
  0xe1   : > { %2183 = vmatprep.mubr.msk.f32.mxu0 %vm212_vm1, %v304_v15 }
  0xe2   : > { %2170 = vmatmul.mubr.msk.f32.gmra.mxu1 %vm212_vm1, %v305_v16 }
  0xe3   : > { %2188 = vmatprep.mubr.msk.f32.mxu1 %vm212_vm1, %v2335_v3 }
  0xe4   : > { %2184 = vmatmul.mubr.msk.f32.gmra.mxu0 %vm212_vm1, %v305_v16 }
  0xe5   : > { %2202 = vmatprep.mubr.msk.f32.mxu0 %vm212_vm1, %v2335_v3 }
  0xe6   : > { %2189 = vmatmul.mubr.msk.f32.vlgmr.msra.gmra.mxu1 %vm212_vm1, %v2346_v6 }
  0xe7   : > { %2215 = vmatpush3.msk.msra.mxu1 %vm219_vm0, %v2341_v4  ;;  %2191 = vmatprep.mubr.msk.f32.mxu1 %vm212_vm1, %v2358_v10 }
  0xe8   : > { %2242 = vmatprep.subr.msk.mxu1 %vm219_vm0, %v1518_v17  ;;  %2203 = vmatmul.mubr.msk.f32.vlgmr.msra.gmra.mxu0 %vm212_vm1, %v2346_v6 }
  0xe9   : > { %2229 = vmatpush3.msk.msra.mxu0 %vm219_vm0, %v1323_v12  ;;  %2205 = vmatprep.mubr.msk.f32.mxu0 %vm212_vm1, %v2358_v10 }
  0xea   : > { %2256 = vmatprep.subr.msk.mxu0 %vm219_vm0, %v1713_v18  ;;  %2192 = vmatmul.mubr.msk.f32.gmra.mxu1 %vm212_vm1, %v2366_v11 }
  0xeb   : > { %2194 = vmatprep.mubr.msk.f32.mxu1 %vm212_vm1, %v2375_v13 }
  0xec   : > { %2206 = vmatmul.mubr.msk.f32.gmra.mxu0 %vm212_vm1, %v2366_v11 }
  0xed   : > { %2208 = vmatprep.mubr.msk.f32.mxu0 %vm212_vm1, %v2375_v13 }
  0xee   : > { %2195 = vmatmul.mubr.msk.f32.gmra.mxu1 %vm212_vm1, %v2390_v14 }
  0xef   : > { %2197 = vmatprep.mubr.msk.f32.mxu1 %vm212_vm1, %v304_v15 }
  0xf0   : > { %2209 = vmatmul.mubr.msk.f32.gmra.mxu0 %vm212_vm1, %v2390_v14 }
  0xf1   : > { %2211 = vmatprep.mubr.msk.f32.mxu0 %vm212_vm1, %v304_v15 }
  0xf2   : > { %2198 = vmatmul.mubr.msk.f32.gmra.mxu1 %vm212_vm1, %v305_v16 }
  0xf3   : > { %2216 = vmatprep.mubr.msk.f32.mxu1 %vm212_vm1, %v2335_v3 }
  0xf4   : > { %2212 = vmatmul.mubr.msk.f32.gmra.mxu0 %vm212_vm1, %v305_v16 }
  0xf5   : > { %2230 = vmatprep.mubr.msk.f32.mxu0 %vm212_vm1, %v2335_v3 }
  0xf6   : > { %2217 = vmatmul.mubr.msk.f32.vlgmr.msra.gmra.mxu1 %vm212_vm1, %v2346_v6 }
  0xf7   : > { %2243 = vmatpush3.msk.msra.mxu1 %vm219_vm0, %v1518_v17  ;;  %2219 = vmatprep.mubr.msk.f32.mxu1 %vm212_vm1, %v2358_v10 }
  0xf8   : > { %2231 = vmatmul.mubr.msk.f32.vlgmr.msra.gmra.mxu0 %vm212_vm1, %v2346_v6 }
  0xf9   : > { %2257 = vmatpush3.msk.msra.mxu0 %vm219_vm0, %v1713_v18  ;;  %2233 = vmatprep.mubr.msk.f32.mxu0 %vm212_vm1, %v2358_v10 }
  0xfa   : > { %2220 = vmatmul.mubr.msk.f32.gmra.mxu1 %vm212_vm1, %v2366_v11 }
  0xfb   : > { %2222 = vmatprep.mubr.msk.f32.mxu1 %vm212_vm1, %v2375_v13 }
  0xfc   : > { %2234 = vmatmul.mubr.msk.f32.gmra.mxu0 %vm212_vm1, %v2366_v11 }
  0xfd   : > { %2236 = vmatprep.mubr.msk.f32.mxu0 %vm212_vm1, %v2375_v13 }
  0xfe   : > { %2223 = vmatmul.mubr.msk.f32.gmra.mxu1 %vm212_vm1, %v2390_v14 }
  0xff   : > { %2225 = vmatprep.mubr.msk.f32.mxu1 %vm212_vm1, %v304_v15 }
 0x100   : > { %2237 = vmatmul.mubr.msk.f32.gmra.mxu0 %vm212_vm1, %v2390_v14 }
 0x101   : > { %2239 = vmatprep.mubr.msk.f32.mxu0 %vm212_vm1, %v304_v15 }
 0x102   : > { %2226 = vmatmul.mubr.msk.f32.gmra.mxu1 %vm212_vm1, %v305_v16 }
 0x103   : > { %2244 = vmatprep.mubr.msk.f32.mxu1 %vm212_vm1, %v2335_v3 }
 0x104   : > { %2240 = vmatmul.mubr.msk.f32.gmra.mxu0 %vm212_vm1, %v305_v16 }
 0x105   : > { %2258 = vmatprep.mubr.msk.f32.mxu0 %vm212_vm1, %v2335_v3 }
 0x106   : > { %2245 = vmatmul.mubr.msk.f32.vlgmr.msra.gmra.mxu1 %vm212_vm1, %v2346_v6 }
 0x107   : > { %2247 = vmatprep.mubr.msk.f32.mxu1 %vm212_vm1, %v2358_v10 }
 0x108   : > { %2259 = vmatmul.mubr.msk.f32.vlgmr.msra.gmra.mxu0 %vm212_vm1, %v2346_v6 }
 0x109   : > { %2261 = vmatprep.mubr.msk.f32.mxu0 %vm212_vm1, %v2358_v10 }
 0x10a   : > { %2248 = vmatmul.mubr.msk.f32.gmra.mxu1 %vm212_vm1, %v2366_v11 }
 0x10b   : > { %2250 = vmatprep.mubr.msk.f32.mxu1 %vm212_vm1, %v2375_v13 }
 0x10c   : > { %2262 = vmatmul.mubr.msk.f32.gmra.mxu0 %vm212_vm1, %v2366_v11 }
 0x10d   : > { %2264 = vmatprep.mubr.msk.f32.mxu0 %vm212_vm1, %v2375_v13 }
 0x10e   : > { %2251 = vmatmul.mubr.msk.f32.gmra.mxu1 %vm212_vm1, %v2390_v14 }
 0x10f   : > { %2253 = vmatprep.mubr.msk.f32.mxu1 %vm212_vm1, %v304_v15 }
 0x110   : > { %2265 = vmatmul.mubr.msk.f32.gmra.mxu0 %vm212_vm1, %v2390_v14 }
 0x111   : > { %2267 = vmatprep.mubr.msk.f32.mxu0 %vm212_vm1, %v304_v15 }
 0x112   : > { %2254 = vmatmul.mubr.msk.f32.gmra.mxu1 %vm212_vm1, %v305_v16 }
 0x114   : > { %2268 = vmatmul.mubr.msk.f32.gmra.mxu0 %vm212_vm1, %v305_v16 }
 0x195   : > { %v2162_v19 = vpop.f32.mrf.mxu1 }
 0x196   : > { %v440_v20 = vsel %vm438_vm2, %v2162_v19, -inf }
 0x197   : > { %v2176_v21 = vpop.f32.mrf.mxu0  ;;  %464 = vmax.xlane.f32.xlu0 %v440_v20  ;;  %v399_v22 = vpop.f32.mrf.mxu1 }
 0x198   : > { %v652_v23 = vsel %vm438_vm2, %v2176_v21, -inf  ;;  %v439_v26 = vsel %vm438_vm2, %v399_v22, -inf }
 0x199   : > { %675 = vmax.xlane.f32.xlu1 %v652_v23  ;;  %v612_v24 = vpop.f32.mrf.mxu0 }
 0x19a   : > { %v2165_v25 = vpop.f32.mrf.mxu1  ;;  %v651_v32 = vsel %vm438_vm2, %v612_v24, -inf }
 0x19b   : > { %462 = vmax.xlane.f32.xlu0 %v439_v26  ;;  %v442_v27 = vsel %vm438_vm2, %v2165_v25, -inf }
 0x19c   : > { %v2179_v28 = vpop.f32.mrf.mxu0  ;;  %v409_v29 = vpop.f32.mrf.mxu1 }
 0x19d   : > { %468 = vmax.xlane.f32.xlu1 %v442_v27  ;;  %v441_v35 = vsel %vm438_vm2, %v409_v29, -inf  ;;  %v654_v45 = vsel %vm438_vm2, %v2179_v28, -inf }
 0x19e   : > { %v622_v30 = vpop.f32.mrf.mxu0  ;;  %v2168_v31 = vpop.f32.mrf.mxu1 }
 0x19f   : > { %673 = vmax.xlane.f32.xlu0 %v651_v32  ;;  %v653_v36 = vsel %vm438_vm2, %v622_v30, -inf  ;;  %v445_v40 = vsel %vm438_vm2, %v2168_v31, -inf }
 0x1a0   : > { %v2182_v33 = vpop.f32.mrf.mxu0  ;;  %v419_v34 = vpop.f32.mrf.mxu1  ;;  %v446_v52 = vmax.f32 %v440_v20, %v445_v40 }
 0x1a1   : > { %466 = vmax.xlane.f32.xlu1 %v441_v35  ;;  %v443_v37 = vsel %vm438_vm2, %v419_v34, -inf  ;;  %v657_v47 = vsel %vm438_vm2, %v2182_v33, -inf }
 0x1a2   : > { %v632_v38 = vpop.f32.mrf.mxu0  ;;  %v2171_v39 = vpop.f32.mrf.mxu1  ;;  %v444_v46 = vmax.f32 %v439_v26, %v443_v37  ;;  %v658_v56 = vmax.f32 %v652_v23, %v657_v47 }
 0x1a3   : > { %677 = vmax.xlane.f32.xlu0 %v653_v36  ;;  %v655_v41 = vsel %vm438_vm2, %v632_v38, -inf  ;;  %v449_v42 = vsel %vm438_vm2, %v2171_v39, -inf }
 0x1a4   : > { %v2185_v43 = vpop.f32.mrf.mxu0  ;;  %v429_v44 = vpop.f32.mrf.mxu1  ;;  %v656_v53 = vmax.f32 %v651_v32, %v655_v41  ;;  %v450_v55 = vmax.f32 %v442_v27, %v449_v42  ;;  %v451_v60 = vmax.f32 %v444_v46, %v446_v52 }
 0x1a5   : > { %679 = vmax.xlane.f32.xlu1 %v654_v45  ;;  %v447_v48 = vsel %vm438_vm2, %v429_v44, -inf  ;;  %v2518_v49 = vsel %vm438_vm2, %v2185_v43, -inf }
 0x1a6   : > { %v642_v50 = vpop.f32.mrf.mxu0  ;;  %v2190_v51 = vpop.f32.mrf.mxu1  ;;  %v448_v54 = vmax.f32 %v441_v35, %v447_v48  ;;  %v662_v63 = vmax.f32 %v654_v45, %v2518_v49  ;;  %v663_v2 = vmax.f32 %v656_v53, %v658_v56 }
 0x1a7   : > { %470 = vmax.xlane.f32.xlu0 %v443_v37  ;;  %v659_v57 = vsel %vm438_vm2, %v642_v50, -inf  ;;  %v847_v14 = vsel %vm438_vm2, %v2190_v51, -inf }
 0x1a8   : > { %v807_v58 = vpop.f32.mrf.mxu1  ;;  %v2204_v59 = vpop.f32.mrf.mxu0  ;;  %v452_v61 = vmax.f32 %v448_v54, %v450_v55  ;;  %v660_v62 = vmax.f32 %v653_v36, %v659_v57 }
 0x1a9   : > { %472 = vmax.xlane.f32.xlu1 %v445_v40  ;;  %v846_v13 = vsel %vm438_vm2, %v807_v58, -inf  ;;  %v1042_v20 = vsel %vm438_vm2, %v2204_v59, -inf }
 0x1aa   : > { %v2193_v0 = vpop.f32.mrf.mxu1  ;;  %v1002_v1 = vpop.f32.mrf.mxu0  ;;  %v453_v3 = vmax.f32 %v451_v60, %v452_v61  ;;  %v664_v4 = vmax.f32 %v660_v62, %v662_v63 }
 0x1ab   : > { %681 = vmax.xlane.f32.xlu0 %v655_v41  ;;  %v1041_v21 = vsel %vm438_vm2, %v1002_v1, -inf  ;;  %v2534_v22 = vsel %vm438_vm2, %v2193_v0, -inf }
 0x1ac   : > { %v817_v5 = vpop.f32.mrf.mxu1  ;;  %v2207_v6 = vpop.f32.mrf.mxu0  ;;  %v454_v7 = vrot.slane %v453_v3, 4  ;;  %v665_v8 = vmax.f32 %v663_v2, %v664_v4 }
 0x1ad   : > { %683 = vmax.xlane.f32.xlu1 %v657_v47  ;;  %v848_v31 = vsel %vm438_vm2, %v817_v5, -inf  ;;  %v2547_v32 = vsel %vm438_vm2, %v2207_v6, -inf }
 0x1ae   : > { %v2196_v9 = vpop.f32.mrf.mxu1  ;;  %v1012_v10 = vpop.f32.mrf.mxu0  ;;  %v455_v11 = vmax.f32 %v453_v3, %v454_v7  ;;  %v666_v12 = vrot.slane %v665_v8, 4 }
 0x1af   : > { %474 = vmax.xlane.f32.xlu0 %v447_v48  ;;  %v2529_v15 = vsel %vm438_vm2, %v2196_v9, -inf  ;;  %v1043_v41 = vsel %vm438_vm2, %v1012_v10, -inf }
 0x1b0   : > { %v827_v16 = vpop.f32.mrf.mxu1  ;;  %v2210_v17 = vpop.f32.mrf.mxu0  ;;  %v456_v18 = vrot.slane %v455_v11, 2  ;;  %v667_v19 = vmax.f32 %v665_v8, %v666_v12  ;;  %v853_v30 = vmax.f32 %v847_v14, %v2529_v15 }
 0x1b1   : > { %476 = vmax.xlane.f32.xlu1 %v449_v42  ;;  %v2537_v23 = vsel %vm438_vm2, %v827_v16, -inf  ;;  %v2540_v24 = vsel %vm438_vm2, %v2210_v17, -inf }
 0x1b2   : > { %v457_v25 = vmax.f32 %v455_v11, %v456_v18  ;;  %v2199_v26 = vpop.f32.mrf.mxu1  ;;  %v1022_v27 = vpop.f32.mrf.mxu0  ;;  %v668_v28 = vrot.slane %v667_v19, 2  ;;  %v851_v29 = vmax.f32 %v846_v13, %v2537_v23  ;;  %v1048_v40 = vmax.f32 %v1042_v20, %v2540_v24 }
 0x1b3   : > { %685 = vmax.xlane.f32.xlu0 %v659_v57  ;;  %v2550_v33 = vsel %vm438_vm2, %v1022_v27, -inf  ;;  %v2553_v34 = vsel %vm438_vm2, %v2199_v26, -inf }
 0x1b4   : > { %v458_v35 = vrot.slane %v457_v25, 1  ;;  %v837_v36 = vpop.f32.mrf.mxu1  ;;  %v2213_v37 = vpop.f32.mrf.mxu0  ;;  %v669_v38 = vmax.f32 %v667_v19, %v668_v28  ;;  %v1046_v39 = vmax.f32 %v1041_v21, %v2550_v33  ;;  %v857_v43 = vmax.f32 %v2534_v22, %v2553_v34 }
 0x1b5   : > { %687 = vmax.xlane.f32.xlu1 %v2518_v49  ;;  %v2567_v42 = vsel %vm438_vm2, %v837_v36, -inf  ;;  %v2572_v44 = vsel %vm438_vm2, %v2213_v37, -inf  ;;  %v858_v50 = vmax.f32 %v851_v29, %v853_v30 }
 0x1b6   : > { %v459_v45 = vmax.f32 %v457_v25, %v458_v35  ;;  %v670_v46 = vrot.slane %v669_v38, 1  ;;  %v1032_v47 = vpop.f32.mrf.mxu0  ;;  %v2218_v48 = vpop.f32.mrf.mxu1  ;;  %v855_v51 = vmax.f32 %v848_v31, %v2567_v42  ;;  %v1052_v52 = vmax.f32 %v2547_v32, %v2572_v44 }
 0x1b7   : > { %868 = vmax.xlane.f32.xlu0 %v846_v13  ;;  %v2576_v49 = vsel %vm438_vm2, %v1032_v47, -inf  ;;  %v1053_v56 = vmax.f32 %v1046_v39, %v1048_v40  ;;  %v2589_v8 = vsel %vm438_vm2, %v2218_v48, -inf }
 0x1b8   : > { %461 = vst.msk [vmem:[%s2562_s19] sm:$0x1] %vm460_vm3, %v459_v45  ;;  %v671_v53 = vmax.f32 %v669_v38, %v670_v46  ;;  %v1197_v54 = vpop.f32.mrf.mxu1  ;;  %v2232_v55 = vpop.f32.mrf.mxu0  ;;  %v859_v57 = vmax.f32 %v855_v51, %v857_v43  ;;  %v1050_v58 = vmax.f32 %v1043_v41, %v2576_v49 }
 0x1b9   : > { %870 = vmax.xlane.f32.xlu1 %v847_v14  ;;  %v2586_v7 = vsel %vm438_vm2, %v1197_v54, -inf  ;;  %v2595_v14 = vsel %vm438_vm2, %v2232_v55, -inf }
 0x1ba   : > { %672 = vst.msk [vmem:[%s2562_s19 + $0x1] sm:$0x1] %vm460_vm3, %v671_v53  ;;  %v2221_v59 = vpop.f32.mrf.mxu1  ;;  %v1392_v60 = vpop.f32.mrf.mxu0  ;;  %v860_v61 = vmax.f32 %v858_v50, %v859_v57  ;;  %v1054_v62 = vmax.f32 %v1050_v58, %v1052_v52 }
 0x1bb   : > { %1063 = vmax.xlane.f32.xlu0 %v1041_v21  ;;  %v2599_v16 = vsel %vm438_vm2, %v1392_v60, -inf  ;;  %v2602_v17 = vsel %vm438_vm2, %v2221_v59, -inf }
 0x1bc   : > { %v1207_v63 = vpop.f32.mrf.mxu1  ;;  %v2235_v0 = vpop.f32.mrf.mxu0  ;;  %v861_v1 = vrot.slane %v860_v61, 4  ;;  %v1055_v2 = vmax.f32 %v1053_v56, %v1054_v62 }
 0x1bd   : > { %1065 = vmax.xlane.f32.xlu1 %v1042_v20  ;;  %v2615_v28 = vsel %vm438_vm2, %v1207_v63, -inf  ;;  %v2618_v29 = vsel %vm438_vm2, %v2235_v0, -inf }
 0x1be   : > { %v2224_v3 = vpop.f32.mrf.mxu1  ;;  %v1402_v4 = vpop.f32.mrf.mxu0  ;;  %v862_v5 = vmax.f32 %v860_v61, %v861_v1  ;;  %v1056_v6 = vrot.slane %v1055_v2, 4 }
 0x1bf   : > { %872 = vmax.xlane.f32.xlu0 %v848_v31  ;;  %v2592_v9 = vsel %vm438_vm2, %v2224_v3, -inf }
 0x1c0   : > { %v1217_v10 = vpop.f32.mrf.mxu1  ;;  %v2238_v11 = vpop.f32.mrf.mxu0  ;;  %v863_v12 = vrot.slane %v862_v5, 2  ;;  %v1057_v13 = vmax.f32 %v1055_v2, %v1056_v6  ;;  %v1243_v27 = vmax.f32 %v2589_v8, %v2592_v9 }
 0x1c1   : > { %874 = vmax.xlane.f32.xlu1 %v2534_v22  ;;  %v2605_v18 = vsel %vm438_vm2, %v1217_v10, -inf  ;;  %v2608_v19 = vsel %vm438_vm2, %v2238_v11, -inf }
 0x1c2   : > { %v2227_v20 = vpop.f32.mrf.mxu1  ;;  %v864_v21 = vmax.f32 %v862_v5, %v863_v12  ;;  %v1412_v25 = vpop.f32.mrf.mxu0  ;;  %v1058_v26 = vrot.slane %v1057_v13, 2  ;;  %v1241_v22 = vmax.f32 %v2586_v7, %v2605_v18  ;;  %v1438_v40 = vmax.f32 %v2595_v14, %v2608_v19 }
 0x1c3   : > { %1067 = vmax.xlane.f32.xlu0 %v1043_v41  ;;  %v2621_v30 = vsel %vm438_vm2, %v1412_v25, -inf  ;;  %v2624_v31 = vsel %vm438_vm2, %v2227_v20, -inf  ;;  %v2632_v41 = vsel %vm438_vm2, %v1402_v4, -inf }
 0x1c4   : > { %v865_v35 = vrot.slane %v864_v21, 1  ;;  %v1227_v36 = vpop.f32.mrf.mxu1  ;;  %v2241_v37 = vpop.f32.mrf.mxu0  ;;  %v1059_v38 = vmax.f32 %v1057_v13, %v1058_v26  ;;  %v1436_v39 = vmax.f32 %v2599_v16, %v2621_v30  ;;  %v1247_v43 = vmax.f32 %v2602_v17, %v2624_v31 }
 0x1c5   : > { %1069 = vmax.xlane.f32.xlu1 %v2547_v32  ;;  %v2637_v45 = vsel %vm438_vm2, %v1227_v36, -inf  ;;  %v2640_v46 = vsel %vm438_vm2, %v2241_v37, -inf  ;;  %v1248_v52 = vmax.f32 %v1241_v22, %v1243_v27 }
 0x1c6   : > { %v866_v47 = vmax.f32 %v864_v21, %v865_v35  ;;  %v1060_v48 = vrot.slane %v1059_v38, 1  ;;  %v1422_v50 = vpop.f32.mrf.mxu0  ;;  %v2246_v51 = vpop.f32.mrf.mxu1  ;;  %v1245_v32 = vmax.f32 %v2615_v28, %v2637_v45  ;;  %v1442_v54 = vmax.f32 %v2618_v29, %v2640_v46 }
 0x1c7   : > { %876 = vmax.xlane.f32.xlu0 %v2537_v23  ;;  %v2646_v53 = vsel %vm438_vm2, %v1422_v50, -inf  ;;  %v1443_v58 = vmax.f32 %v1436_v39, %v1438_v40  ;;  %v2664_v11 = vsel %vm438_vm2, %v2246_v51, -inf }
 0x1c8   : > { %867 = vst.msk [vmem:[%s2562_s19 + $0x2] sm:$0x1] %vm460_vm3, %v866_v47  ;;  %v1061_v55 = vmax.f32 %v1059_v38, %v1060_v48  ;;  %v1587_v56 = vpop.f32.mrf.mxu1  ;;  %v2260_v57 = vpop.f32.mrf.mxu0  ;;  %v1249_v59 = vmax.f32 %v1245_v32, %v1247_v43  ;;  %v1440_v60 = vmax.f32 %v2632_v41, %v2646_v53 }
 0x1c9   : > { %878 = vmax.xlane.f32.xlu1 %v2529_v15  ;;  %v2661_v15 = vsel %vm438_vm2, %v1587_v56, -inf }
 0x1ca   : > { %1062 = vst.msk [vmem:[%s2562_s19 + $0x3] sm:$0x1] %vm460_vm3, %v1061_v55  ;;  %v2249_v23 = vpop.f32.mrf.mxu1  ;;  %v1782_v61 = vpop.f32.mrf.mxu0  ;;  %v1250_v62 = vmax.f32 %v1248_v52, %v1249_v59  ;;  %v1444_v63 = vmax.f32 %v1440_v60, %v1442_v54 }
 0x1cb   : > { %1071 = vmax.xlane.f32.xlu0 %v2550_v33  ;;  %v2677_v25 = vsel %vm438_vm2, %v2249_v23, -inf }
 0x1cc   : > { %v1597_v0 = vpop.f32.mrf.mxu1  ;;  %v2263_v1 = vpop.f32.mrf.mxu0  ;;  %v1251_v2 = vrot.slane %v1250_v62, 4  ;;  %v1445_v3 = vmax.f32 %v1443_v58, %v1444_v63 }
 0x1cd   : > { %1073 = vmax.xlane.f32.xlu1 %v2540_v24  ;;  %v2670_v24 = vsel %vm438_vm2, %v2260_v57, -inf  ;;  %v2691_v39 = vsel %vm438_vm2, %v1597_v0, -inf  ;;  %v2694_v40 = vsel %vm438_vm2, %v2263_v1, -inf }
 0x1ce   : > { %v2252_v4 = vpop.f32.mrf.mxu1  ;;  %v1792_v5 = vpop.f32.mrf.mxu0  ;;  %v1252_v6 = vmax.f32 %v1250_v62, %v1251_v2  ;;  %v1446_v10 = vrot.slane %v1445_v3, 4 }
 0x1cf   : > { %880 = vmax.xlane.f32.xlu0 %v2567_v42  ;;  %v2667_v33 = vsel %vm438_vm2, %v2252_v4, -inf  ;;  %v2674_v42 = vsel %vm438_vm2, %v1782_v61, -inf  ;;  %v1823_v54 = vsel %vm438_vm2, %v1792_v5, -inf }
 0x1d0   : > { %v1607_v12 = vpop.f32.mrf.mxu1  ;;  %v2266_v13 = vpop.f32.mrf.mxu0  ;;  %v1253_v20 = vrot.slane %v1252_v6, 2  ;;  %v1447_v21 = vmax.f32 %v1445_v3, %v1446_v10  ;;  %v1633_v38 = vmax.f32 %v2664_v11, %v2667_v33 }
 0x1d1   : > { %882 = vmax.xlane.f32.xlu1 %v2553_v34  ;;  %v2680_v26 = vsel %vm438_vm2, %v1607_v12, -inf  ;;  %v2683_v27 = vsel %vm438_vm2, %v2266_v13, -inf }
 0x1d2   : > { %v2255_v22 = vpop.f32.mrf.mxu1  ;;  %v1254_v35 = vmax.f32 %v1252_v6, %v1253_v20  ;;  %v1802_v36 = vpop.f32.mrf.mxu0  ;;  %v1448_v37 = vrot.slane %v1447_v21, 2  ;;  %v1631_v34 = vmax.f32 %v2661_v15, %v2680_v26  ;;  %v1828_v32 = vmax.f32 %v2670_v24, %v2683_v27 }
 0x1d3   : > { %1075 = vmax.xlane.f32.xlu0 %v2576_v49  ;;  %v2697_v43 = vsel %vm438_vm2, %v1802_v36, -inf  ;;  %v2700_v47 = vsel %vm438_vm2, %v2255_v22, -inf }
 0x1d4   : > { %v1255_v48 = vrot.slane %v1254_v35, 1  ;;  %v1617_v50 = vpop.f32.mrf.mxu1  ;;  %v2269_v51 = vpop.f32.mrf.mxu0  ;;  %v1449_v52 = vmax.f32 %v1447_v21, %v1448_v37  ;;  %v1826_v49 = vmax.f32 %v2674_v42, %v2697_v43  ;;  %v1637_v56 = vmax.f32 %v2677_v25, %v2700_v47 }
 0x1d5   : > { %1077 = vmax.xlane.f32.xlu1 %v2572_v44  ;;  %v1634_v55 = vsel %vm438_vm2, %v1617_v50, -inf  ;;  %v1831_v57 = vsel %vm438_vm2, %v2269_v51, -inf  ;;  %v1638_v23 = vmax.f32 %v1631_v34, %v1633_v38 }
 0x1d6   : > { %v1256_v58 = vmax.f32 %v1254_v35, %v1255_v48  ;;  %v1450_v59 = vrot.slane %v1449_v52, 1  ;;  %v1812_v60 = vpop.f32.mrf.mxu0  ;;  %v1635_v61 = vmax.f32 %v2691_v39, %v1634_v55  ;;  %v1832_v62 = vmax.f32 %v2694_v40, %v1831_v57 }
 0x1d7   : > { %1258 = vmax.xlane.f32.xlu0 %v2586_v7  ;;  %v1829_v44 = vsel %vm438_vm2, %v1812_v60, -inf  ;;  %v1833_v0 = vmax.f32 %v1826_v49, %v1828_v32 }
 0x1d8   : > { %1257 = vst.msk [vmem:[%s2562_s19 + $0x4] sm:$0x1] %vm460_vm3, %v1256_v58  ;;  %v1451_v63 = vmax.f32 %v1449_v52, %v1450_v59  ;;  %v1830_v1 = vmax.f32 %v1823_v54, %v1829_v44  ;;  %v1639_v2 = vmax.f32 %v1635_v61, %v1637_v56 }
 0x1d9   : > { %1260 = vmax.xlane.f32.xlu1 %v2589_v8 }
 0x1da   : > { %1452 = vst.msk [vmem:[%s2562_s19 + $0x5] sm:$0x1] %vm460_vm3, %v1451_v63  ;;  %v1640_v3 = vmax.f32 %v1638_v23, %v1639_v2  ;;  %v1834_v4 = vmax.f32 %v1830_v1, %v1832_v62 }
 0x1db   : > { %1453 = vmax.xlane.f32.xlu0 %v2599_v16 }
 0x1dc   : > { %v1641_v5 = vrot.slane %v1640_v3, 4  ;;  %v1835_v7 = vmax.f32 %v1833_v0, %v1834_v4 }
 0x1dd   : > { %1455 = vmax.xlane.f32.xlu1 %v2595_v14 }
 0x1de   : > { %v1642_v6 = vmax.f32 %v1640_v3, %v1641_v5  ;;  %v1836_v10 = vrot.slane %v1835_v7, 4 }
 0x1df   : > { %1264 = vmax.xlane.f32.xlu0 %v2602_v17 }
 0x1e0   : > { %v1643_v12 = vrot.slane %v1642_v6, 2  ;;  %v1837_v13 = vmax.f32 %v1835_v7, %v1836_v10 }
 0x1e1   : > { %1262 = vmax.xlane.f32.xlu1 %v2615_v28 }
 0x1e2   : > { %v1644_v8 = vmax.f32 %v1642_v6, %v1643_v12  ;;  %v1838_v20 = vrot.slane %v1837_v13, 2 }
 0x1e3   : > { %1457 = vmax.xlane.f32.xlu0 %v2632_v41 }
 0x1e4   : > { %v1645_v21 = vrot.slane %v1644_v8, 1  ;;  %v1839_v16 = vmax.f32 %v1837_v13, %v1838_v20 }
 0x1e5   : > { %1459 = vmax.xlane.f32.xlu1 %v2618_v29 }
 0x1e6   : > { %v1646_v22 = vmax.f32 %v1644_v8, %v1645_v21  ;;  %v1840_v14 = vrot.slane %v1839_v16, 1 }
 0x1e7   : > { %1268 = vmax.xlane.f32.xlu0 %v2592_v9  ;;  %v486_v9 = vlaneseq }
 0x1e8   : > { %1647 = vst.msk [vmem:[%s2562_s19 + $0x6] sm:$0x1] %vm460_vm3, %v1646_v22  ;;  %v1841_v17 = vmax.f32 %v1839_v16, %v1840_v14 }
 0x1e9   : > { %1266 = vmax.xlane.f32.xlu1 %v2605_v18  ;;  %v487_v28 = vand.u32 127, %v486_v9  ;;  %v489_v41 = vshrl.u32 %v486_v9, 7 }
 0x1ea   : > { %1842 = vst.msk [vmem:[%s2562_s19 + $0x7] sm:$0x1] %vm460_vm3, %v1841_v17 }
 0x1eb   : > { %1461 = vmax.xlane.f32.xlu0 %v2621_v30  ;;  %v520_v35 = vadd.s32 4294967256, %v487_v28  ;;  %v534_v32 = vadd.s32 4294967240, %v487_v28 }
 0x1ed   : > { %1463 = vmax.xlane.f32.xlu1 %v2608_v19  ;;  %v2766_v48 = vsub.s32 %v520_v35, %v489_v41  ;;  %v2782_v0 = vsub.s32 %v534_v32, %v489_v41 }
 0x1ef   : > { %1272 = vmax.xlane.f32.xlu0 %v2624_v31  ;;  %v499_v31 = vadd.s32 4294967280, %v487_v28 }
 0x1f1   : > { %1270 = vmax.xlane.f32.xlu1 %v2637_v45  ;;  %v492_v45 = vadd.s32 4294967288, %v487_v28 }
 0x1f3   : > { %1465 = vmax.xlane.f32.xlu0 %v2646_v53  ;;  %v2751_v53 = vsub.s32 %v487_v28, %v489_v41 }
 0x1f5   : > { %1467 = vmax.xlane.f32.xlu1 %v2640_v46 }
 0x1f7   : > { %1648 = vmax.xlane.f32.xlu0 %v2661_v15 }
 0x1f9   : > { %1650 = vmax.xlane.f32.xlu1 %v2664_v11  ;;  %v2753_v11 = vsub.s32 %v499_v31, %v489_v41 }
 0x1fb   : > { %1843 = vmax.xlane.f32.xlu0 %v2674_v42  ;;  %v506_v42 = vadd.s32 4294967272, %v487_v28 }
 0x1fd   : > { %1845 = vmax.xlane.f32.xlu1 %v2670_v24  ;;  %v2755_v24 = vsub.s32 %v492_v45, %v489_v41  ;;  %v2762_v34 = vsub.s32 %v506_v42, %v489_v41 }
 0x1ff   : > { %1654 = vmax.xlane.f32.xlu0 %v2677_v25 }
 0x201   : > { %1652 = vmax.xlane.f32.xlu1 %v2691_v39 }
 0x203   : > { %1847 = vmax.xlane.f32.xlu0 %v1823_v54 }
 0x205   : > { %1849 = vmax.xlane.f32.xlu1 %v2694_v40  ;;  %v527_v40 = vadd.s32 4294967248, %v487_v28 }
 0x207   : > { %1658 = vmax.xlane.f32.xlu0 %v2667_v33  ;;  %v513_v33 = vadd.s32 4294967264, %v487_v28 }
 0x209   : > { %1656 = vmax.xlane.f32.xlu1 %v2680_v26  ;;  %v2759_v37 = vsub.s32 %v513_v33, %v489_v41 }
 0x20b   : > { %1851 = vmax.xlane.f32.xlu0 %v2697_v43 }
 0x20d   : > { %1853 = vmax.xlane.f32.xlu1 %v2683_v27 }
 0x20f   : > { %1855 = vmax.xlane.f32.xlu0 %v1829_v44 }
 0x211   : > { %1660 = vmax.xlane.f32.xlu1 %v1634_v55 }
 0x213   : > { %1662 = vmax.xlane.f32.xlu0 %v2700_v47 }
 0x215   : > { %1857 = vmax.xlane.f32.xlu1 %v1831_v57  ;;  %v2773_v57 = vsub.s32 %v527_v40, %v489_v41 }
 0x220   : > { %v465_v18 = vpop.xlane.xlu0 %464 }
 0x221   : > { %v496_v38 = vrot.slane %v465_v18, %v2755_v24 }
 0x222   : > { %v676_v19 = vpop.xlane.xlu1 %675 }
 0x223   : > { %v704_v54 = vrot.slane %v676_v19, %v2755_v24 }
 0x224   : > { %v463_v29 = vpop.xlane.xlu0 %462 }
 0x225   : > { %v491_v26 = vrot.slane %v463_v29, %v2751_v53 }
 0x226   : > { %v469_v30 = vpop.xlane.xlu1 %468 }
 0x227   : > { %v498_v43 = vsel %vm497_vm4, %v496_v38, %v491_v26  ;;  %v510_v55 = vrot.slane %v469_v30, %v2762_v34 }
 0x228   : > { %v674_v46 = vpop.xlane.xlu0 %673 }
 0x229   : > { %v700_v47 = vrot.slane %v674_v46, %v2751_v53 }
 0x22a   : > { %v467_v15 = vpop.xlane.xlu1 %466 }
 0x22b   : > { %v503_v36 = vrot.slane %v467_v15, %v2753_v11  ;;  %v705_v58 = vsel %vm497_vm4, %v704_v54, %v700_v47 }
 0x22c   : > { %v678_v25 = vpop.xlane.xlu0 %677 }
 0x22d   : > { %v505_v51 = vsel %vm504_vm5, %v503_v36, %v498_v43  ;;  %v709_v52 = vrot.slane %v678_v25, %v2753_v11 }
 0x22e   : > { %v680_v27 = vpop.xlane.xlu1 %679  ;;  %v512_v60 = vsel %vm511_vm6, %v510_v55, %v505_v51 }
 0x22f   : > { %v714_v59 = vrot.slane %v680_v27, %v2762_v34  ;;  %v710_v44 = vsel %vm504_vm5, %v709_v52, %v705_v58 }
 0x230   : > { %v471_v39 = vpop.xlane.xlu0 %470 }
 0x231   : > { %v517_v49 = vrot.slane %v471_v39, %v2759_v37  ;;  %v715_v3 = vsel %vm511_vm6, %v714_v59, %v710_v44 }
 0x232   : > { %v473_v50 = vpop.xlane.xlu1 %472 }
 0x233   : > { %v524_v23 = vrot.slane %v473_v50, %v2766_v48  ;;  %v519_v62 = vsel %vm518_vm7, %v517_v49, %v512_v60 }
 0x234   : > { %v682_v56 = vpop.xlane.xlu0 %681 }
 0x235   : > { %v719_v63 = vrot.slane %v682_v56, %v2759_v37  ;;  %v526_v4 = vsel %vm525_vm8, %v524_v23, %v519_v62 }
 0x236   : > { %v684_v61 = vpop.xlane.xlu1 %683 }
 0x237   : > { %v724_v5 = vrot.slane %v684_v61, %v2766_v48  ;;  %v720_v6 = vsel %vm518_vm7, %v719_v63, %v715_v3 }
 0x238   : > { %v475_v1 = vpop.xlane.xlu0 %474 }
 0x239   : > { %v531_v2 = vrot.slane %v475_v1, %v2773_v57  ;;  %v725_v21 = vsel %vm525_vm8, %v724_v5, %v720_v6 }
 0x23a   : > { %v477_v7 = vpop.xlane.xlu1 %476 }
 0x23b   : > { %v533_v10 = vsel %vm532_vm9, %v531_v2, %v526_v4  ;;  %v538_v12 = vrot.slane %v477_v7, %v2782_v0 }
 0x23c   : > { %v686_v13 = vpop.xlane.xlu0 %685 }
 0x23d   : > { %v540_v8 = vsel %vm539_vm10, %v538_v12, %v533_v10  ;;  %v729_v20 = vrot.slane %v686_v13, %v2773_v57 }
 0x23e   : > { %542 = vst.msk [vmem:[%s2795_s22] sm:$0x1] %vm460_vm3, %v540_v8  ;;  %v688_v16 = vpop.xlane.xlu1 %687 }
 0x23f   : > { %v730_v22 = vsel %vm532_vm9, %v729_v20, %v725_v21  ;;  %v734_v14 = vrot.slane %v688_v16, %v2782_v0 }
 0x240   : > { %v869_v17 = vpop.xlane.xlu0 %868 }
 0x241   : > { %v735_v9 = vsel %vm539_vm10, %v734_v14, %v730_v22  ;;  %v895_v15 = vrot.slane %v869_v17, %v2751_v53 }
 0x242   : > { %737 = vst.msk [vmem:[%s2795_s22 + $0x1] sm:$0x1] %vm460_vm3, %v735_v9  ;;  %v871_v18 = vpop.xlane.xlu1 %870 }
 0x243   : > { %v899_v41 = vrot.slane %v871_v18, %v2755_v24 }
 0x244   : > { %v1064_v19 = vpop.xlane.xlu0 %1063 }
 0x245   : > { %v900_v42 = vsel %vm497_vm4, %v899_v41, %v895_v15  ;;  %v1090_v39 = vrot.slane %v1064_v19, %v2751_v53 }
 0x246   : > { %v1066_v28 = vpop.xlane.xlu1 %1065 }
 0x247   : > { %v1094_v25 = vrot.slane %v1066_v28, %v2755_v24 }
 0x248   : > { %v873_v29 = vpop.xlane.xlu0 %872 }
 0x249   : > { %v904_v46 = vrot.slane %v873_v29, %v2753_v11  ;;  %v1095_v43 = vsel %vm497_vm4, %v1094_v25, %v1090_v39 }
 0x24a   : > { %v875_v30 = vpop.xlane.xlu1 %874 }
 0x24b   : > { %v909_v26 = vrot.slane %v875_v30, %v2762_v34  ;;  %v905_v35 = vsel %vm504_vm5, %v904_v46, %v900_v42 }
 0x24c   : > { %v1068_v31 = vpop.xlane.xlu0 %1067 }
 0x24d   : > { %v1099_v36 = vrot.slane %v1068_v31, %v2753_v11  ;;  %v910_v47 = vsel %vm511_vm6, %v909_v26, %v905_v35 }
 0x24e   : > { %v1070_v45 = vpop.xlane.xlu1 %1069 }
 0x24f   : > { %v1104_v50 = vrot.slane %v1070_v45, %v2762_v34  ;;  %v1100_v49 = vsel %vm504_vm5, %v1099_v36, %v1095_v43 }
 0x250   : > { %v877_v33 = vpop.xlane.xlu0 %876 }
 0x251   : > { %v914_v38 = vrot.slane %v877_v33, %v2759_v37  ;;  %v1105_v58 = vsel %vm511_vm6, %v1104_v50, %v1100_v49 }
 0x252   : > { %v879_v27 = vpop.xlane.xlu1 %878 }
 0x253   : > { %v919_v51 = vrot.slane %v879_v27, %v2766_v48  ;;  %v915_v32 = vsel %vm518_vm7, %v914_v38, %v910_v47 }
 0x254   : > { %v1072_v40 = vpop.xlane.xlu0 %1071 }
 0x255   : > { %v1109_v54 = vrot.slane %v1072_v40, %v2759_v37  ;;  %v920_v59 = vsel %vm525_vm8, %v919_v51, %v915_v32 }
 0x256   : > { %v1074_v52 = vpop.xlane.xlu1 %1073 }
 0x257   : > { %v1114_v60 = vrot.slane %v1074_v52, %v2766_v48  ;;  %v1110_v61 = vsel %vm518_vm7, %v1109_v54, %v1105_v58 }
 0x258   : > { %v881_v55 = vpop.xlane.xlu0 %880 }
 0x259   : > { %v924_v56 = vrot.slane %v881_v55, %v2773_v57  ;;  %v1115_v3 = vsel %vm525_vm8, %v1114_v60, %v1110_v61 }
 0x25a   : > { %v883_v23 = vpop.xlane.xlu1 %882 }
 0x25b   : > { %v925_v44 = vsel %vm532_vm9, %v924_v56, %v920_v59  ;;  %v929_v62 = vrot.slane %v883_v23, %v2782_v0 }
 0x25c   : > { %v1076_v63 = vpop.xlane.xlu0 %1075 }
 0x25d   : > { %v930_v1 = vsel %vm539_vm10, %v929_v62, %v925_v44  ;;  %v1119_v2 = vrot.slane %v1076_v63, %v2773_v57 }
 0x25e   : > { %932 = vst.msk [vmem:[%s2795_s22 + $0x2] sm:$0x1] %vm460_vm3, %v930_v1  ;;  %v1078_v4 = vpop.xlane.xlu1 %1077 }
 0x25f   : > { %v1120_v5 = vsel %vm532_vm9, %v1119_v2, %v1115_v3  ;;  %v1124_v7 = vrot.slane %v1078_v4, %v2782_v0 }
 0x260   : > { %v1259_v6 = vpop.xlane.xlu0 %1258 }
 0x261   : > { %v1125_v10 = vsel %vm539_vm10, %v1124_v7, %v1120_v5  ;;  %v1285_v18 = vrot.slane %v1259_v6, %v2751_v53 }
 0x262   : > { %1127 = vst.msk [vmem:[%s2795_s22 + $0x3] sm:$0x1] %vm460_vm3, %v1125_v10  ;;  %v1261_v12 = vpop.xlane.xlu1 %1260 }
 0x263   : > { %v1289_v14 = vrot.slane %v1261_v12, %v2755_v24 }
 0x264   : > { %v1454_v13 = vpop.xlane.xlu0 %1453 }
 0x265   : > { %v1290_v30 = vsel %vm497_vm4, %v1289_v14, %v1285_v18  ;;  %v1480_v31 = vrot.slane %v1454_v13, %v2751_v53 }
 0x266   : > { %v1456_v8 = vpop.xlane.xlu1 %1455 }
 0x267   : > { %v1484_v19 = vrot.slane %v1456_v8, %v2755_v24 }
 0x268   : > { %v1265_v20 = vpop.xlane.xlu0 %1264 }
 0x269   : > { %v1485_v15 = vsel %vm497_vm4, %v1484_v19, %v1480_v31  ;;  %v1299_v33 = vrot.slane %v1265_v20, %v2762_v34 }
 0x26a   : > { %v1263_v21 = vpop.xlane.xlu1 %1262 }
 0x26b   : > { %v1294_v9 = vrot.slane %v1263_v21, %v2753_v11 }
 0x26c   : > { %v1458_v16 = vpop.xlane.xlu0 %1457 }
 0x26d   : > { %v1489_v29 = vrot.slane %v1458_v16, %v2753_v11  ;;  %v1295_v45 = vsel %vm504_vm5, %v1294_v9, %v1290_v30 }
 0x26e   : > { %v1460_v22 = vpop.xlane.xlu1 %1459  ;;  %v1300_v35 = vsel %vm511_vm6, %v1299_v33, %v1295_v45 }
 0x26f   : > { %v1494_v42 = vrot.slane %v1460_v22, %v2762_v34  ;;  %v1490_v26 = vsel %vm504_vm5, %v1489_v29, %v1485_v15 }
 0x270   : > { %v1269_v17 = vpop.xlane.xlu0 %1268 }
 0x271   : > { %v1495_v39 = vsel %vm511_vm6, %v1494_v42, %v1490_v26  ;;  %v1309_v40 = vrot.slane %v1269_v17, %v2766_v48 }
 0x272   : > { %v1267_v28 = vpop.xlane.xlu1 %1266 }
 0x273   : > { %v1304_v46 = vrot.slane %v1267_v28, %v2759_v37 }
 0x274   : > { %v1462_v41 = vpop.xlane.xlu0 %1461 }
 0x275   : > { %v1499_v27 = vrot.slane %v1462_v41, %v2759_v37  ;;  %v1305_v38 = vsel %vm518_vm7, %v1304_v46, %v1300_v35 }
 0x276   : > { %v1464_v25 = vpop.xlane.xlu1 %1463  ;;  %v1310_v49 = vsel %vm525_vm8, %v1309_v40, %v1305_v38 }
 0x277   : > { %v1504_v43 = vrot.slane %v1464_v25, %v2766_v48  ;;  %v1500_v50 = vsel %vm518_vm7, %v1499_v27, %v1495_v39 }
 0x278   : > { %v1273_v36 = vpop.xlane.xlu0 %1272 }
 0x279   : > { %v1319_v52 = vrot.slane %v1273_v36, %v2782_v0  ;;  %v1505_v56 = vsel %vm525_vm8, %v1504_v43, %v1500_v50 }
 0x27a   : > { %v1271_v47 = vpop.xlane.xlu1 %1270 }
 0x27b   : > { %v1314_v51 = vrot.slane %v1271_v47, %v2773_v57 }
 0x27c   : > { %v1466_v32 = vpop.xlane.xlu0 %1465 }
 0x27d   : > { %v1315_v54 = vsel %vm532_vm9, %v1314_v51, %v1310_v49  ;;  %v1509_v55 = vrot.slane %v1466_v32, %v2773_v57 }
 0x27e   : > { %v1320_v58 = vsel %vm539_vm10, %v1319_v52, %v1315_v54  ;;  %v1468_v59 = vpop.xlane.xlu1 %1467 }
 0x27f   : > { %1322 = vst.msk [vmem:[%s2795_s22 + $0x4] sm:$0x1] %vm460_vm3, %v1320_v58  ;;  %v1510_v60 = vsel %vm532_vm9, %v1509_v55, %v1505_v56  ;;  %v1514_v23 = vrot.slane %v1468_v59, %v2782_v0 }
 0x280   : > { %v1649_v61 = vpop.xlane.xlu0 %1648 }
 0x281   : > { %v1515_v44 = vsel %vm539_vm10, %v1514_v23, %v1510_v60  ;;  %v1675_v13 = vrot.slane %v1649_v61, %v2751_v53 }
 0x282   : > { %1517 = vst.msk [vmem:[%s2795_s22 + $0x5] sm:$0x1] %vm460_vm3, %v1515_v44  ;;  %v1651_v62 = vpop.xlane.xlu1 %1650 }
 0x283   : > { %v1679_v7 = vrot.slane %v1651_v62, %v2755_v24 }
 0x284   : > { %v1844_v63 = vpop.xlane.xlu0 %1843 }
 0x285   : > { %v1870_v21 = vrot.slane %v1844_v63, %v2751_v53  ;;  %v1680_v16 = vsel %vm497_vm4, %v1679_v7, %v1675_v13 }
 0x286   : > { %v1846_v1 = vpop.xlane.xlu1 %1845 }
 0x287   : > { %v1874_v10 = vrot.slane %v1846_v1, %v2755_v24 }
 0x288   : > { %v1655_v2 = vpop.xlane.xlu0 %1654 }
 0x289   : > { %v1875_v14 = vsel %vm497_vm4, %v1874_v10, %v1870_v21  ;;  %v1689_v18 = vrot.slane %v1655_v2, %v2762_v34 }
 0x28a   : > { %v1653_v3 = vpop.xlane.xlu1 %1652 }
 0x28b   : > { %v1684_v12 = vrot.slane %v1653_v3, %v2753_v11 }
 0x28c   : > { %v1848_v4 = vpop.xlane.xlu0 %1847 }
 0x28d   : > { %v1879_v8 = vrot.slane %v1848_v4, %v2753_v11  ;;  %v1685_v17 = vsel %vm504_vm5, %v1684_v12, %v1680_v16 }
 0x28e   : > { %v1850_v5 = vpop.xlane.xlu1 %1849  ;;  %v1690_v53 = vsel %vm511_vm6, %v1689_v18, %v1685_v17 }
 0x28f   : > { %v1884_v9 = vrot.slane %v1850_v5, %v2762_v34  ;;  %v1880_v19 = vsel %vm504_vm5, %v1879_v8, %v1875_v14 }
 0x290   : > { %v1659_v6 = vpop.xlane.xlu0 %1658 }
 0x291   : > { %v1885_v30 = vsel %vm511_vm6, %v1884_v9, %v1880_v19  ;;  %v1699_v45 = vrot.slane %v1659_v6, %v2766_v48 }
 0x292   : > { %v1657_v20 = vpop.xlane.xlu1 %1656 }
 0x293   : > { %v1694_v24 = vrot.slane %v1657_v20, %v2759_v37 }
 0x294   : > { %v1852_v22 = vpop.xlane.xlu0 %1851 }
 0x295   : > { %v1889_v11 = vrot.slane %v1852_v22, %v2759_v37  ;;  %v1695_v31 = vsel %vm518_vm7, %v1694_v24, %v1690_v53 }
 0x296   : > { %v1854_v28 = vpop.xlane.xlu1 %1853  ;;  %v1700_v33 = vsel %vm525_vm8, %v1699_v45, %v1695_v31 }
 0x297   : > { %v1894_v41 = vrot.slane %v1854_v28, %v2766_v48  ;;  %v1890_v34 = vsel %vm518_vm7, %v1889_v11, %v1885_v30 }
 0x298   : > { %v1856_v29 = vpop.xlane.xlu0 %1855 }
 0x299   : > { %v1899_v37 = vrot.slane %v1856_v29, %v2773_v57  ;;  %v1895_v25 = vsel %vm525_vm8, %v1894_v41, %v1890_v34 }
 0x29a   : > { %v1661_v46 = vpop.xlane.xlu1 %1660 }
 0x29b   : > { %v1704_v15 = vrot.slane %v1661_v46, %v2773_v57  ;;  %v1900_v38 = vsel %vm532_vm9, %v1899_v37, %v1895_v25 }
 0x29c   : > { %v1663_v42 = vpop.xlane.xlu0 %1662 }
 0x29d   : > { %v1705_v26 = vsel %vm532_vm9, %v1704_v15, %v1700_v33  ;;  %v1709_v27 = vrot.slane %v1663_v42, %v2782_v0 }
 0x29e   : > { %v1858_v35 = vpop.xlane.xlu1 %1857 }
 0x29f   : > { %v1710_v48 = vsel %vm539_vm10, %v1709_v27, %v1705_v26  ;;  %v1904_v36 = vrot.slane %v1858_v35, %v2782_v0 }
 0x2a0   : > { %1712 = vst.msk [vmem:[%s2795_s22 + $0x6] sm:$0x1] %vm460_vm3, %v1710_v48 }
 0x2a1   : > { %v1905_v57 = vsel %vm539_vm10, %v1904_v36, %v1900_v38 }
 0x2a2   : > { %1907 = vst.msk [vmem:[%s2795_s22 + $0x7] sm:$0x1] %vm460_vm3, %v1905_v57 }
 0x2a3 PF: > { %s15_s15 = sadd.s32 1, %s2284_s15  }
 0x2a4   : > { %p12_p5 = scmp.ge.s32.totalorder %s15_s15, 4  }
 0x2a6   :  { %14 = sbr.rel (!%p12_p5) target bundleno = 1 (0x1), region = 74 }

// kernel: mcar_forward.3
= control target key start
LH: loop header
LB: loop body
LE: loop exit
PB: predicated region body
PF: predicated region fallthrough
CT: control target
= control target key end

     0   :  { %vm3823_vm0 = vmmov 0   ;;  %vm2748_vm1 = vcmask 1043456   ;;  %vm2837_vm2 = vcmask 1041409   ;;  %vm2839_vm3 = vcmask 1042434   ;;  %s4857_s1 = inlined_call_operand.vmem [shape: bf16[3072,128], index: 1, kind: input, shape index: {}]   ;;  %s4858_s0 = inlined_call_operand.vmem [shape: bf16[32,3072], index: 0, kind: input, shape index: {}]   ;;  %s4859_s2 = inlined_call_operand.vmem [shape: f32[1,128], index: 2, kind: input, shape index: {}]   ;;  %s4860_s3 = inlined_call_operand.vmem [shape: bf16[128,128], index: 3, kind: input, shape index: {}]   ;;  %s4861_s5 = inlined_call_operand.vmem [shape: bf16[128,128], index: 5, kind: input, shape index: {}]   ;;  %s4862_s4 = inlined_call_operand.vmem [shape: f32[1,128], index: 4, kind: input, shape index: {}]   ;;  %s4863_s6 = inlined_call_operand.vmem [shape: f32[1,128], index: 6, kind: input, shape index: {}]   ;;  %s4864_s8 = inlined_call_operand.vmem [shape: f32[32,128], index: 8, kind: output, shape index: {1}]   ;;  %s4865_s7 = inlined_call_operand.vmem [shape: f32[8,128], index: 7, kind: output, shape index: {0}]  }
   0x1   :  { %v3594_v0 = vld [vmem:[%s4857_s1 + $0x78] sm:$0xff]   ;;  %v3598_v4 = vld [vmem:[%s4857_s1 + $0x70] sm:$0xff]   ;;  %v3602_v8 = vld [vmem:[%s4857_s1 + $0x68] sm:$0xff]   ;;  %vm2841_vm4 = vcmask 1043459   ;;  %vm2843_vm5 = vcmask 1044484   ;;  %vm2845_vm6 = vcmask 1045509  }
   0x2   :  { %v3595_v1 = vld [vmem:[%s4857_s1 + $0xf8] sm:$0xff]   ;;  %3167 = vmatprep.subr.bf16.mxu0 %v3594_v0  ;;  %v3599_v5 = vld [vmem:[%s4857_s1 + $0xf0] sm:$0xff]   ;;  %v3603_v9 = vld [vmem:[%s4857_s1 + $0xe8] sm:$0xff]   ;;  %vm2847_vm7 = vcmask 1046534   ;;  %vm2849_vm8 = vcmask 1047559  }
   0x3   :  { %v3596_v2 = vld [vmem:[%s4857_s1 + $0x38] sm:$0xff]   ;;  %3195 = vmatprep.subr.bf16.mxu1 %v3595_v1  ;;  %v3600_v6 = vld [vmem:[%s4857_s1 + $0x30] sm:$0xff]   ;;  %v3604_v10 = vld [vmem:[%s4857_s1 + $0x28] sm:$0xff]  }
   0x4   :  { %v3597_v3 = vld [vmem:[%s4857_s1 + $0xb8] sm:$0xff]   ;;  %3168 = vmatpush3.bf16.msra.mxu0 %v3596_v2  ;;  %v3601_v7 = vld [vmem:[%s4857_s1 + $0xb0] sm:$0xff]   ;;  %v3605_v11 = vld [vmem:[%s4857_s1 + $0xa8] sm:$0xff]  }
   0x5   :  { %3196 = vmatpush3.bf16.msra.mxu1 %v3597_v3  ;;  %3169 = vmatprep.subr.bf16.mxu0 %v3598_v4  ;;  %v3606_v12 = vld [vmem:[%s4857_s1 + $0x60] sm:$0xff]   ;;  %v3610_v16 = vld [vmem:[%s4857_s1 + $0x58] sm:$0xff]   ;;  %v3614_v20 = vld [vmem:[%s4857_s1 + $0x50] sm:$0xff]  }
   0x6   :  { %3197 = vmatprep.subr.bf16.mxu1 %v3599_v5  ;;  %v3607_v13 = vld [vmem:[%s4857_s1 + $0xe0] sm:$0xff]   ;;  %v3611_v17 = vld [vmem:[%s4857_s1 + $0xd8] sm:$0xff]   ;;  %v3615_v21 = vld [vmem:[%s4857_s1 + $0xd0] sm:$0xff]  }
   0x7   :  { %v3608_v14 = vld [vmem:[%s4857_s1 + $0x20] sm:$0xff]   ;;  %v3612_v18 = vld [vmem:[%s4857_s1 + $0x18] sm:$0xff]   ;;  %v3616_v22 = vld [vmem:[%s4857_s1 + $0x10] sm:$0xff]  }
   0x8   :  { %3170 = vmatpush3.bf16.msra.mxu0 %v3600_v6  ;;  %v3609_v15 = vld [vmem:[%s4857_s1 + $0xa0] sm:$0xff]   ;;  %v3613_v19 = vld [vmem:[%s4857_s1 + $0x98] sm:$0xff]   ;;  %v3617_v23 = vld [vmem:[%s4857_s1 + $0x90] sm:$0xff]  }
   0x9   :  { %3198 = vmatpush3.bf16.msra.mxu1 %v3601_v7  ;;  %3171 = vmatprep.subr.bf16.mxu0 %v3602_v8  ;;  %v3618_v24 = vld [vmem:[%s4857_s1 + $0x48] sm:$0xff]   ;;  %v3622_v28 = vld [vmem:[%s4857_s1 + $0x40] sm:$0xff]   ;;  %v3626_v40 = vld [vmem:[%s4857_s1 + $0x178] sm:$0xff]  }
   0xa   :  { %3199 = vmatprep.subr.bf16.mxu1 %v3603_v9  ;;  %v3619_v25 = vld [vmem:[%s4857_s1 + $0xc8] sm:$0xff]   ;;  %v3623_v29 = vld [vmem:[%s4857_s1 + $0xc0] sm:$0xff]   ;;  %v3627_v41 = vld [vmem:[%s4857_s1 + $0x1f8] sm:$0xff]  }
   0xb   :  { %v3620_v26 = vld [vmem:[%s4857_s1 + $0x8] sm:$0xff]   ;;  %v3624_v30 = vld [vmem:[%s4857_s1] sm:$0xff]   ;;  %v3628_v42 = vld [vmem:[%s4857_s1 + $0x138] sm:$0xff]  }
   0xc   :  { %3172 = vmatpush3.bf16.msra.mxu0 %v3604_v10  ;;  %v3621_v27 = vld [vmem:[%s4857_s1 + $0x88] sm:$0xff]   ;;  %v3625_v31 = vld [vmem:[%s4857_s1 + $0x80] sm:$0xff]   ;;  %v3629_v43 = vld [vmem:[%s4857_s1 + $0x1b8] sm:$0xff]  }
   0xd   :  { %3200 = vmatpush3.bf16.msra.mxu1 %v3605_v11  ;;  %3173 = vmatprep.subr.bf16.mxu0 %v3606_v12  ;;  %v29_v32 = vld [vmem:[%s4858_s0] sm:$0xff]  ;;  %v30_v34 = vld [vmem:[%s4858_s0 + $0x8] sm:$0xff]  ;;  %v3630_v44 = vld [vmem:[%s4857_s1 + $0x170] sm:$0xff]  }
   0xe   :  { %3201 = vmatprep.subr.bf16.mxu1 %v3607_v13  ;;  %v41_v33 = vld [vmem:[%s4858_s0 + $0x60] sm:$0xff]  ;;  %v42_v37 = vld [vmem:[%s4858_s0 + $0x68] sm:$0xff]  ;;  %v3631_v45 = vld [vmem:[%s4857_s1 + $0x1f0] sm:$0xff]  }
   0xf   :  { %v2909_v35 = vcombine.low %v29_v32, %v41_v33  ;;  %v2910_v36 = vcombine.high %v29_v32, %v41_v33  ;;  %v2911_v38 = vcombine.low %v30_v34, %v42_v37  ;;  %v2912_v39 = vcombine.high %v30_v34, %v42_v37  ;;  %v3632_v46 = vld [vmem:[%s4857_s1 + $0x130] sm:$0xff]   ;;  %v3634_v48 = vld [vmem:[%s4857_s1 + $0x168] sm:$0xff]   ;;  %v3638_v52 = vld [vmem:[%s4857_s1 + $0x160] sm:$0xff]  }
  0x10   :  { %3174 = vmatpush3.bf16.msra.mxu0 %v3608_v14  ;;  %v3633_v47 = vld [vmem:[%s4857_s1 + $0x1b0] sm:$0xff]   ;;  %v3635_v49 = vld [vmem:[%s4857_s1 + $0x1e8] sm:$0xff]   ;;  %v3639_v53 = vld [vmem:[%s4857_s1 + $0x1e0] sm:$0xff]  }
  0x11   :  { %3202 = vmatpush3.bf16.msra.mxu1 %v3609_v15  ;;  %3175 = vmatprep.subr.bf16.mxu0 %v3610_v16  ;;  %v3636_v50 = vld [vmem:[%s4857_s1 + $0x128] sm:$0xff]   ;;  %v3640_v54 = vld [vmem:[%s4857_s1 + $0x120] sm:$0xff]   ;;  %v3642_v56 = vld [vmem:[%s4857_s1 + $0x158] sm:$0xff]  }
  0x12   :  { %3203 = vmatprep.subr.bf16.mxu1 %v3611_v17  ;;  %1892 = vmatprep.mubr.bf16.mxu0 %v2910_v36  ;;  %v3637_v51 = vld [vmem:[%s4857_s1 + $0x1a8] sm:$0xff]   ;;  %v3641_v55 = vld [vmem:[%s4857_s1 + $0x1a0] sm:$0xff]   ;;  %v3643_v57 = vld [vmem:[%s4857_s1 + $0x1d8] sm:$0xff]  }
  0x13   :  { %1941 = vmatprep.mubr.bf16.mxu1 %v2912_v39  ;;  %v3644_v58 = vld [vmem:[%s4857_s1 + $0x118] sm:$0xff]   ;;  %v53_v60 = vld [vmem:[%s4858_s0 + $0xc0] sm:$0xff]  ;;  %v54_v0 = vld [vmem:[%s4858_s0 + $0xc8] sm:$0xff] }
  0x14   :  { %3176 = vmatpush3.bf16.msra.mxu0 %v3612_v18  ;;  %v3645_v59 = vld [vmem:[%s4857_s1 + $0x198] sm:$0xff]   ;;  %v65_v61 = vld [vmem:[%s4858_s0 + $0x120] sm:$0xff]  ;;  %v66_v1 = vld [vmem:[%s4858_s0 + $0x128] sm:$0xff] }
  0x15   :  { %3204 = vmatpush3.bf16.msra.mxu1 %v3613_v19  ;;  %3177 = vmatprep.subr.bf16.mxu0 %v3614_v20  ;;  %v2934_v62 = vcombine.high %v53_v60, %v65_v61  ;;  %v2933_v63 = vcombine.low %v53_v60, %v65_v61  ;;  %v2936_v2 = vcombine.high %v54_v0, %v66_v1  ;;  %v3646_v3 = vld [vmem:[%s4857_s1 + $0x150] sm:$0xff]   ;;  %v3650_v8 = vld [vmem:[%s4857_s1 + $0x148] sm:$0xff]   ;;  %v3654_v12 = vld [vmem:[%s4857_s1 + $0x140] sm:$0xff]  }
  0x16   :  { %3205 = vmatprep.subr.bf16.mxu1 %v3615_v21  ;;  %v2935_v4 = vcombine.low %v54_v0, %v66_v1  ;;  %v3647_v5 = vld [vmem:[%s4857_s1 + $0x1d0] sm:$0xff]   ;;  %v3651_v9 = vld [vmem:[%s4857_s1 + $0x1c8] sm:$0xff]   ;;  %v3655_v13 = vld [vmem:[%s4857_s1 + $0x1c0] sm:$0xff]  }
  0x17   :  { %v3648_v6 = vld [vmem:[%s4857_s1 + $0x110] sm:$0xff]   ;;  %v3652_v10 = vld [vmem:[%s4857_s1 + $0x108] sm:$0xff]   ;;  %v3656_v14 = vld [vmem:[%s4857_s1 + $0x100] sm:$0xff]  }
  0x18   :  { %3178 = vmatpush3.bf16.msra.mxu0 %v3616_v22  ;;  %v3649_v7 = vld [vmem:[%s4857_s1 + $0x190] sm:$0xff]   ;;  %v3653_v11 = vld [vmem:[%s4857_s1 + $0x188] sm:$0xff]   ;;  %v3657_v15 = vld [vmem:[%s4857_s1 + $0x180] sm:$0xff]  }
  0x19   :  { %3206 = vmatpush3.bf16.msra.mxu1 %v3617_v23  ;;  %3179 = vmatprep.subr.bf16.mxu0 %v3618_v24  ;;  %v31_v16 = vld [vmem:[%s4858_s0 + $0x10] sm:$0xff]  ;;  %v32_v18 = vld [vmem:[%s4858_s0 + $0x18] sm:$0xff]  ;;  %v3666_v36 = vld [vmem:[%s4857_s1 + $0x268] sm:$0xff]  }
  0x1a   :  { %3207 = vmatprep.subr.bf16.mxu1 %v3619_v25  ;;  %v43_v17 = vld [vmem:[%s4858_s0 + $0x70] sm:$0xff]  ;;  %v44_v19 = vld [vmem:[%s4858_s0 + $0x78] sm:$0xff]  ;;  %v3667_v37 = vld [vmem:[%s4857_s1 + $0x2e8] sm:$0xff]  }
  0x1b   :  { %v2913_v20 = vcombine.low %v31_v16, %v43_v17  ;;  %v2914_v21 = vcombine.high %v31_v16, %v43_v17  ;;  %v2915_v22 = vcombine.low %v32_v18, %v44_v19  ;;  %v2916_v23 = vcombine.high %v32_v18, %v44_v19  ;;  %v3658_v24 = vld [vmem:[%s4857_s1 + $0x278] sm:$0xff]   ;;  %v55_v32 = vld [vmem:[%s4858_s0 + $0xd0] sm:$0xff]  ;;  %v3686_v60 = vld [vmem:[%s4857_s1 + $0x240] sm:$0xff]  }
  0x1c   :  { %3180 = vmatpush3.bf16.msra.mxu0 %v3620_v26  ;;  %v3659_v25 = vld [vmem:[%s4857_s1 + $0x2f8] sm:$0xff]   ;;  %v67_v33 = vld [vmem:[%s4858_s0 + $0x130] sm:$0xff]  ;;  %v3687_v61 = vld [vmem:[%s4857_s1 + $0x2c0] sm:$0xff]  }
  0x1d   :  { %3208 = vmatpush3.bf16.msra.mxu1 %v3621_v27  ;;  %3181 = vmatprep.subr.bf16.mxu0 %v3622_v28  ;;  %v3660_v26 = vld [vmem:[%s4857_s1 + $0x238] sm:$0xff]   ;;  %v3662_v28 = vld [vmem:[%s4857_s1 + $0x270] sm:$0xff]   ;;  %v2938_v34 = vcombine.high %v55_v32, %v67_v33  ;;  %v33_v0 = vld [vmem:[%s4858_s0 + $0x20] sm:$0xff] }
  0x1e   :  { %3209 = vmatprep.subr.bf16.mxu1 %v3623_v29  ;;  %v3661_v27 = vld [vmem:[%s4857_s1 + $0x2b8] sm:$0xff]   ;;  %v3663_v29 = vld [vmem:[%s4857_s1 + $0x2f0] sm:$0xff]   ;;  %v45_v1 = vld [vmem:[%s4858_s0 + $0x80] sm:$0xff] }
  0x1f   :  { %v68_v39 = vld [vmem:[%s4858_s0 + $0x138] sm:$0xff]  ;;  %v57_v16 = vld [vmem:[%s4858_s0 + $0xe0] sm:$0xff] }
  0x20   :  { %3182 = vmatpush3.bf16.msra.mxu0 %v3624_v30  ;;  %v3664_v30 = vld [vmem:[%s4857_s1 + $0x230] sm:$0xff]   ;;  %v69_v17 = vld [vmem:[%s4858_s0 + $0x140] sm:$0xff] }
  0x21   :  { %3210 = vmatpush3.bf16.msra.mxu1 %v3625_v31  ;;  %3223 = vmatprep.subr.bf16.mxu0 %v3626_v40  ;;  %v3665_v31 = vld [vmem:[%s4857_s1 + $0x2b0] sm:$0xff]   ;;  %v2942_v18 = vcombine.high %v57_v16, %v69_v17  ;;  %v2941_v19 = vcombine.low %v57_v16, %v69_v17  ;;  %v3738_v16 = vld [vmem:[%s4857_s1 + $0x458] sm:$0xff]  }
  0x22   :  { %3251 = vmatprep.subr.bf16.mxu1 %v3627_v41  ;;  %v3668_v41 = vld [vmem:[%s4857_s1 + $0x228] sm:$0xff]   ;;  %v3739_v17 = vld [vmem:[%s4857_s1 + $0x4d8] sm:$0xff]  }
  0x23   :  { %1893 = vmatmul.mubr.bf16.vlgmr.msra.gmra.mxu0 %v2909_v35  ;;  %v2937_v35 = vcombine.low %v55_v32, %v67_v33  ;;  %v3706_v32 = vld [vmem:[%s4857_s1 + $0x358] sm:$0xff]  }
  0x24   :  { %1942 = vmatmul.mubr.bf16.vlgmr.msra.gmra.mxu1 %v2911_v38  ;;  %3224 = vmatpush3.bf16.msra.mxu0 %v3628_v42  ;;  %v56_v38 = vld [vmem:[%s4858_s0 + $0xd8] sm:$0xff] }
  0x25   :  { %3252 = vmatpush3.bf16.msra.mxu1 %v3629_v43  ;;  %3225 = vmatprep.subr.bf16.mxu0 %v3630_v44  ;;  %v2940_v40 = vcombine.high %v56_v38, %v68_v39  ;;  %v2939_v42 = vcombine.low %v56_v38, %v68_v39  ;;  %v3669_v43 = vld [vmem:[%s4857_s1 + $0x2a8] sm:$0xff]   ;;  %v3670_v44 = vld [vmem:[%s4857_s1 + $0x260] sm:$0xff]   ;;  %v3707_v33 = vld [vmem:[%s4857_s1 + $0x3d8] sm:$0xff]  }
  0x26   :  { %3253 = vmatprep.subr.bf16.mxu1 %v3631_v45  ;;  %1900 = vmatprep.mubr.bf16.mxu0 %v2934_v62  ;;  %v3671_v45 = vld [vmem:[%s4857_s1 + $0x2e0] sm:$0xff]   ;;  %v3712_v38 = vld [vmem:[%s4857_s1 + $0x310] sm:$0xff]  }
  0x27   :  { %1949 = vmatprep.mubr.bf16.mxu1 %v2936_v2  ;;  %v3688_v62 = vld [vmem:[%s4857_s1 + $0x200] sm:$0xff]   ;;  %v2917_v2 = vcombine.low %v33_v0, %v45_v1  ;;  %v3713_v39 = vld [vmem:[%s4857_s1 + $0x390] sm:$0xff]  }
  0x28   :  { %3226 = vmatpush3.bf16.msra.mxu0 %v3632_v46  ;;  %v3672_v46 = vld [vmem:[%s4857_s1 + $0x220] sm:$0xff]  }
  0x29   :  { %3254 = vmatpush3.bf16.msra.mxu1 %v3633_v47  ;;  %3227 = vmatprep.subr.bf16.mxu0 %v3634_v48  ;;  %v3673_v47 = vld [vmem:[%s4857_s1 + $0x2a0] sm:$0xff]   ;;  %v3674_v48 = vld [vmem:[%s4857_s1 + $0x258] sm:$0xff]  }
  0x2a   :  { %3255 = vmatprep.subr.bf16.mxu1 %v3635_v49  ;;  %v3675_v49 = vld [vmem:[%s4857_s1 + $0x2d8] sm:$0xff]  }
  0x2b   :  { %1901 = vmatmul.mubr.bf16.gmra.mxu0 %v2933_v63  ;;  %v3689_v63 = vld [vmem:[%s4857_s1 + $0x280] sm:$0xff]  }
  0x2c   :  { %3228 = vmatpush3.bf16.msra.mxu0 %v3636_v50  ;;  %1950 = vmatmul.mubr.bf16.gmra.mxu1 %v2935_v4  ;;  %v3676_v50 = vld [vmem:[%s4857_s1 + $0x218] sm:$0xff]   ;;  %v34_v4 = vld [vmem:[%s4858_s0 + $0x28] sm:$0xff] }
  0x2d   :  { %3256 = vmatpush3.bf16.msra.mxu1 %v3637_v51  ;;  %3229 = vmatprep.subr.bf16.mxu0 %v3638_v52  ;;  %v3677_v51 = vld [vmem:[%s4857_s1 + $0x298] sm:$0xff]   ;;  %v3678_v52 = vld [vmem:[%s4857_s1 + $0x250] sm:$0xff]  }
  0x2e   :  { %3257 = vmatprep.subr.bf16.mxu1 %v3639_v53  ;;  %1990 = vmatprep.mubr.bf16.mxu0 %v2914_v21  ;;  %v3679_v53 = vld [vmem:[%s4857_s1 + $0x2d0] sm:$0xff]   ;;  %v3699_v21 = vld [vmem:[%s4857_s1 + $0x3e8] sm:$0xff]  }
  0x2f   :  { %2039 = vmatprep.mubr.bf16.mxu1 %v2916_v23  ;;  %v70_v23 = vld [vmem:[%s4858_s0 + $0x148] sm:$0xff] }
  0x30   :  { %3230 = vmatpush3.bf16.msra.mxu0 %v3640_v54  ;;  %v3680_v54 = vld [vmem:[%s4857_s1 + $0x210] sm:$0xff]  }
  0x31   :  { %3258 = vmatpush3.bf16.msra.mxu1 %v3641_v55  ;;  %3231 = vmatprep.subr.bf16.mxu0 %v3642_v56  ;;  %v3681_v55 = vld [vmem:[%s4857_s1 + $0x290] sm:$0xff]   ;;  %v3682_v56 = vld [vmem:[%s4857_s1 + $0x248] sm:$0xff]  }
  0x32   :  { %3259 = vmatprep.subr.bf16.mxu1 %v3643_v57  ;;  %v3683_v57 = vld [vmem:[%s4857_s1 + $0x2c8] sm:$0xff]  }
  0x34   :  { %3232 = vmatpush3.bf16.msra.mxu0 %v3644_v58  ;;  %v3684_v58 = vld [vmem:[%s4857_s1 + $0x208] sm:$0xff]  }
  0x35   :  { %3260 = vmatpush3.bf16.msra.mxu1 %v3645_v59  ;;  %3233 = vmatprep.subr.bf16.mxu0 %v3646_v3  ;;  %v3685_v59 = vld [vmem:[%s4857_s1 + $0x288] sm:$0xff]   ;;  %v2918_v3 = vcombine.high %v33_v0, %v45_v1  ;;  %v59_v0 = vld [vmem:[%s4858_s0 + $0xf0] sm:$0xff] }
  0x36   :  { %3261 = vmatprep.subr.bf16.mxu1 %v3647_v5  ;;  %v46_v5 = vld [vmem:[%s4858_s0 + $0x88] sm:$0xff]  ;;  %v71_v1 = vld [vmem:[%s4858_s0 + $0x150] sm:$0xff] }
  0x38   :  { %3234 = vmatpush3.bf16.msra.mxu0 %v3648_v6  ;;  %v2919_v6 = vcombine.low %v34_v4, %v46_v5 }
  0x39   :  { %3262 = vmatpush3.bf16.msra.mxu1 %v3649_v7  ;;  %3235 = vmatprep.subr.bf16.mxu0 %v3650_v8  ;;  %v2920_v7 = vcombine.high %v34_v4, %v46_v5  ;;  %v3690_v8 = vld [vmem:[%s4857_s1 + $0x378] sm:$0xff]   ;;  %v3730_v4 = vld [vmem:[%s4857_s1 + $0x468] sm:$0xff]  }
  0x3a   :  { %3263 = vmatprep.subr.bf16.mxu1 %v3651_v9  ;;  %v3691_v9 = vld [vmem:[%s4857_s1 + $0x3f8] sm:$0xff]   ;;  %v3731_v5 = vld [vmem:[%s4857_s1 + $0x4e8] sm:$0xff]  }
  0x3c   :  { %3236 = vmatpush3.bf16.msra.mxu0 %v3652_v10  ;;  %v3692_v10 = vld [vmem:[%s4857_s1 + $0x338] sm:$0xff]  }
  0x3d   :  { %3264 = vmatpush3.bf16.msra.mxu1 %v3653_v11  ;;  %3237 = vmatprep.subr.bf16.mxu0 %v3654_v12  ;;  %v3693_v11 = vld [vmem:[%s4857_s1 + $0x3b8] sm:$0xff]   ;;  %v3694_v12 = vld [vmem:[%s4857_s1 + $0x370] sm:$0xff]  }
  0x3e   :  { %3265 = vmatprep.subr.bf16.mxu1 %v3655_v13  ;;  %v3695_v13 = vld [vmem:[%s4857_s1 + $0x3f0] sm:$0xff]  }
  0x40   :  { %3238 = vmatpush3.bf16.msra.mxu0 %v3656_v14  ;;  %v3696_v14 = vld [vmem:[%s4857_s1 + $0x330] sm:$0xff]  }
  0x41   :  { %3266 = vmatpush3.bf16.msra.mxu1 %v3657_v15  ;;  %3279 = vmatprep.subr.bf16.mxu0 %v3658_v24  ;;  %v3697_v15 = vld [vmem:[%s4857_s1 + $0x3b0] sm:$0xff]  }
  0x42   :  { %3307 = vmatprep.subr.bf16.mxu1 %v3659_v25  ;;  %v3700_v25 = vld [vmem:[%s4857_s1 + $0x328] sm:$0xff]  }
  0x43   :  { %1991 = vmatmul.mubr.bf16.vlgmr.msra.gmra.mxu0 %v2913_v20  ;;  %v3698_v20 = vld [vmem:[%s4857_s1 + $0x368] sm:$0xff]  }
  0x44   :  { %2040 = vmatmul.mubr.bf16.vlgmr.msra.gmra.mxu1 %v2915_v22  ;;  %3280 = vmatpush3.bf16.msra.mxu0 %v3660_v26  ;;  %v58_v22 = vld [vmem:[%s4858_s0 + $0xe8] sm:$0xff] }
  0x45   :  { %3308 = vmatpush3.bf16.msra.mxu1 %v3661_v27  ;;  %3281 = vmatprep.subr.bf16.mxu0 %v3662_v28  ;;  %v2944_v24 = vcombine.high %v58_v22, %v70_v23  ;;  %v2943_v26 = vcombine.low %v58_v22, %v70_v23  ;;  %v3701_v27 = vld [vmem:[%s4857_s1 + $0x3a8] sm:$0xff]   ;;  %v3702_v28 = vld [vmem:[%s4857_s1 + $0x360] sm:$0xff]   ;;  %v3744_v22 = vld [vmem:[%s4857_s1 + $0x410] sm:$0xff]  }
  0x46   :  { %3309 = vmatprep.subr.bf16.mxu1 %v3663_v29  ;;  %1998 = vmatprep.mubr.bf16.mxu0 %v2938_v34  ;;  %v3703_v29 = vld [vmem:[%s4857_s1 + $0x3e0] sm:$0xff]   ;;  %v3708_v34 = vld [vmem:[%s4857_s1 + $0x318] sm:$0xff]   ;;  %v3745_v23 = vld [vmem:[%s4857_s1 + $0x490] sm:$0xff]  }
  0x47   :  { %2047 = vmatprep.mubr.bf16.mxu1 %v2940_v40  ;;  %v3714_v40 = vld [vmem:[%s4857_s1 + $0x348] sm:$0xff]  }
  0x48   :  { %3282 = vmatpush3.bf16.msra.mxu0 %v3664_v30  ;;  %v3704_v30 = vld [vmem:[%s4857_s1 + $0x320] sm:$0xff]  }
  0x49   :  { %3310 = vmatpush3.bf16.msra.mxu1 %v3665_v31  ;;  %3283 = vmatprep.subr.bf16.mxu0 %v3666_v36  ;;  %v3705_v31 = vld [vmem:[%s4857_s1 + $0x3a0] sm:$0xff]   ;;  %v3710_v36 = vld [vmem:[%s4857_s1 + $0x350] sm:$0xff]  }
  0x4a   :  { %3311 = vmatprep.subr.bf16.mxu1 %v3667_v37  ;;  %v3711_v37 = vld [vmem:[%s4857_s1 + $0x3d0] sm:$0xff]  }
  0x4b   :  { %1999 = vmatmul.mubr.bf16.gmra.mxu0 %v2937_v35  ;;  %v3709_v35 = vld [vmem:[%s4857_s1 + $0x398] sm:$0xff]  }
  0x4c   :  { %3284 = vmatpush3.bf16.msra.mxu0 %v3668_v41  ;;  %2048 = vmatmul.mubr.bf16.gmra.mxu1 %v2939_v42  ;;  %v3715_v41 = vld [vmem:[%s4857_s1 + $0x3c8] sm:$0xff]  }
  0x4d   :  { %3312 = vmatpush3.bf16.msra.mxu1 %v3669_v43  ;;  %3285 = vmatprep.subr.bf16.mxu0 %v3670_v44  ;;  %v3716_v42 = vld [vmem:[%s4857_s1 + $0x308] sm:$0xff]   ;;  %v3718_v44 = vld [vmem:[%s4857_s1 + $0x340] sm:$0xff]  }
  0x4e   :  { %3313 = vmatprep.subr.bf16.mxu1 %v3671_v45  ;;  %2088 = vmatprep.mubr.bf16.mxu0 %v2918_v3  ;;  %v3717_v43 = vld [vmem:[%s4857_s1 + $0x388] sm:$0xff]   ;;  %v3719_v45 = vld [vmem:[%s4857_s1 + $0x3c0] sm:$0xff]   ;;  %v2945_v3 = vcombine.low %v59_v0, %v71_v1 }
  0x4f   :  { %2137 = vmatprep.mubr.bf16.mxu1 %v2920_v7  ;;  %v72_v7 = vld [vmem:[%s4858_s0 + $0x158] sm:$0xff] }
  0x50   :  { %3286 = vmatpush3.bf16.msra.mxu0 %v3672_v46  ;;  %v3720_v46 = vld [vmem:[%s4857_s1 + $0x300] sm:$0xff]  }
  0x51   :  { %3314 = vmatpush3.bf16.msra.mxu1 %v3673_v47  ;;  %3287 = vmatprep.subr.bf16.mxu0 %v3674_v48  ;;  %v3721_v47 = vld [vmem:[%s4857_s1 + $0x380] sm:$0xff]   ;;  %v35_v48 = vld [vmem:[%s4858_s0 + $0x30] sm:$0xff] }
  0x52   :  { %3315 = vmatprep.subr.bf16.mxu1 %v3675_v49  ;;  %v47_v49 = vld [vmem:[%s4858_s0 + $0x90] sm:$0xff] }
  0x54   :  { %3288 = vmatpush3.bf16.msra.mxu0 %v3676_v50  ;;  %v36_v50 = vld [vmem:[%s4858_s0 + $0x38] sm:$0xff] }
  0x55   :  { %3316 = vmatpush3.bf16.msra.mxu1 %v3677_v51  ;;  %3289 = vmatprep.subr.bf16.mxu0 %v3678_v52  ;;  %v2921_v51 = vcombine.low %v35_v48, %v47_v49  ;;  %v2922_v52 = vcombine.high %v35_v48, %v47_v49  ;;  %v61_v48 = vld [vmem:[%s4858_s0 + $0x100] sm:$0xff] }
  0x56   :  { %3317 = vmatprep.subr.bf16.mxu1 %v3679_v53  ;;  %v48_v53 = vld [vmem:[%s4858_s0 + $0x98] sm:$0xff]  ;;  %v73_v49 = vld [vmem:[%s4858_s0 + $0x160] sm:$0xff] }
  0x58   :  { %3290 = vmatpush3.bf16.msra.mxu0 %v3680_v54  ;;  %v2923_v54 = vcombine.low %v36_v50, %v48_v53 }
  0x59   :  { %3318 = vmatpush3.bf16.msra.mxu1 %v3681_v55  ;;  %3291 = vmatprep.subr.bf16.mxu0 %v3682_v56  ;;  %v2924_v55 = vcombine.high %v36_v50, %v48_v53  ;;  %v3722_v56 = vld [vmem:[%s4857_s1 + $0x478] sm:$0xff]   ;;  %v2950_v50 = vcombine.high %v61_v48, %v73_v49  ;;  %v3763_v53 = vld [vmem:[%s4857_s1 + $0x5e8] sm:$0xff]  }
  0x5a   :  { %3319 = vmatprep.subr.bf16.mxu1 %v3683_v57  ;;  %v3723_v57 = vld [vmem:[%s4857_s1 + $0x4f8] sm:$0xff]  }
  0x5c   :  { %3292 = vmatpush3.bf16.msra.mxu0 %v3684_v58  ;;  %v3724_v58 = vld [vmem:[%s4857_s1 + $0x438] sm:$0xff]  }
  0x5d   :  { %3320 = vmatpush3.bf16.msra.mxu1 %v3685_v59  ;;  %3293 = vmatprep.subr.bf16.mxu0 %v3686_v60  ;;  %v3725_v59 = vld [vmem:[%s4857_s1 + $0x4b8] sm:$0xff]   ;;  %v3726_v60 = vld [vmem:[%s4857_s1 + $0x470] sm:$0xff]  }
  0x5e   :  { %3321 = vmatprep.subr.bf16.mxu1 %v3687_v61  ;;  %v3727_v61 = vld [vmem:[%s4857_s1 + $0x4f0] sm:$0xff]  }
  0x60   :  { %3294 = vmatpush3.bf16.msra.mxu0 %v3688_v62  ;;  %v3728_v62 = vld [vmem:[%s4857_s1 + $0x430] sm:$0xff]  }
  0x61   :  { %3322 = vmatpush3.bf16.msra.mxu1 %v3689_v63  ;;  %3335 = vmatprep.subr.bf16.mxu0 %v3690_v8  ;;  %v3729_v63 = vld [vmem:[%s4857_s1 + $0x4b0] sm:$0xff]  }
  0x62   :  { %3363 = vmatprep.subr.bf16.mxu1 %v3691_v9  ;;  %v3732_v9 = vld [vmem:[%s4857_s1 + $0x428] sm:$0xff]  }
  0x63   :  { %2089 = vmatmul.mubr.bf16.vlgmr.msra.gmra.mxu0 %v2917_v2  ;;  %v2946_v2 = vcombine.high %v59_v0, %v71_v1  ;;  %v3770_v0 = vld [vmem:[%s4857_s1 + $0x558] sm:$0xff]  }
  0x64   :  { %2138 = vmatmul.mubr.bf16.vlgmr.msra.gmra.mxu1 %v2919_v6  ;;  %3336 = vmatpush3.bf16.msra.mxu0 %v3692_v10  ;;  %v60_v6 = vld [vmem:[%s4858_s0 + $0xf8] sm:$0xff] }
  0x65   :  { %3364 = vmatpush3.bf16.msra.mxu1 %v3693_v11  ;;  %3337 = vmatprep.subr.bf16.mxu0 %v3694_v12  ;;  %v2948_v8 = vcombine.high %v60_v6, %v72_v7  ;;  %v2947_v10 = vcombine.low %v60_v6, %v72_v7  ;;  %v3733_v11 = vld [vmem:[%s4857_s1 + $0x4a8] sm:$0xff]   ;;  %v3734_v12 = vld [vmem:[%s4857_s1 + $0x460] sm:$0xff]   ;;  %v3771_v1 = vld [vmem:[%s4857_s1 + $0x5d8] sm:$0xff]  }
  0x66   :  { %3365 = vmatprep.subr.bf16.mxu1 %v3695_v13  ;;  %2096 = vmatprep.mubr.bf16.mxu0 %v2942_v18  ;;  %v3735_v13 = vld [vmem:[%s4857_s1 + $0x4e0] sm:$0xff]   ;;  %v3740_v18 = vld [vmem:[%s4857_s1 + $0x418] sm:$0xff]   ;;  %v3776_v6 = vld [vmem:[%s4857_s1 + $0x510] sm:$0xff]  }
  0x67   :  { %2145 = vmatprep.mubr.bf16.mxu1 %v2944_v24  ;;  %v3746_v24 = vld [vmem:[%s4857_s1 + $0x448] sm:$0xff]   ;;  %v3777_v7 = vld [vmem:[%s4857_s1 + $0x590] sm:$0xff]  }
  0x68   :  { %3338 = vmatpush3.bf16.msra.mxu0 %v3696_v14  ;;  %v3736_v14 = vld [vmem:[%s4857_s1 + $0x420] sm:$0xff]  }
  0x69   :  { %3366 = vmatpush3.bf16.msra.mxu1 %v3697_v15  ;;  %3339 = vmatprep.subr.bf16.mxu0 %v3698_v20  ;;  %v3737_v15 = vld [vmem:[%s4857_s1 + $0x4a0] sm:$0xff]   ;;  %v3742_v20 = vld [vmem:[%s4857_s1 + $0x450] sm:$0xff]  }
  0x6a   :  { %3367 = vmatprep.subr.bf16.mxu1 %v3699_v21  ;;  %v3743_v21 = vld [vmem:[%s4857_s1 + $0x4d0] sm:$0xff]  }
  0x6b   :  { %2097 = vmatmul.mubr.bf16.gmra.mxu0 %v2941_v19  ;;  %v3741_v19 = vld [vmem:[%s4857_s1 + $0x498] sm:$0xff]  }
  0x6c   :  { %3340 = vmatpush3.bf16.msra.mxu0 %v3700_v25  ;;  %2146 = vmatmul.mubr.bf16.gmra.mxu1 %v2943_v26  ;;  %v3747_v25 = vld [vmem:[%s4857_s1 + $0x4c8] sm:$0xff]  }
  0x6d   :  { %3368 = vmatpush3.bf16.msra.mxu1 %v3701_v27  ;;  %3341 = vmatprep.subr.bf16.mxu0 %v3702_v28  ;;  %v3748_v26 = vld [vmem:[%s4857_s1 + $0x408] sm:$0xff]   ;;  %v3750_v28 = vld [vmem:[%s4857_s1 + $0x440] sm:$0xff]  }
  0x6e   :  { %3369 = vmatprep.subr.bf16.mxu1 %v3703_v29  ;;  %2186 = vmatprep.mubr.bf16.mxu0 %v2922_v52  ;;  %v3749_v27 = vld [vmem:[%s4857_s1 + $0x488] sm:$0xff]   ;;  %v3751_v29 = vld [vmem:[%s4857_s1 + $0x4c0] sm:$0xff]  }
  0x6f   :  { %2235 = vmatprep.mubr.bf16.mxu1 %v2924_v55  ;;  %v3762_v52 = vld [vmem:[%s4857_s1 + $0x568] sm:$0xff]  }
  0x70   :  { %3342 = vmatpush3.bf16.msra.mxu0 %v3704_v30  ;;  %v3752_v30 = vld [vmem:[%s4857_s1 + $0x400] sm:$0xff]   ;;  %v74_v55 = vld [vmem:[%s4858_s0 + $0x168] sm:$0xff] }
  0x71   :  { %3370 = vmatpush3.bf16.msra.mxu1 %v3705_v31  ;;  %3343 = vmatprep.subr.bf16.mxu0 %v3706_v32  ;;  %v3753_v31 = vld [vmem:[%s4857_s1 + $0x480] sm:$0xff]  }
  0x72   :  { %3371 = vmatprep.subr.bf16.mxu1 %v3707_v33  ;;  %v37_v32 = vld [vmem:[%s4858_s0 + $0x40] sm:$0xff] }
  0x73   :  { %v49_v33 = vld [vmem:[%s4858_s0 + $0xa0] sm:$0xff] }
  0x74   :  { %3344 = vmatpush3.bf16.msra.mxu0 %v3708_v34  ;;  %v38_v34 = vld [vmem:[%s4858_s0 + $0x48] sm:$0xff] }
  0x75   :  { %3372 = vmatpush3.bf16.msra.mxu1 %v3709_v35  ;;  %3345 = vmatprep.subr.bf16.mxu0 %v3710_v36  ;;  %v50_v35 = vld [vmem:[%s4858_s0 + $0xa8] sm:$0xff]  ;;  %v2925_v36 = vcombine.low %v37_v32, %v49_v33 }
  0x76   :  { %3373 = vmatprep.subr.bf16.mxu1 %v3711_v37  ;;  %v2926_v37 = vcombine.high %v37_v32, %v49_v33 }
  0x78   :  { %3346 = vmatpush3.bf16.msra.mxu0 %v3712_v38  ;;  %v2927_v38 = vcombine.low %v38_v34, %v50_v35 }
  0x79   :  { %3374 = vmatpush3.bf16.msra.mxu1 %v3713_v39  ;;  %3347 = vmatprep.subr.bf16.mxu0 %v3714_v40  ;;  %v2928_v39 = vcombine.high %v38_v34, %v50_v35  ;;  %v3754_v40 = vld [vmem:[%s4857_s1 + $0x578] sm:$0xff]   ;;  %v4592_v34 = vld [vmem:[%s4859_s2] ss:$0 sm:$0xff] }
  0x7a   :  { %3375 = vmatprep.subr.bf16.mxu1 %v3715_v41  ;;  %v3755_v41 = vld [vmem:[%s4857_s1 + $0x5f8] sm:$0xff]  }
  0x7c   :  { %3348 = vmatpush3.bf16.msra.mxu0 %v3716_v42  ;;  %v3756_v42 = vld [vmem:[%s4857_s1 + $0x538] sm:$0xff]  }
  0x7d   :  { %3376 = vmatpush3.bf16.msra.mxu1 %v3717_v43  ;;  %3349 = vmatprep.subr.bf16.mxu0 %v3718_v44  ;;  %v3757_v43 = vld [vmem:[%s4857_s1 + $0x5b8] sm:$0xff]   ;;  %v3758_v44 = vld [vmem:[%s4857_s1 + $0x570] sm:$0xff]  }
  0x7e   :  { %3377 = vmatprep.subr.bf16.mxu1 %v3719_v45  ;;  %v3759_v45 = vld [vmem:[%s4857_s1 + $0x5f0] sm:$0xff]  }
  0x80   :  { %3350 = vmatpush3.bf16.msra.mxu0 %v3720_v46  ;;  %v3760_v46 = vld [vmem:[%s4857_s1 + $0x530] sm:$0xff]  }
  0x81   :  { %3378 = vmatpush3.bf16.msra.mxu1 %v3721_v47  ;;  %3391 = vmatprep.subr.bf16.mxu0 %v3722_v56  ;;  %v3761_v47 = vld [vmem:[%s4857_s1 + $0x5b0] sm:$0xff]  }
  0x82   :  { %3419 = vmatprep.subr.bf16.mxu1 %v3723_v57  ;;  %v3764_v57 = vld [vmem:[%s4857_s1 + $0x528] sm:$0xff]  }
  0x83   :  { %2187 = vmatmul.mubr.bf16.vlgmr.msra.gmra.mxu0 %v2921_v51  ;;  %v2949_v51 = vcombine.low %v61_v48, %v73_v49 }
  0x84   :  { %2236 = vmatmul.mubr.bf16.vlgmr.msra.gmra.mxu1 %v2923_v54  ;;  %3392 = vmatpush3.bf16.msra.mxu0 %v3724_v58  ;;  %v62_v54 = vld [vmem:[%s4858_s0 + $0x108] sm:$0xff] }
  0x85   :  { %3420 = vmatpush3.bf16.msra.mxu1 %v3725_v59  ;;  %3393 = vmatprep.subr.bf16.mxu0 %v3726_v60  ;;  %v2952_v56 = vcombine.high %v62_v54, %v74_v55  ;;  %v2951_v58 = vcombine.low %v62_v54, %v74_v55  ;;  %v3765_v59 = vld [vmem:[%s4857_s1 + $0x5a8] sm:$0xff]   ;;  %v3766_v60 = vld [vmem:[%s4857_s1 + $0x560] sm:$0xff]   ;;  %v3787_v54 = vld [vmem:[%s4860_s3 + $0x30] sm:$0xff]  }
  0x86   :  { %3421 = vmatprep.subr.bf16.mxu1 %v3727_v61  ;;  %2194 = vmatprep.mubr.bf16.mxu0 %v2946_v2  ;;  %v3767_v61 = vld [vmem:[%s4857_s1 + $0x5e0] sm:$0xff]   ;;  %v3772_v2 = vld [vmem:[%s4857_s1 + $0x518] sm:$0xff]  }
  0x87   :  { %2243 = vmatprep.mubr.bf16.mxu1 %v2948_v8  ;;  %v3778_v8 = vld [vmem:[%s4857_s1 + $0x548] sm:$0xff]  }
  0x88   :  { %3394 = vmatpush3.bf16.msra.mxu0 %v3728_v62  ;;  %v3768_v62 = vld [vmem:[%s4857_s1 + $0x520] sm:$0xff]  }
  0x89   :  { %3422 = vmatpush3.bf16.msra.mxu1 %v3729_v63  ;;  %3395 = vmatprep.subr.bf16.mxu0 %v3730_v4  ;;  %v3769_v63 = vld [vmem:[%s4857_s1 + $0x5a0] sm:$0xff]   ;;  %v3774_v4 = vld [vmem:[%s4857_s1 + $0x550] sm:$0xff]  }
  0x8a   :  { %3423 = vmatprep.subr.bf16.mxu1 %v3731_v5  ;;  %v3775_v5 = vld [vmem:[%s4857_s1 + $0x5d0] sm:$0xff]  }
  0x8b   :  { %2195 = vmatmul.mubr.bf16.gmra.mxu0 %v2945_v3  ;;  %v3773_v3 = vld [vmem:[%s4857_s1 + $0x598] sm:$0xff]  }
  0x8c   :  { %3396 = vmatpush3.bf16.msra.mxu0 %v3732_v9  ;;  %2244 = vmatmul.mubr.bf16.gmra.mxu1 %v2947_v10  ;;  %v3779_v9 = vld [vmem:[%s4857_s1 + $0x5c8] sm:$0xff]  }
  0x8d   :  { %3424 = vmatpush3.bf16.msra.mxu1 %v3733_v11  ;;  %3397 = vmatprep.subr.bf16.mxu0 %v3734_v12  ;;  %v3780_v10 = vld [vmem:[%s4857_s1 + $0x508] sm:$0xff]   ;;  %v3782_v12 = vld [vmem:[%s4857_s1 + $0x540] sm:$0xff]  }
  0x8e   :  { %3425 = vmatprep.subr.bf16.mxu1 %v3735_v13  ;;  %2284 = vmatprep.mubr.bf16.mxu0 %v2926_v37  ;;  %v3781_v11 = vld [vmem:[%s4857_s1 + $0x588] sm:$0xff]   ;;  %v3783_v13 = vld [vmem:[%s4857_s1 + $0x5c0] sm:$0xff]  }
  0x8f   :  { %2333 = vmatprep.mubr.bf16.mxu1 %v2928_v39 }
  0x90   :  { %3398 = vmatpush3.bf16.msra.mxu0 %v3736_v14  ;;  %v3784_v14 = vld [vmem:[%s4857_s1 + $0x500] sm:$0xff]  }
  0x91   :  { %3426 = vmatpush3.bf16.msra.mxu1 %v3737_v15  ;;  %3399 = vmatprep.subr.bf16.mxu0 %v3738_v16  ;;  %v3785_v15 = vld [vmem:[%s4857_s1 + $0x580] sm:$0xff]   ;;  %v39_v16 = vld [vmem:[%s4858_s0 + $0x50] sm:$0xff] }
  0x92   :  { %3427 = vmatprep.subr.bf16.mxu1 %v3739_v17  ;;  %v51_v17 = vld [vmem:[%s4858_s0 + $0xb0] sm:$0xff] }
  0x94   :  { %3400 = vmatpush3.bf16.msra.mxu0 %v3740_v18  ;;  %v2929_v18 = vcombine.low %v39_v16, %v51_v17 }
  0x95   :  { %3428 = vmatpush3.bf16.msra.mxu1 %v3741_v19  ;;  %3401 = vmatprep.subr.bf16.mxu0 %v3742_v20  ;;  %v2930_v19 = vcombine.high %v39_v16, %v51_v17  ;;  %v40_v20 = vld [vmem:[%s4858_s0 + $0x58] sm:$0xff] }
  0x96   :  { %3429 = vmatprep.subr.bf16.mxu1 %v3743_v21  ;;  %v52_v21 = vld [vmem:[%s4858_s0 + $0xb8] sm:$0xff] }
  0x98   :  { %3402 = vmatpush3.bf16.msra.mxu0 %v3744_v22  ;;  %v63_v22 = vld [vmem:[%s4858_s0 + $0x110] sm:$0xff] }
  0x99   :  { %3430 = vmatpush3.bf16.msra.mxu1 %v3745_v23  ;;  %3403 = vmatprep.subr.bf16.mxu0 %v3746_v24  ;;  %v2931_v23 = vcombine.low %v40_v20, %v52_v21  ;;  %v2932_v24 = vcombine.high %v40_v20, %v52_v21 }
  0x9a   :  { %3431 = vmatprep.subr.bf16.mxu1 %v3747_v25  ;;  %v75_v25 = vld [vmem:[%s4858_s0 + $0x170] sm:$0xff] }
  0x9c   :  { %3404 = vmatpush3.bf16.msra.mxu0 %v3748_v26  ;;  %v64_v26 = vld [vmem:[%s4858_s0 + $0x118] sm:$0xff] }
  0x9d   :  { %3432 = vmatpush3.bf16.msra.mxu1 %v3749_v27  ;;  %3405 = vmatprep.subr.bf16.mxu0 %v3750_v28  ;;  %v76_v27 = vld [vmem:[%s4858_s0 + $0x178] sm:$0xff]  ;;  %v2954_v28 = vcombine.high %v63_v22, %v75_v25 }
  0x9e   :  { %3433 = vmatprep.subr.bf16.mxu1 %v3751_v29  ;;  %v2956_v29 = vcombine.high %v64_v26, %v76_v27 }
  0xa0   :  { %3406 = vmatpush3.bf16.msra.mxu0 %v3752_v30  ;;  %v2953_v30 = vcombine.low %v63_v22, %v75_v25 }
  0xa1   :  { %3434 = vmatpush3.bf16.msra.mxu1 %v3753_v31  ;;  %3447 = vmatprep.subr.bf16.mxu0 %v3754_v40  ;;  %v2955_v31 = vcombine.low %v64_v26, %v76_v27 }
  0xa2   :  { %3475 = vmatprep.subr.bf16.mxu1 %v3755_v41 }
  0xa3   :  { %2285 = vmatmul.mubr.bf16.vlgmr.msra.gmra.mxu0 %v2925_v36 }
  0xa4   :  { %2334 = vmatmul.mubr.bf16.vlgmr.msra.gmra.mxu1 %v2927_v38  ;;  %3448 = vmatpush3.bf16.msra.mxu0 %v3756_v42 }
  0xa5   :  { %3476 = vmatpush3.bf16.msra.mxu1 %v3757_v43  ;;  %3449 = vmatprep.subr.bf16.mxu0 %v3758_v44 }
  0xa6   :  { %3477 = vmatprep.subr.bf16.mxu1 %v3759_v45  ;;  %2292 = vmatprep.mubr.bf16.mxu0 %v2950_v50 }
  0xa7   :  { %2341 = vmatprep.mubr.bf16.mxu1 %v2952_v56  ;;  %v3788_v56 = vld [vmem:[%s4860_s3 + $0x28] sm:$0xff]  }
  0xa8   :  { %3450 = vmatpush3.bf16.msra.mxu0 %v3760_v46 }
  0xa9   :  { %3478 = vmatpush3.bf16.msra.mxu1 %v3761_v47  ;;  %3451 = vmatprep.subr.bf16.mxu0 %v3762_v52 }
  0xaa   :  { %3479 = vmatprep.subr.bf16.mxu1 %v3763_v53  ;;  %v3786_v53 = vld [vmem:[%s4860_s3 + $0x38] sm:$0xff]  }
  0xab   :  { %2293 = vmatmul.mubr.bf16.gmra.mxu0 %v2949_v51 }
  0xac   :  { %3452 = vmatpush3.bf16.msra.mxu0 %v3764_v57  ;;  %2342 = vmatmul.mubr.bf16.gmra.mxu1 %v2951_v58  ;;  %v3789_v58 = vld [vmem:[%s4860_s3 + $0x20] sm:$0xff]  }
  0xad   :  { %3480 = vmatpush3.bf16.msra.mxu1 %v3765_v59  ;;  %3453 = vmatprep.subr.bf16.mxu0 %v3766_v60  ;;  %v3790_v60 = vld [vmem:[%s4860_s3 + $0x18] sm:$0xff]  }
  0xae   :  { %3481 = vmatprep.subr.bf16.mxu1 %v3767_v61  ;;  %2382 = vmatprep.mubr.bf16.mxu0 %v2930_v19 }
  0xaf   :  { %2431 = vmatprep.mubr.bf16.mxu1 %v2932_v24 }
  0xb0   :  { %3454 = vmatpush3.bf16.msra.mxu0 %v3768_v62 }
  0xb1   :  { %3482 = vmatpush3.bf16.msra.mxu1 %v3769_v63  ;;  %3455 = vmatprep.subr.bf16.mxu0 %v3770_v0  ;;  %v3791_v63 = vld [vmem:[%s4860_s3 + $0x10] sm:$0xff]  }
  0xb2   :  { %3483 = vmatprep.subr.bf16.mxu1 %v3771_v1 }
  0xb4   :  { %3456 = vmatpush3.bf16.msra.mxu0 %v3772_v2 }
  0xb5   :  { %3484 = vmatpush3.bf16.msra.mxu1 %v3773_v3  ;;  %3457 = vmatprep.subr.bf16.mxu0 %v3774_v4  ;;  %v3792_v3 = vld [vmem:[%s4860_s3 + $0x8] sm:$0xff]  }
  0xb6   :  { %3485 = vmatprep.subr.bf16.mxu1 %v3775_v5 }
  0xb8   :  { %3458 = vmatpush3.bf16.msra.mxu0 %v3776_v6  ;;  %v3793_v6 = vld [vmem:[%s4860_s3] sm:$0xff]  }
  0xb9   :  { %3486 = vmatpush3.bf16.msra.mxu1 %v3777_v7  ;;  %3459 = vmatprep.subr.bf16.mxu0 %v3778_v8 }
  0xba   :  { %3487 = vmatprep.subr.bf16.mxu1 %v3779_v9 }
  0xbc   :  { %3460 = vmatpush3.bf16.msra.mxu0 %v3780_v10  ;;  %v4661_v10 = vld [vmem:[%s4861_s5 + $0x38] sm:$0xff]  }
  0xbd   :  { %3488 = vmatpush3.bf16.msra.mxu1 %v3781_v11  ;;  %3461 = vmatprep.subr.bf16.mxu0 %v3782_v12  ;;  %4870 = vst [vmem:[#allocation2_spill] sm:$0xff] %v4661_v10  ;;  %v4668_v12 = vld [vmem:[%s4861_s5 + $0x30] sm:$0xff]  }
  0xbe   :  { %3489 = vmatprep.subr.bf16.mxu1 %v3783_v13  ;;  %4871 = vst [vmem:[#allocation3_spill] sm:$0xff] %v4668_v12 }
  0xc0   :  { %3462 = vmatpush3.bf16.msra.mxu0 %v3784_v14  ;;  %v4677_v14 = vld [vmem:[%s4861_s5 + $0x28] sm:$0xff]  }
  0xc1   :  { %3490 = vmatpush3.bf16.msra.mxu1 %v3785_v15  ;;  %3532 = vmatprep.subr.bf16.mxu0 %v3786_v53  ;;  %4872 = vst [vmem:[#allocation4_spill] sm:$0xff] %v4677_v14 }
  0xc2   :  { %3552 = vmatprep.subr.bf16.mxu1 %v4661_v10 }
  0xc3   :  { %2383 = vmatmul.mubr.bf16.vlgmr.msra.gmra.mxu0 %v2929_v18  ;;  %v4691_v18 = vld [vmem:[%s4861_s5 + $0x20] sm:$0xff]  }
  0xc4   :  { %2432 = vmatmul.mubr.bf16.vlgmr.msra.gmra.mxu1 %v2931_v23  ;;  %2390 = vmatprep.mubr.bf16.mxu0 %v2954_v28  ;;  %4873 = vst [vmem:[#allocation5_spill] sm:$0xff] %v4691_v18 }
  0xc5   :  { %2439 = vmatprep.mubr.bf16.mxu1 %v2956_v29  ;;  %3533 = vmatpush3.bf16.msra.mxu0 %v3786_v53 }
  0xc6   :  { %3534 = vmatprep.subr.bf16.mxu0 %v3787_v54  ;;  %3553 = vmatpush3.bf16.msra.mxu1 %v4661_v10 }
  0xc7   :  { %3554 = vmatprep.subr.bf16.mxu1 %v4668_v12 }
  0xc9   :  { %3535 = vmatpush3.bf16.msra.mxu0 %v3787_v54 }
  0xca   :  { %3536 = vmatprep.subr.bf16.mxu0 %v3788_v56  ;;  %3555 = vmatpush3.bf16.msra.mxu1 %v4668_v12 }
  0xcb   :  { %2391 = vmatmul.mubr.bf16.gmra.mxu0 %v2953_v30  ;;  %3556 = vmatprep.subr.bf16.mxu1 %v4677_v14 }
  0xcc   :  { %2440 = vmatmul.mubr.bf16.gmra.mxu1 %v2955_v31 }
  0xcd   :  { %3537 = vmatpush3.bf16.msra.mxu0 %v3788_v56 }
  0xce   :  { %3538 = vmatprep.subr.bf16.mxu0 %v3789_v58  ;;  %3557 = vmatpush3.bf16.msra.mxu1 %v4677_v14 }
  0xcf   :  { %3558 = vmatprep.subr.bf16.mxu1 %v4691_v18 }
  0xd1   :  { %3539 = vmatpush3.bf16.msra.mxu0 %v3789_v58 }
  0xd2   :  { %3540 = vmatprep.subr.bf16.mxu0 %v3790_v60  ;;  %3559 = vmatpush3.bf16.msra.mxu1 %v4691_v18 }
  0xd5   :  { %3541 = vmatpush3.bf16.msra.mxu0 %v3790_v60 }
  0xd6   :  { %3542 = vmatprep.subr.bf16.mxu0 %v3791_v63 }
  0xd9   :  { %3543 = vmatpush3.bf16.msra.mxu0 %v3791_v63 }
  0xda   :  { %3544 = vmatprep.subr.bf16.mxu0 %v3792_v3 }
  0xdd   :  { %3545 = vmatpush3.bf16.msra.mxu0 %v3792_v3 }
  0xde   :  { %3546 = vmatprep.subr.bf16.mxu0 %v3793_v6 }
  0xe1   :  { %3547 = vmatpush3.bf16.msra.mxu0 %v3793_v6 }
  0xe3   :  { %v3183_v32 = vpop.f32.mrf.mxu0 }
  0xe4   :  { %v3211_v33 = vpop.f32.mrf.mxu1 }
  0xe5   :  { %v3184_v35 = vpop.f32.mrf.mxu0 }
  0xe6   :  { %v3185_v36 = vadd.f32 %v3184_v35, %v3183_v32  ;;  %v3212_v37 = vpop.f32.mrf.mxu1 }
  0xe7   :  { %v3213_v38 = vadd.f32 %v3212_v37, %v3211_v33  ;;  %v4597_v41 = vpop.f32.mrf.mxu0 }
  0xe8   :  { %v1895_v39 = vadd.f32 %v3185_v36, %v4592_v34  ;;  %v4599_v42 = vpop.f32.mrf.mxu1 }
  0xe9   :  { %v4601_v43 = vpop.f32.mrf.mxu0 }
  0xea   :  { %v4595_v40 = vadd.f32 %v3213_v38, %v1895_v39  ;;  %v4603_v44 = vpop.f32.mrf.mxu1  ;;  %v3188_v14 = vadd.f32 %v4601_v43, %v4597_v41 }
  0xeb   :  { %v3189_v45 = vpop.f32.mrf.mxu0 }
  0xec   :  { %v3217_v47 = vpop.f32.mrf.mxu1 }
  0xed   :  { %v3190_v46 = vpop.f32.mrf.mxu0 }
  0xee   :  { %v3191_v48 = vadd.f32 %v3190_v46, %v3189_v45  ;;  %v3218_v49 = vpop.f32.mrf.mxu1 }
  0xef   :  { %v3219_v51 = vadd.f32 %v3218_v49, %v3217_v47  ;;  %v4614_v55 = vpop.f32.mrf.mxu0 }
  0xf0   :  { %v1903_v50 = vadd.f32 %v3191_v48, %v4592_v34  ;;  %v4629_v61 = vpop.f32.mrf.mxu1 }
  0xf1   :  { %v4619_v57 = vpop.f32.mrf.mxu0 }
  0xf2   :  { %v4606_v52 = vadd.f32 %v3219_v51, %v1903_v50  ;;  %v4636_v0 = vpop.f32.mrf.mxu1 }
 0x103   :  { %v4624_v59 = vpop.f32.mrf.mxu0 }
 0x104   :  { %v4640_v2 = vpop.f32.mrf.mxu1 }
 0x105   :  { %v4631_v62 = vpop.f32.mrf.mxu0 }
 0x106   :  { %v4647_v5 = vpop.f32.mrf.mxu1  ;;  %v3241_v10 = vadd.f32 %v4631_v62, %v4624_v59  ;;  %v3194_v59 = vadd.f32 %v4619_v57, %v4614_v55 }
 0x107   :  { %v4638_v1 = vpop.f32.mrf.mxu0 }
 0x108   :  { %v4654_v8 = vpop.f32.mrf.mxu1 }
 0x109   :  { %v4645_v4 = vpop.f32.mrf.mxu0 }
 0x10a   :  { %v4663_v11 = vpop.f32.mrf.mxu1 }
 0x10b   :  { %v4652_v7 = vpop.f32.mrf.mxu0 }
 0x10c   :  { %v4671_v13 = vpop.f32.mrf.mxu1 }
 0x10d   :  { %v4656_v9 = vpop.f32.mrf.mxu0 }
 0x10e   :  { %v4682_v16 = vpop.f32.mrf.mxu1 }
 0x10f   :  { %v4679_v15 = vpop.f32.mrf.mxu0 }
 0x110   :  { %v4693_v20 = vpop.f32.mrf.mxu1 }
 0x111   :  { %v4685_v17 = vpop.f32.mrf.mxu0 }
 0x112   :  { %v4697_v22 = vpop.f32.mrf.mxu1 }
 0x123   :  { %v3295_v19 = vpop.f32.mrf.mxu0 }
 0x124   :  { %v3323_v23 = vpop.f32.mrf.mxu1 }
 0x125   :  { %v3296_v21 = vpop.f32.mrf.mxu0 }
 0x126   :  { %v3324_v25 = vpop.f32.mrf.mxu1 }
 0x127   :  { %v3298_v24 = vpop.f32.mrf.mxu0  ;;  %v3325_v55 = vadd.f32 %v3324_v25, %v3323_v23  ;;  %v3278_v25 = vadd.f32 %v4697_v22, %v4693_v20 }
 0x128   :  { %v4700_v27 = vpop.f32.mrf.mxu1 }
 0x129   :  { %v3299_v26 = vpop.f32.mrf.mxu0 }
 0x12a   :  { %v4704_v29 = vpop.f32.mrf.mxu1 }
 0x12b   :  { %v4702_v28 = vpop.f32.mrf.mxu0 }
 0x12c   :  { %v4706_v31 = vpop.f32.mrf.mxu1 }
 0x12d   :  { %v3302_v30 = vpop.f32.mrf.mxu0 }
 0x12e   :  { %v4710_v33 = vpop.f32.mrf.mxu1 }
 0x12f   :  { %v4708_v32 = vpop.f32.mrf.mxu0 }
 0x130   :  { %v4714_v36 = vpop.f32.mrf.mxu1 }
 0x131   :  { %v4712_v35 = vpop.f32.mrf.mxu0 }
 0x132   :  { %v4716_v38 = vpop.f32.mrf.mxu1 }
 0x143   :  { %v3351_v37 = vpop.f32.mrf.mxu0 }
 0x144   :  { %v3379_v45 = vpop.f32.mrf.mxu1 }
 0x145   :  { %v3352_v39 = vpop.f32.mrf.mxu0 }
 0x146   :  { %v3380_v47 = vpop.f32.mrf.mxu1 }
 0x147   :  { %v3354_v46 = vpop.f32.mrf.mxu0 }
 0x148   :  { %v4718_v49 = vpop.f32.mrf.mxu1 }
 0x149   :  { %v3355_v48 = vpop.f32.mrf.mxu0  ;;  %4874 = vst [vmem:[#allocation6_spill] sm:$0xff] %v4718_v49 }
 0x14a   :  { %v4722_v51 = vpop.f32.mrf.mxu1 }
 0x14b   :  { %v4720_v50 = vpop.f32.mrf.mxu0  ;;  %4875 = vst [vmem:[#allocation7_spill] sm:$0xff] %v4722_v51 }
 0x14c   :  { %v4724_v53 = vpop.f32.mrf.mxu1 }
 0x14d   :  { %4876 = vst [vmem:[#allocation8_spill] sm:$0xff] %v4724_v53  ;;  %v4726_v54 = vpop.f32.mrf.mxu0 }
 0x14e   :  { %v4728_v56 = vpop.f32.mrf.mxu1 }
 0x14f   :  { %4877 = vst [vmem:[#allocation9_spill] sm:$0xff] %v4728_v56  ;;  %v4730_v58 = vpop.f32.mrf.mxu0  ;;  %v1898_v56 = vadd.f32 %v3188_v14, %v4592_v34  ;;  %v3297_v14 = vadd.f32 %v3296_v21, %v3295_v19 }
 0x150   :  { %4878 = vst [vmem:[#allocation10_spill] sm:$0xff] %v4730_v58  ;;  %v4732_v60 = vpop.f32.mrf.mxu1 }
 0x151   :  { %4879 = vst [vmem:[#allocation11_spill] sm:$0xff] %v4732_v60  ;;  %v4734_v63 = vpop.f32.mrf.mxu0  ;;  %v3216_v60 = vadd.f32 %v4603_v44, %v4599_v42  ;;  %v3247_v42 = vadd.f32 %v4656_v9, %v4652_v7  ;;  %v3353_v9 = vadd.f32 %v3352_v39, %v3351_v37 }
 0x152   :  { %4880 = vst [vmem:[#allocation12_spill] sm:$0xff] %v4734_v63  ;;  %v4736_v6 = vpop.f32.mrf.mxu1  ;;  %v3244_v63 = vadd.f32 %v4645_v4, %v4638_v1  ;;  %v1906_v1 = vadd.f32 %v3194_v59, %v4592_v34  ;;  %v3300_v4 = vadd.f32 %v3299_v26, %v3298_v24  ;;  %v3275_v34 = vadd.f32 %v4682_v16, %v4671_v13 }
 0x153   :  { %4881 = vst [vmem:[#allocation13_spill] sm:$0xff] %v4736_v6  ;;  %v1993_v6 = vadd.f32 %v3241_v10, %v4595_v40  ;;  %v1947_v43 = vadd.f32 %v3216_v60, %v1898_v56  ;;  %v3222_v40 = vadd.f32 %v4636_v0, %v4629_v61  ;;  %v2001_v7 = vadd.f32 %v3247_v42, %v4606_v52 }
 0x154   :  { %v3306_v16 = vadd.f32 %v4712_v35, %v4708_v32 }
 0x155   :  { %v1996_v51 = vadd.f32 %v3244_v63, %v1947_v43  ;;  %v1955_v61 = vadd.f32 %v3222_v40, %v1906_v1  ;;  %v2050_v52 = vadd.f32 %v3275_v34, %v2001_v7 }
 0x156   :  { %v4889_v42 = vld [vmem:[#allocation9_spill] sm:$0xff] }
 0x159   :  { %v4887_v43 = vld [vmem:[#allocation12_spill] sm:$0xff] }
 0x163   :  { %v3407_v3 = vpop.f32.mrf.mxu0 }
 0x164   :  { %v4738_v18 = vpop.f32.mrf.mxu1 }
 0x165   :  { %4882 = vst [vmem:[#allocation14_spill] sm:$0xff] %v4738_v18  ;;  %v3408_v12 = vpop.f32.mrf.mxu0  ;;  %v3269_v18 = vadd.f32 %v4647_v5, %v4640_v2  ;;  %v3272_v2 = vadd.f32 %v4663_v11, %v4654_v8  ;;  %v3303_v11 = vadd.f32 %v3302_v30, %v4702_v28  ;;  %v3331_v28 = vadd.f32 %v4710_v33, %v4706_v31 }
 0x166   :  { %v3436_v53 = vpop.f32.mrf.mxu1  ;;  %v3409_v30 = vadd.f32 %v3408_v12, %v3407_v3 }
 0x167   :  { %v3410_v58 = vpop.f32.mrf.mxu0  ;;  %v2042_v49 = vadd.f32 %v3269_v18, %v1993_v6  ;;  %v2045_v19 = vadd.f32 %v3272_v2, %v1996_v51  ;;  %v3250_v18 = vadd.f32 %v4685_v17, %v4679_v15  ;;  %v3328_v15 = vadd.f32 %v4704_v29, %v4700_v27  ;;  %v4886_v6 = vld [vmem:[#allocation10_spill] sm:$0xff] }
 0x168   :  { %v4752_v41 = vpop.f32.mrf.mxu1  ;;  %v3356_v17 = vadd.f32 %v3355_v48, %v3354_v46  ;;  %v2099_v39 = vadd.f32 %v3303_v11, %v2050_v52  ;;  %v3359_v27 = vadd.f32 %v4726_v54, %v4720_v50  ;;  %v4883_v46 = vld [vmem:[#allocation6_spill] sm:$0xff]  ;;  %v3362_v59 = vadd.f32 %v4887_v43, %v4886_v6  ;;  %v4888_v54 = vld [vmem:[#allocation8_spill] sm:$0xff] }
 0x169   :  { %v3411_v62 = vpop.f32.mrf.mxu0  ;;  %v2091_v10 = vadd.f32 %v3297_v14, %v2042_v49  ;;  %v2094_v0 = vadd.f32 %v3300_v4, %v2045_v19  ;;  %v2004_v23 = vadd.f32 %v3250_v18, %v1955_v61  ;;  %v3381_v49 = vadd.f32 %v3380_v47, %v3379_v45  ;;  %v4884_v47 = vld [vmem:[#allocation7_spill] sm:$0xff]  ;;  %v4891_v19 = vld [vmem:[#allocation13_spill] sm:$0xff] }
 0x16a   :  { %v3439_v44 = vpop.f32.mrf.mxu1  ;;  %v3334_v45 = vadd.f32 %v4716_v38, %v4714_v36  ;;  %v3384_v32 = vadd.f32 %v4884_v47, %v4883_v46  ;;  %v3412_v35 = vadd.f32 %v3411_v62, %v3410_v58  ;;  %v2148_v60 = vadd.f32 %v3331_v28, %v2099_v39 }
 0x16b   :  { %v3413_v5 = vpop.f32.mrf.mxu0  ;;  %v2140_v8 = vadd.f32 %v3325_v55, %v2091_v10  ;;  %v2143_v13 = vadd.f32 %v3328_v15, %v2094_v0  ;;  %v2053_v56 = vadd.f32 %v3278_v25, %v2004_v23  ;;  %v3387_v1 = vadd.f32 %v4889_v42, %v4888_v54  ;;  %v3799_v54 = vld [vmem:[%s4861_s5 + $0x10] sm:$0xff]   ;;  %v3800_v42 = vld [vmem:[%s4861_s5 + $0x8] sm:$0xff]  }
 0x16c   :  { %v4763_v57 = vpop.f32.mrf.mxu1  ;;  %v4885_v31 = vld [vmem:[#allocation14_spill] sm:$0xff]  ;;  %v2197_v50 = vadd.f32 %v3359_v27, %v2148_v60  ;;  %v3440_v7 = vadd.f32 %v3439_v44, %v4752_v41 }
 0x16d   :  { %v3414_v21 = vpop.f32.mrf.mxu0  ;;  %v2189_v26 = vadd.f32 %v3353_v9, %v2140_v8  ;;  %v2192_v20 = vadd.f32 %v3356_v17, %v2143_v13  ;;  %v2102_v29 = vadd.f32 %v3306_v16, %v2053_v56  ;;  %v3437_v12 = vadd.f32 %v3436_v53, %v4885_v31  ;;  %v4890_v53 = vld [vmem:[#allocation11_spill] sm:$0xff] }
 0x16e   :  { %v3442_v24 = vpop.f32.mrf.mxu1  ;;  %v3415_v62 = vadd.f32 %v3414_v21, %v3413_v5  ;;  %v3390_v18 = vadd.f32 %v4891_v19, %v4890_v53  ;;  %v2246_v9 = vadd.f32 %v3387_v1, %v2197_v50  ;;  %v3798_v50 = vld [vmem:[%s4861_s5 + $0x18] sm:$0xff]   ;;  %v3822_v1 = vmov 0.0  }
 0x16f   :  { %v3416_v37 = vpop.f32.mrf.mxu0  ;;  %v2238_v22 = vadd.f32 %v3381_v49, %v2189_v26  ;;  %v2241_v3 = vadd.f32 %v3384_v32, %v2192_v20  ;;  %v2151_v38 = vadd.f32 %v3334_v45, %v2102_v29  ;;  %v3443_v17 = vadd.f32 %v3442_v24, %v4763_v57  ;;  %3560 = vmatprep.subr.bf16.mxu1 %v3798_v50 }
 0x170   :  { %v3444_v51 = vpop.f32.mrf.mxu1  ;;  %v2295_v15 = vadd.f32 %v3415_v62, %v2246_v9  ;;  %3561 = vmatpush3.bf16.msra.mxu1 %v3798_v50  ;;  %3572 = vmatprep.subr.bf16.mxu0 %v3822_v1  ;;  %v3149_v62 = vld [vmem:[%s4862_s4] ss:$0 sm:$0xff] }
 0x171   :  { %v3417_v48 = vpop.f32.mrf.mxu0  ;;  %v2287_v63 = vadd.f32 %v3409_v30, %v2238_v22  ;;  %v2290_v40 = vadd.f32 %v3412_v35, %v2241_v3  ;;  %v2200_v55 = vadd.f32 %v3362_v59, %v2151_v38  ;;  %3562 = vmatprep.subr.bf16.mxu1 %v3799_v54  ;;  %v3801_v38 = vld [vmem:[%s4861_s5] sm:$0xff]  }
 0x172   :  { %v3445_v33 = vpop.f32.mrf.mxu1  ;;  %v3418_v23 = vadd.f32 %v3417_v48, %v3416_v37  ;;  %v2344_v30 = vadd.f32 %v3443_v17, %v2295_v15 }
 0x173   :  { %v2336_v58 = vadd.f32 %v3437_v12, %v2287_v63  ;;  %v2339_v11 = vadd.f32 %v3440_v7, %v2290_v40  ;;  %v2249_v26 = vadd.f32 %v3390_v18, %v2200_v55  ;;  %v3446_v44 = vadd.f32 %v3445_v33, %v3444_v51  ;;  %v4893_v40 = vld [vmem:[#allocation3_spill] sm:$0xff] }
 0x174   :  { %3563 = vmatpush3.bf16.msra.mxu1 %v3799_v54 }
 0x175   :  { %v2298_v41 = vadd.f32 %v3418_v23, %v2249_v26  ;;  %3564 = vmatprep.subr.bf16.mxu1 %v3800_v42 }
 0x177   :  { %v2347_v46 = vadd.f32 %v3446_v44, %v2298_v41 }
 0x178   :  { %3565 = vmatpush3.bf16.msra.mxu1 %v3800_v42 }
 0x179   :  { %3566 = vmatprep.subr.bf16.mxu1 %v3801_v38 }
 0x17c   :  { %3567 = vmatpush3.bf16.msra.mxu1 %v3801_v38 }
 0x183   :  { %v3463_v14 = vpop.f32.mrf.mxu0 }
 0x184   :  { %v3491_v36 = vpop.f32.mrf.mxu1 }
 0x185   :  { %v3464_v2 = vpop.f32.mrf.mxu0 }
 0x186   :  { %v3465_v4 = vadd.f32 %v3464_v2, %v3463_v14  ;;  %v3492_v10 = vpop.f32.mrf.mxu1  ;;  %v4894_v2 = vld [vmem:[#allocation4_spill] sm:$0xff] }
 0x187   :  { %v3466_v34 = vpop.f32.mrf.mxu0  ;;  %v3493_v0 = vadd.f32 %v3492_v10, %v3491_v36  ;;  %v4892_v36 = vld [vmem:[#allocation2_spill] sm:$0xff] }
 0x188   :  { %v2385_v61 = vadd.f32 %v3465_v4, %v2336_v58  ;;  %v3494_v8 = vpop.f32.mrf.mxu1  ;;  %v4895_v58 = vld [vmem:[#allocation5_spill] sm:$0xff] }
 0x189   :  { %v3467_v25 = vpop.f32.mrf.mxu0 }
 0x18a   :  { %v2434_v5 = vadd.f32 %v3493_v0, %v2385_v61  ;;  %v3468_v21 = vadd.f32 %v3467_v25, %v3466_v34  ;;  %v3495_v52 = vpop.f32.mrf.mxu1 }
 0x18b   :  { %v3469_v49 = vpop.f32.mrf.mxu0  ;;  %v3496_v16 = vadd.f32 %v3495_v52, %v3494_v8 }
 0x18c   :  { %v2388_v13 = vadd.f32 %v3468_v21, %v2339_v11  ;;  %v3497_v39 = vpop.f32.mrf.mxu1  ;;  %v2448_v56 = vmax.f32 %v2434_v5, 0.0 }
 0x18d   :  { %v3470_v28 = vpop.f32.mrf.mxu0 }
 0x18e   :  { %v2437_v20 = vadd.f32 %v3496_v16, %v2388_v13  ;;  %v3471_v22 = vadd.f32 %v3470_v28, %v3469_v49  ;;  %v3498_v37 = vpop.f32.mrf.mxu1  ;;  %v2452_v32 = vmin.f32 %v2448_v56, 6.0 }
 0x18f   :  { %v3472_v27 = vpop.f32.mrf.mxu0  ;;  %v3499_v57 = vadd.f32 %v3498_v37, %v3497_v39 }
 0x190   :  { %v2449_v29 = vmax.f32 %v2437_v20, 0.0  ;;  %v2393_v45 = vadd.f32 %v3471_v22, %v2344_v30  ;;  %v3500_v24 = vpop.f32.mrf.mxu1 }
 0x191   :  { %v3473_v47 = vpop.f32.mrf.mxu0 }
 0x192   :  { %v2453_v35 = vmin.f32 %v2449_v29, 6.0  ;;  %v2442_v48 = vadd.f32 %v3499_v57, %v2393_v45  ;;  %v3474_v60 = vadd.f32 %v3473_v47, %v3472_v27  ;;  %v3501_v63 = vpop.f32.mrf.mxu1 }
 0x193   :  { %v3502_v51 = vadd.f32 %v3501_v63, %v3500_v24 }
 0x194   :  { %v2396_v31 = vadd.f32 %v3474_v60, %v2347_v46  ;;  %v2456_v12 = vpack.c.bf16 %v2453_v35, %v2452_v32  ;;  %v2450_v33 = vmax.f32 %v2442_v48, 0.0 }
 0x196   :  { %v2445_v3 = vadd.f32 %v3502_v51, %v2396_v31  ;;  %3548 = vmatprep.mubr.bf16.mxu0 %v2456_v12  ;;  %v2454_v43 = vmin.f32 %v2450_v33, 6.0 }
 0x198   :  { %v2451_v6 = vmax.f32 %v2445_v3, 0.0 }
 0x19a   :  { %v2455_v59 = vmin.f32 %v2451_v6, 6.0 }
 0x19c   :  { %v2457_v14 = vpack.c.bf16 %v2455_v59, %v2454_v43 }
 0x19e   :  { %3549 = vmatmul.mubr.bf16.vlgmr.msra.gmra.mxu0 %v2457_v14 }
 0x19f   :  { %3573 = vmatpush3.bf16.msra.mxu0 %v4892_v36  ;;  %3588 = vmatprep.mubr.msk.bf16.mxu0 %vm3823_vm0, %v3822_v1 }
 0x1a0   :  { %3574 = vmatprep.subr.bf16.mxu0 %v3822_v1 }
 0x1a3   :  { %3575 = vmatpush3.bf16.msra.mxu0 %v4893_v40 }
 0x1a4   :  { %3576 = vmatprep.subr.bf16.mxu0 %v3822_v1 }
 0x1a7   :  { %3577 = vmatpush3.bf16.msra.mxu0 %v4894_v2 }
 0x1a8   :  { %3578 = vmatprep.subr.bf16.mxu0 %v3822_v1 }
 0x1ab   :  { %3579 = vmatpush3.bf16.msra.mxu0 %v4895_v58 }
 0x1ac   :  { %3580 = vmatprep.subr.bf16.mxu0 %v3822_v1 }
 0x1af   :  { %3581 = vmatpush3.bf16.msra.mxu0 %v3798_v50 }
 0x1b0   :  { %3582 = vmatprep.subr.bf16.mxu0 %v3822_v1 }
 0x1b3   :  { %3583 = vmatpush3.bf16.msra.mxu0 %v3799_v54 }
 0x1b4   :  { %3584 = vmatprep.subr.bf16.mxu0 %v3822_v1 }
 0x1b7   :  { %3585 = vmatpush3.bf16.msra.mxu0 %v3800_v42 }
 0x1b8   :  { %3586 = vmatprep.subr.bf16.mxu0 %v3822_v1 }
 0x1bb   :  { %3587 = vmatpush3.bf16.msra.mxu0 %v3801_v38 }
 0x25e   :  { %v3550_v4 = vpop.f32.mrf.mxu0 }
 0x25f   :  { %v2572_v10 = vadd.f32 %v3550_v4, %v3149_v62 }
 0x260   :  { %v2563_v55 = vpop.f32.mrf.mxu0 }
 0x261   :  { %v2580_v53 = vmax.f32 %v2572_v10, 0.0  ;;  %v2564_v19 = vadd.f32 %v3149_v62, %v2563_v55 }
 0x262   :  { %v3551_v18 = vpop.f32.mrf.mxu0 }
 0x263   :  { %v4813_v7 = vmin.f32 %v2580_v53, 6.0  ;;  %v2578_v34 = vmax.f32 %v2564_v19, 0.0  ;;  %v2575_v9 = vadd.f32 %v3551_v18, %v3149_v62 }
 0x264   :  { %v2566_v61 = vpop.f32.mrf.mxu0 }
 0x265   :  { %v2742_v0 = vcombine.high %v4813_v7, %v4813_v7  ;;  %v2777_v8 = vsel %vm2748_vm1, %v4813_v7, 0.0  ;;  %v4819_v11 = vmin.f32 %v2578_v34, 6.0  ;;  %v2581_v23 = vmax.f32 %v2575_v9, 0.0 }
 0x266   :  { %v2778_v25 = vrot.slane %v2777_v8, 4  ;;  %v2567_v15 = vadd.f32 %v3149_v62, %v2566_v61 }
 0x267   :  { %v2784_v17 = vsel %vm2748_vm1, %v2742_v0, 0.0  ;;  %v2740_v5 = vcombine.high %v4819_v11, %v4819_v11  ;;  %v2749_v21 = vsel %vm2748_vm1, %v4819_v11, 0.0  ;;  %v4826_v52 = vmin.f32 %v2581_v23, 6.0 }
 0x268   :  { %v2779_v26 = vadd.f32 %v2778_v25, %v2777_v8  ;;  %v2785_v49 = vrot.slane %v2784_v17, 4  ;;  %v2750_v13 = vrot.slane %v2749_v21, 4  ;;  %v2579_v16 = vmax.f32 %v2567_v15, 0.0 }
 0x269   :  { %v2756_v39 = vsel %vm2748_vm1, %v2740_v5, 0.0  ;;  %v2743_v41 = vcombine.high %v4826_v52, %v4826_v52  ;;  %v2791_v44 = vsel %vm2748_vm1, %v4826_v52, 0.0  ;;  %v2604_v15 = vpack.c.bf16 %v4826_v52, %v4813_v7 }
 0x26a   :  { %v2780_v28 = vrot.slane %v2779_v26, 2  ;;  %v2786_v30 = vadd.f32 %v2785_v49, %v2784_v17  ;;  %v2751_v56 = vadd.f32 %v2750_v13, %v2749_v21  ;;  %v2757_v20 = vrot.slane %v2756_v39, 4 }
 0x26b   :  { %v2792_v22 = vrot.slane %v2791_v44, 4  ;;  %v2798_v37 = vsel %vm2748_vm1, %v2743_v41, 0.0  ;;  %v2583_v27 = vmin.f32 %v2579_v16, 6.0 }
 0x26c   :  { %v2787_v29 = vrot.slane %v2786_v30, 2  ;;  %v2752_v45 = vrot.slane %v2751_v56, 2  ;;  %v2758_v57 = vadd.f32 %v2757_v20, %v2756_v39  ;;  %v2799_v46 = vrot.slane %v2798_v37, 4 }
 0x26d   :  { %v2793_v24 = vadd.f32 %v2792_v22, %v2791_v44  ;;  %v2741_v47 = vcombine.high %v2583_v27, %v2583_v27  ;;  %v2763_v32 = vsel %vm2748_vm1, %v2583_v27, 0.0  ;;  %v2781_v35 = vadd.f32 %v2780_v28, %v2779_v26 }
 0x26e   :  { %v2788_v48 = vadd.f32 %v2787_v29, %v2786_v30  ;;  %v2753_v60 = vadd.f32 %v2752_v45, %v2751_v56  ;;  %v2759_v63 = vrot.slane %v2758_v57, 2  ;;  %v2800_v51 = vadd.f32 %v2799_v46, %v2798_v37 }
 0x26f   :  { %v2794_v31 = vrot.slane %v2793_v24, 2  ;;  %v2764_v12 = vrot.slane %v2763_v32, 4  ;;  %v2770_v33 = vsel %vm2748_vm1, %v2741_v47, 0.0  ;;  %v2782_v54 = vrot.slane %v2781_v35, 1 }
 0x270   :  { %v2754_v3 = vrot.slane %v2753_v60, 1  ;;  %v2760_v6 = vadd.f32 %v2759_v63, %v2758_v57  ;;  %v2801_v59 = vrot.slane %v2800_v51, 2  ;;  %v2771_v50 = vrot.slane %v2770_v33, 4 }
 0x271   :  { %v2795_v43 = vadd.f32 %v2794_v31, %v2793_v24  ;;  %v2765_v14 = vadd.f32 %v2764_v12, %v2763_v32  ;;  %v2789_v36 = vrot.slane %v2788_v48, 1  ;;  %v2783_v19 = vadd.f32 %v2782_v54, %v2781_v35 }
 0x272   :  { %v2755_v42 = vadd.f32 %v2754_v3, %v2753_v60  ;;  %v2761_v1 = vrot.slane %v2760_v6, 1  ;;  %v2802_v38 = vadd.f32 %v2801_v59, %v2800_v51  ;;  %v2772_v2 = vadd.f32 %v2771_v50, %v2770_v33  ;;  %v3158_v51 = vld [vmem:[%s4863_s6] ss:$0 sm:$0xff] }
 0x273   :  { %v2766_v40 = vrot.slane %v2765_v14, 2  ;;  %v2796_v4 = vrot.slane %v2795_v43, 1  ;;  %v2790_v34 = vadd.f32 %v2789_v36, %v2788_v48  ;;  %v2603_v25 = vpack.c.bf16 %v2583_v27, %v4819_v11 }
 0x274   :  { %v2762_v58 = vadd.f32 %v2761_v1, %v2760_v6  ;;  %v2805_v62 = vmul.f32 0.25, %v2755_v42  ;;  %v2803_v10 = vrot.slane %v2802_v38, 1  ;;  %v2773_v53 = vrot.slane %v2772_v2, 2 }
 0x275   :  { %v2767_v55 = vadd.f32 %v2766_v40, %v2765_v14  ;;  %v2797_v23 = vadd.f32 %v2796_v4, %v2795_v43  ;;  %v2809_v26 = vmul.f32 0.25, %v2783_v19  ;;  %3568 = vmatprep.mubr.bf16.mxu1 %v2603_v25  ;;  %v2810_v13 = vmul.f32 0.25, %v2790_v34 }
 0x276   :  { %v2806_v18 = vmul.f32 0.25, %v2762_v58  ;;  %v2774_v61 = vadd.f32 %v2773_v53, %v2772_v2  ;;  %v2813_v0 = vpack.c.bf16 %v2805_v62, %v2805_v62  ;;  %v2804_v17 = vadd.f32 %v2803_v10, %v2802_v38  ;;  %3569 = vmatmul.mubr.bf16.vlgmr.msra.gmra.mxu1 %v2604_v15 }
 0x277   :  { %v2768_v9 = vrot.slane %v2767_v55, 1  ;;  %v2811_v44 = vmul.f32 0.25, %v2797_v23  ;;  %v2817_v11 = vpack.c.bf16 %v2809_v26, %v2809_v26  ;;  %v2818_v7 = vpack.c.bf16 %v2810_v13, %v2810_v13 }
 0x278   :  { %v2814_v8 = vpack.c.bf16 %v2806_v18, %v2806_v18  ;;  %v2775_v21 = vrot.slane %v2774_v61, 1  ;;  %v2829_v41 = vunpack.c.l.b16 %v2813_v0  ;;  %v2812_v56 = vmul.f32 0.25, %v2804_v17 }
 0x279   :  { %v2769_v5 = vadd.f32 %v2768_v9, %v2767_v55  ;;  %v2819_v37 = vpack.c.bf16 %v2811_v44, %v2811_v44  ;;  %v2833_v57 = vunpack.c.l.b16 %v2817_v11  ;;  %v2834_v24 = vunpack.c.l.b16 %v2818_v7 }
 0x27a   :  { %v2830_v49 = vunpack.c.l.b16 %v2814_v8  ;;  %v2776_v16 = vadd.f32 %v2775_v21, %v2774_v61  ;;  %v2820_v45 = vpack.c.bf16 %v2812_v56, %v2812_v56 }
 0x27b   :  { %v2807_v39 = vmul.f32 0.25, %v2769_v5  ;;  %v2835_v47 = vunpack.c.l.b16 %v2819_v37 }
 0x27c   :  { %v2808_v28 = vmul.f32 0.25, %v2776_v16  ;;  %v2838_v20 = vsel %vm2837_vm2, %v2830_v49, %v2829_v41  ;;  %v2836_v35 = vunpack.c.l.b16 %v2820_v45 }
 0x27d   :  { %v2815_v30 = vpack.c.bf16 %v2807_v39, %v2807_v39 }
 0x27e   :  { %v2816_v52 = vpack.c.bf16 %v2808_v28, %v2808_v28 }
 0x27f   :  { %v2831_v22 = vunpack.c.l.b16 %v2815_v30 }
 0x280   :  { %v2832_v27 = vunpack.c.l.b16 %v2816_v52 }
 0x281   :  { %v2840_v29 = vsel %vm2839_vm3, %v2831_v22, %v2838_v20 }
 0x282   :  { %v2842_v46 = vsel %vm2841_vm4, %v2832_v27, %v2840_v29 }
 0x283   :  { %v2844_v32 = vsel %vm2843_vm5, %v2833_v57, %v2842_v46 }
 0x284   :  { %v2846_v48 = vsel %vm2845_vm6, %v2834_v24, %v2844_v32 }
 0x285   :  { %v2848_v60 = vsel %vm2847_vm7, %v2835_v47, %v2846_v48 }
 0x286   :  { %v2850_v63 = vsel %vm2849_vm8, %v2836_v35, %v2848_v60 }
 0x287   :  { %v2851_v31 = vpack.c.b16 %v2850_v63, %v2850_v63 }
 0x289   :  { %3589 = vmatmul.mubr.bf16.vlgmr.msra.gmra.mxu0 %v2851_v31 }
 0x336   :  { %v3570_v12 = vpop.f32.mrf.mxu1 }
 0x337   :  { %v2702_v33 = vadd.f32 %v3570_v12, %v3158_v51 }
 0x338   :  { %v2693_v3 = vpop.f32.mrf.mxu1 }
 0x339   :  { %v2710_v6 = vsub.f32 0.0, %v2702_v33  ;;  %v2694_v43 = vadd.f32 %v3158_v51, %v2693_v3 }
 0x33a   :  { %v3571_v59 = vpop.f32.mrf.mxu1 }
 0x33b   :  { %v2716_v14 = vmul.f32 1.442695, %v2710_v6  ;;  %v2708_v50 = vsub.f32 0.0, %v2694_v43  ;;  %v2705_v54 = vadd.f32 %v3571_v59, %v3158_v51 }
 0x33c   :  { %v2696_v42 = vpop.f32.mrf.mxu1 }
 0x33d   :  { %3802 = vpow2.f32 %v2716_v14  ;;  %v2712_v1 = vmul.f32 1.442695, %v2708_v50  ;;  %v2711_v36 = vsub.f32 0.0, %v2705_v54  ;;  %v2697_v38 = vadd.f32 %v3158_v51, %v2696_v42 }
 0x33f   :  { %3804 = vpow2.f32 %v2712_v1  ;;  %v2718_v40 = vmul.f32 1.442695, %v2711_v36  ;;  %v2709_v2 = vsub.f32 0.0, %v2697_v38 }
 0x341   :  { %3806 = vpow2.f32 %v2718_v40  ;;  %v2714_v58 = vmul.f32 1.442695, %v2709_v2 }
 0x343   :  { %3808 = vpow2.f32 %v2714_v58 }
 0x349   :  { %v2887_v62 = vpop.f32.mrf.mxu0 }
 0x34a   :  { %v2888_v4 = vadd.f32 %v3158_v51, %v2887_v62  ;;  %v3803_v19 = vpop.eup %3802 }
 0x34b   :  { %v3590_v10 = vpop.f32.mrf.mxu0  ;;  %v2722_v34 = vadd.f32 1.0, %v3803_v19 }
 0x34c   :  { %v2893_v55 = vsub.f32 0.0, %v2888_v4  ;;  %v3805_v61 = vpop.eup %3804 }
 0x34d   :  { %v2890_v53 = vpop.f32.mrf.mxu0  ;;  %v2720_v0 = vadd.f32 1.0, %v3805_v61 }
 0x34e   :  { %v2894_v18 = vmul.f32 1.442695, %v2893_v55  ;;  %v3807_v8 = vpop.eup %3806 }
 0x34f   :  { %v3591_v9 = vpop.f32.mrf.mxu0  ;;  %v2723_v23 = vadd.f32 1.0, %v3807_v8 }
 0x350   :  { %3810 = vpow2.f32 %v2894_v18  ;;  %v3809_v25 = vpop.eup %3808 }
 0x351   :  { %3812 = vrcp.f32 %v2722_v34  ;;  %v2721_v15 = vadd.f32 1.0, %v3809_v25 }
 0x352   :  { %3814 = vrcp.f32 %v2720_v0 }
 0x353   :  { %3816 = vrcp.f32 %v2723_v23 }
 0x354   :  { %3818 = vrcp.f32 %v2721_v15 }
 0x35d   :  { %v3811_v17 = vpop.eup %3810 }
 0x35e   :  { %v3813_v5 = vpop.eup %3812  ;;  %v2896_v21 = vadd.f32 1.0, %v3811_v17 }
 0x35f   :  { %2734 = vst [vmem:[%s4864_s8 + $0x10] sm:$0xff] %v3813_v5  ;;  %v3815_v26 = vpop.eup %3814 }
 0x360   :  { %3820 = vrcp.f32 %v2896_v21  ;;  %2732 = vst [vmem:[%s4864_s8] sm:$0xff] %v3815_v26  ;;  %v3817_v49 = vpop.eup %3816 }
 0x361   :  { %2735 = vst [vmem:[%s4864_s8 + $0x18] sm:$0xff] %v3817_v49  ;;  %v3819_v13 = vpop.eup %3818 }
 0x362   :  { %2733 = vst [vmem:[%s4864_s8 + $0x8] sm:$0xff] %v3819_v13 }
 0x36d   :  { %v3821_v16 = vpop.eup %3820 }
 0x36e   :  { %2899 = vst [vmem:[%s4865_s7] sm:$0xff] %v3821_v16 }

// kernel: mcar_forward.5
= control target key start
LH: loop header
LB: loop body
LE: loop exit
PB: predicated region body
PF: predicated region fallthrough
CT: control target
= control target key end

     0   :  { %s4889_s0 = inlined_call_operand.vmem [shape: bf16[32,3072], index: 0, kind: input, shape index: {}]   ;;  %s4890_s1 = inlined_call_operand.vmem [shape: bf16[3072,128], index: 1, kind: input, shape index: {}]   ;;  %s4891_s2 = inlined_call_operand.vmem [shape: f32[1,128], index: 2, kind: input, shape index: {}]   ;;  %s4892_s3 = inlined_call_operand.vmem [shape: bf16[128,128], index: 3, kind: input, shape index: {}]   ;;  %s4893_s4 = inlined_call_operand.vmem [shape: f32[1,128], index: 4, kind: input, shape index: {}]   ;;  %s4894_s5 = inlined_call_operand.vmem [shape: bf16[128,128], index: 5, kind: input, shape index: {}]   ;;  %s4895_s6 = inlined_call_operand.vmem [shape: f32[1,128], index: 6, kind: input, shape index: {}]   ;;  %s4896_s7 = inlined_call_operand.vmem [shape: f32[8,128], index: 7, kind: output, shape index: {0}]   ;;  %s4897_s8 = inlined_call_operand.hbm [shape: f32[32,128], index: 8, kind: output, shape index: {1}]  }
   0x1   :  { %v3610_v0 = vld [vmem:[%s4890_s1 + $0x78] sm:$0xff]   ;;  %v3614_v4 = vld [vmem:[%s4890_s1 + $0x70] sm:$0xff]   ;;  %v3618_v8 = vld [vmem:[%s4890_s1 + $0x68] sm:$0xff]  }
   0x2   :  { %v3611_v1 = vld [vmem:[%s4890_s1 + $0xf8] sm:$0xff]   ;;  %3180 = vmatprep.subr.bf16.mxu0 %v3610_v0  ;;  %v3615_v5 = vld [vmem:[%s4890_s1 + $0xf0] sm:$0xff]   ;;  %v3619_v9 = vld [vmem:[%s4890_s1 + $0xe8] sm:$0xff]  }
   0x3   :  { %v3612_v2 = vld [vmem:[%s4890_s1 + $0x38] sm:$0xff]   ;;  %3208 = vmatprep.subr.bf16.mxu1 %v3611_v1  ;;  %v3616_v6 = vld [vmem:[%s4890_s1 + $0x30] sm:$0xff]   ;;  %v3620_v10 = vld [vmem:[%s4890_s1 + $0x28] sm:$0xff]  }
   0x4   :  { %v3613_v3 = vld [vmem:[%s4890_s1 + $0xb8] sm:$0xff]   ;;  %3181 = vmatpush3.bf16.msra.mxu0 %v3612_v2  ;;  %v3617_v7 = vld [vmem:[%s4890_s1 + $0xb0] sm:$0xff]   ;;  %v3621_v11 = vld [vmem:[%s4890_s1 + $0xa8] sm:$0xff]  }
   0x5   :  { %3209 = vmatpush3.bf16.msra.mxu1 %v3613_v3  ;;  %3182 = vmatprep.subr.bf16.mxu0 %v3614_v4  ;;  %v3622_v12 = vld [vmem:[%s4890_s1 + $0x60] sm:$0xff]   ;;  %v3626_v16 = vld [vmem:[%s4890_s1 + $0x58] sm:$0xff]   ;;  %v3630_v20 = vld [vmem:[%s4890_s1 + $0x50] sm:$0xff]  }
   0x6   :  { %3210 = vmatprep.subr.bf16.mxu1 %v3615_v5  ;;  %v3623_v13 = vld [vmem:[%s4890_s1 + $0xe0] sm:$0xff]   ;;  %v3627_v17 = vld [vmem:[%s4890_s1 + $0xd8] sm:$0xff]   ;;  %v3631_v21 = vld [vmem:[%s4890_s1 + $0xd0] sm:$0xff]  }
   0x7   :  { %v3624_v14 = vld [vmem:[%s4890_s1 + $0x20] sm:$0xff]   ;;  %v3628_v18 = vld [vmem:[%s4890_s1 + $0x18] sm:$0xff]   ;;  %v3632_v22 = vld [vmem:[%s4890_s1 + $0x10] sm:$0xff]  }
   0x8   :  { %3183 = vmatpush3.bf16.msra.mxu0 %v3616_v6  ;;  %v3625_v15 = vld [vmem:[%s4890_s1 + $0xa0] sm:$0xff]   ;;  %v3629_v19 = vld [vmem:[%s4890_s1 + $0x98] sm:$0xff]   ;;  %v3633_v23 = vld [vmem:[%s4890_s1 + $0x90] sm:$0xff]  }
   0x9   :  { %3211 = vmatpush3.bf16.msra.mxu1 %v3617_v7  ;;  %3184 = vmatprep.subr.bf16.mxu0 %v3618_v8  ;;  %v3634_v24 = vld [vmem:[%s4890_s1 + $0x48] sm:$0xff]   ;;  %v3638_v28 = vld [vmem:[%s4890_s1 + $0x40] sm:$0xff]   ;;  %v3642_v40 = vld [vmem:[%s4890_s1 + $0x178] sm:$0xff]  }
   0xa   :  { %3212 = vmatprep.subr.bf16.mxu1 %v3619_v9  ;;  %v3635_v25 = vld [vmem:[%s4890_s1 + $0xc8] sm:$0xff]   ;;  %v3639_v29 = vld [vmem:[%s4890_s1 + $0xc0] sm:$0xff]   ;;  %v3643_v41 = vld [vmem:[%s4890_s1 + $0x1f8] sm:$0xff]  }
   0xb   :  { %v3636_v26 = vld [vmem:[%s4890_s1 + $0x8] sm:$0xff]   ;;  %v3640_v30 = vld [vmem:[%s4890_s1] sm:$0xff]   ;;  %v3644_v42 = vld [vmem:[%s4890_s1 + $0x138] sm:$0xff]  }
   0xc   :  { %3185 = vmatpush3.bf16.msra.mxu0 %v3620_v10  ;;  %v3637_v27 = vld [vmem:[%s4890_s1 + $0x88] sm:$0xff]   ;;  %v3641_v31 = vld [vmem:[%s4890_s1 + $0x80] sm:$0xff]   ;;  %v3645_v43 = vld [vmem:[%s4890_s1 + $0x1b8] sm:$0xff]  }
   0xd   :  { %3213 = vmatpush3.bf16.msra.mxu1 %v3621_v11  ;;  %3186 = vmatprep.subr.bf16.mxu0 %v3622_v12  ;;  %v30_v32 = vld [vmem:[%s4889_s0] sm:$0xff]  ;;  %v31_v34 = vld [vmem:[%s4889_s0 + $0x8] sm:$0xff]  ;;  %v3646_v44 = vld [vmem:[%s4890_s1 + $0x170] sm:$0xff]  }
   0xe   :  { %3214 = vmatprep.subr.bf16.mxu1 %v3623_v13  ;;  %v42_v33 = vld [vmem:[%s4889_s0 + $0x60] sm:$0xff]  ;;  %v43_v37 = vld [vmem:[%s4889_s0 + $0x68] sm:$0xff]  ;;  %v3647_v45 = vld [vmem:[%s4890_s1 + $0x1f0] sm:$0xff]  }
   0xf   :  { %v2922_v35 = vcombine.low %v30_v32, %v42_v33  ;;  %v2923_v36 = vcombine.high %v30_v32, %v42_v33  ;;  %v2924_v38 = vcombine.low %v31_v34, %v43_v37  ;;  %v2925_v39 = vcombine.high %v31_v34, %v43_v37  ;;  %v3648_v46 = vld [vmem:[%s4890_s1 + $0x130] sm:$0xff]   ;;  %v3650_v48 = vld [vmem:[%s4890_s1 + $0x168] sm:$0xff]   ;;  %v3654_v52 = vld [vmem:[%s4890_s1 + $0x160] sm:$0xff]  }
  0x10   :  { %3187 = vmatpush3.bf16.msra.mxu0 %v3624_v14  ;;  %v3649_v47 = vld [vmem:[%s4890_s1 + $0x1b0] sm:$0xff]   ;;  %v3651_v49 = vld [vmem:[%s4890_s1 + $0x1e8] sm:$0xff]   ;;  %v3655_v53 = vld [vmem:[%s4890_s1 + $0x1e0] sm:$0xff]  }
  0x11   :  { %3215 = vmatpush3.bf16.msra.mxu1 %v3625_v15  ;;  %3188 = vmatprep.subr.bf16.mxu0 %v3626_v16  ;;  %v3652_v50 = vld [vmem:[%s4890_s1 + $0x128] sm:$0xff]   ;;  %v3656_v54 = vld [vmem:[%s4890_s1 + $0x120] sm:$0xff]   ;;  %v3658_v56 = vld [vmem:[%s4890_s1 + $0x158] sm:$0xff]  }
  0x12   :  { %3216 = vmatprep.subr.bf16.mxu1 %v3627_v17  ;;  %1893 = vmatprep.mubr.bf16.mxu0 %v2923_v36  ;;  %v3653_v51 = vld [vmem:[%s4890_s1 + $0x1a8] sm:$0xff]   ;;  %v3657_v55 = vld [vmem:[%s4890_s1 + $0x1a0] sm:$0xff]   ;;  %v3659_v57 = vld [vmem:[%s4890_s1 + $0x1d8] sm:$0xff]  }
  0x13   :  { %1942 = vmatprep.mubr.bf16.mxu1 %v2925_v39  ;;  %v3660_v58 = vld [vmem:[%s4890_s1 + $0x118] sm:$0xff]   ;;  %v54_v60 = vld [vmem:[%s4889_s0 + $0xc0] sm:$0xff]  ;;  %v55_v0 = vld [vmem:[%s4889_s0 + $0xc8] sm:$0xff] }
  0x14   :  { %3189 = vmatpush3.bf16.msra.mxu0 %v3628_v18  ;;  %v3661_v59 = vld [vmem:[%s4890_s1 + $0x198] sm:$0xff]   ;;  %v66_v61 = vld [vmem:[%s4889_s0 + $0x120] sm:$0xff]  ;;  %v67_v1 = vld [vmem:[%s4889_s0 + $0x128] sm:$0xff] }
  0x15   :  { %3217 = vmatpush3.bf16.msra.mxu1 %v3629_v19  ;;  %3190 = vmatprep.subr.bf16.mxu0 %v3630_v20  ;;  %v2947_v62 = vcombine.high %v54_v60, %v66_v61  ;;  %v2946_v63 = vcombine.low %v54_v60, %v66_v61  ;;  %v2949_v2 = vcombine.high %v55_v0, %v67_v1  ;;  %v3662_v3 = vld [vmem:[%s4890_s1 + $0x150] sm:$0xff]   ;;  %v3666_v8 = vld [vmem:[%s4890_s1 + $0x148] sm:$0xff]   ;;  %v3670_v12 = vld [vmem:[%s4890_s1 + $0x140] sm:$0xff]  }
  0x16   :  { %3218 = vmatprep.subr.bf16.mxu1 %v3631_v21  ;;  %v2948_v4 = vcombine.low %v55_v0, %v67_v1  ;;  %v3663_v5 = vld [vmem:[%s4890_s1 + $0x1d0] sm:$0xff]   ;;  %v3667_v9 = vld [vmem:[%s4890_s1 + $0x1c8] sm:$0xff]   ;;  %v3671_v13 = vld [vmem:[%s4890_s1 + $0x1c0] sm:$0xff]  }
  0x17   :  { %v3664_v6 = vld [vmem:[%s4890_s1 + $0x110] sm:$0xff]   ;;  %v3668_v10 = vld [vmem:[%s4890_s1 + $0x108] sm:$0xff]   ;;  %v3672_v14 = vld [vmem:[%s4890_s1 + $0x100] sm:$0xff]  }
  0x18   :  { %3191 = vmatpush3.bf16.msra.mxu0 %v3632_v22  ;;  %v3665_v7 = vld [vmem:[%s4890_s1 + $0x190] sm:$0xff]   ;;  %v3669_v11 = vld [vmem:[%s4890_s1 + $0x188] sm:$0xff]   ;;  %v3673_v15 = vld [vmem:[%s4890_s1 + $0x180] sm:$0xff]  }
  0x19   :  { %3219 = vmatpush3.bf16.msra.mxu1 %v3633_v23  ;;  %3192 = vmatprep.subr.bf16.mxu0 %v3634_v24  ;;  %v32_v16 = vld [vmem:[%s4889_s0 + $0x10] sm:$0xff]  ;;  %v33_v18 = vld [vmem:[%s4889_s0 + $0x18] sm:$0xff]  ;;  %v3682_v36 = vld [vmem:[%s4890_s1 + $0x268] sm:$0xff]  }
  0x1a   :  { %3220 = vmatprep.subr.bf16.mxu1 %v3635_v25  ;;  %v44_v17 = vld [vmem:[%s4889_s0 + $0x70] sm:$0xff]  ;;  %v45_v19 = vld [vmem:[%s4889_s0 + $0x78] sm:$0xff]  ;;  %v3683_v37 = vld [vmem:[%s4890_s1 + $0x2e8] sm:$0xff]  }
  0x1b   :  { %v2926_v20 = vcombine.low %v32_v16, %v44_v17  ;;  %v2927_v21 = vcombine.high %v32_v16, %v44_v17  ;;  %v2928_v22 = vcombine.low %v33_v18, %v45_v19  ;;  %v2929_v23 = vcombine.high %v33_v18, %v45_v19  ;;  %v3674_v24 = vld [vmem:[%s4890_s1 + $0x278] sm:$0xff]   ;;  %v56_v32 = vld [vmem:[%s4889_s0 + $0xd0] sm:$0xff]  ;;  %v3702_v60 = vld [vmem:[%s4890_s1 + $0x240] sm:$0xff]  }
  0x1c   :  { %3193 = vmatpush3.bf16.msra.mxu0 %v3636_v26  ;;  %v3675_v25 = vld [vmem:[%s4890_s1 + $0x2f8] sm:$0xff]   ;;  %v68_v33 = vld [vmem:[%s4889_s0 + $0x130] sm:$0xff]  ;;  %v3703_v61 = vld [vmem:[%s4890_s1 + $0x2c0] sm:$0xff]  }
  0x1d   :  { %3221 = vmatpush3.bf16.msra.mxu1 %v3637_v27  ;;  %3194 = vmatprep.subr.bf16.mxu0 %v3638_v28  ;;  %v3676_v26 = vld [vmem:[%s4890_s1 + $0x238] sm:$0xff]   ;;  %v3678_v28 = vld [vmem:[%s4890_s1 + $0x270] sm:$0xff]   ;;  %v2951_v34 = vcombine.high %v56_v32, %v68_v33  ;;  %v34_v0 = vld [vmem:[%s4889_s0 + $0x20] sm:$0xff] }
  0x1e   :  { %3222 = vmatprep.subr.bf16.mxu1 %v3639_v29  ;;  %v3677_v27 = vld [vmem:[%s4890_s1 + $0x2b8] sm:$0xff]   ;;  %v3679_v29 = vld [vmem:[%s4890_s1 + $0x2f0] sm:$0xff]   ;;  %v46_v1 = vld [vmem:[%s4889_s0 + $0x80] sm:$0xff] }
  0x1f   :  { %v69_v39 = vld [vmem:[%s4889_s0 + $0x138] sm:$0xff]  ;;  %v58_v16 = vld [vmem:[%s4889_s0 + $0xe0] sm:$0xff] }
  0x20   :  { %3195 = vmatpush3.bf16.msra.mxu0 %v3640_v30  ;;  %v3680_v30 = vld [vmem:[%s4890_s1 + $0x230] sm:$0xff]   ;;  %v70_v17 = vld [vmem:[%s4889_s0 + $0x140] sm:$0xff] }
  0x21   :  { %3223 = vmatpush3.bf16.msra.mxu1 %v3641_v31  ;;  %3236 = vmatprep.subr.bf16.mxu0 %v3642_v40  ;;  %v3681_v31 = vld [vmem:[%s4890_s1 + $0x2b0] sm:$0xff]   ;;  %v2955_v18 = vcombine.high %v58_v16, %v70_v17  ;;  %v2954_v19 = vcombine.low %v58_v16, %v70_v17  ;;  %v3754_v16 = vld [vmem:[%s4890_s1 + $0x458] sm:$0xff]  }
  0x22   :  { %3264 = vmatprep.subr.bf16.mxu1 %v3643_v41  ;;  %v3684_v41 = vld [vmem:[%s4890_s1 + $0x228] sm:$0xff]   ;;  %v3755_v17 = vld [vmem:[%s4890_s1 + $0x4d8] sm:$0xff]  }
  0x23   :  { %1894 = vmatmul.mubr.bf16.vlgmr.msra.gmra.mxu0 %v2922_v35  ;;  %v2950_v35 = vcombine.low %v56_v32, %v68_v33  ;;  %v3722_v32 = vld [vmem:[%s4890_s1 + $0x358] sm:$0xff]  }
  0x24   :  { %1943 = vmatmul.mubr.bf16.vlgmr.msra.gmra.mxu1 %v2924_v38  ;;  %3237 = vmatpush3.bf16.msra.mxu0 %v3644_v42  ;;  %v57_v38 = vld [vmem:[%s4889_s0 + $0xd8] sm:$0xff] }
  0x25   :  { %3265 = vmatpush3.bf16.msra.mxu1 %v3645_v43  ;;  %3238 = vmatprep.subr.bf16.mxu0 %v3646_v44  ;;  %v2953_v40 = vcombine.high %v57_v38, %v69_v39  ;;  %v2952_v42 = vcombine.low %v57_v38, %v69_v39  ;;  %v3685_v43 = vld [vmem:[%s4890_s1 + $0x2a8] sm:$0xff]   ;;  %v3686_v44 = vld [vmem:[%s4890_s1 + $0x260] sm:$0xff]   ;;  %v3723_v33 = vld [vmem:[%s4890_s1 + $0x3d8] sm:$0xff]  }
  0x26   :  { %3266 = vmatprep.subr.bf16.mxu1 %v3647_v45  ;;  %1901 = vmatprep.mubr.bf16.mxu0 %v2947_v62  ;;  %v3687_v45 = vld [vmem:[%s4890_s1 + $0x2e0] sm:$0xff]   ;;  %v3728_v38 = vld [vmem:[%s4890_s1 + $0x310] sm:$0xff]  }
  0x27   :  { %1950 = vmatprep.mubr.bf16.mxu1 %v2949_v2  ;;  %v3704_v62 = vld [vmem:[%s4890_s1 + $0x200] sm:$0xff]   ;;  %v2930_v2 = vcombine.low %v34_v0, %v46_v1  ;;  %v3729_v39 = vld [vmem:[%s4890_s1 + $0x390] sm:$0xff]  }
  0x28   :  { %3239 = vmatpush3.bf16.msra.mxu0 %v3648_v46  ;;  %v3688_v46 = vld [vmem:[%s4890_s1 + $0x220] sm:$0xff]  }
  0x29   :  { %3267 = vmatpush3.bf16.msra.mxu1 %v3649_v47  ;;  %3240 = vmatprep.subr.bf16.mxu0 %v3650_v48  ;;  %v3689_v47 = vld [vmem:[%s4890_s1 + $0x2a0] sm:$0xff]   ;;  %v3690_v48 = vld [vmem:[%s4890_s1 + $0x258] sm:$0xff]  }
  0x2a   :  { %3268 = vmatprep.subr.bf16.mxu1 %v3651_v49  ;;  %v3691_v49 = vld [vmem:[%s4890_s1 + $0x2d8] sm:$0xff]  }
  0x2b   :  { %1902 = vmatmul.mubr.bf16.gmra.mxu0 %v2946_v63  ;;  %v3705_v63 = vld [vmem:[%s4890_s1 + $0x280] sm:$0xff]  }
  0x2c   :  { %3241 = vmatpush3.bf16.msra.mxu0 %v3652_v50  ;;  %1951 = vmatmul.mubr.bf16.gmra.mxu1 %v2948_v4  ;;  %v3692_v50 = vld [vmem:[%s4890_s1 + $0x218] sm:$0xff]   ;;  %v35_v4 = vld [vmem:[%s4889_s0 + $0x28] sm:$0xff] }
  0x2d   :  { %3269 = vmatpush3.bf16.msra.mxu1 %v3653_v51  ;;  %3242 = vmatprep.subr.bf16.mxu0 %v3654_v52  ;;  %v3693_v51 = vld [vmem:[%s4890_s1 + $0x298] sm:$0xff]   ;;  %v3694_v52 = vld [vmem:[%s4890_s1 + $0x250] sm:$0xff]  }
  0x2e   :  { %3270 = vmatprep.subr.bf16.mxu1 %v3655_v53  ;;  %1991 = vmatprep.mubr.bf16.mxu0 %v2927_v21  ;;  %v3695_v53 = vld [vmem:[%s4890_s1 + $0x2d0] sm:$0xff]   ;;  %v3715_v21 = vld [vmem:[%s4890_s1 + $0x3e8] sm:$0xff]  }
  0x2f   :  { %2040 = vmatprep.mubr.bf16.mxu1 %v2929_v23  ;;  %v71_v23 = vld [vmem:[%s4889_s0 + $0x148] sm:$0xff] }
  0x30   :  { %3243 = vmatpush3.bf16.msra.mxu0 %v3656_v54  ;;  %v3696_v54 = vld [vmem:[%s4890_s1 + $0x210] sm:$0xff]  }
  0x31   :  { %3271 = vmatpush3.bf16.msra.mxu1 %v3657_v55  ;;  %3244 = vmatprep.subr.bf16.mxu0 %v3658_v56  ;;  %v3697_v55 = vld [vmem:[%s4890_s1 + $0x290] sm:$0xff]   ;;  %v3698_v56 = vld [vmem:[%s4890_s1 + $0x248] sm:$0xff]  }
  0x32   :  { %3272 = vmatprep.subr.bf16.mxu1 %v3659_v57  ;;  %v3699_v57 = vld [vmem:[%s4890_s1 + $0x2c8] sm:$0xff]  }
  0x34   :  { %3245 = vmatpush3.bf16.msra.mxu0 %v3660_v58  ;;  %v3700_v58 = vld [vmem:[%s4890_s1 + $0x208] sm:$0xff]  }
  0x35   :  { %3273 = vmatpush3.bf16.msra.mxu1 %v3661_v59  ;;  %3246 = vmatprep.subr.bf16.mxu0 %v3662_v3  ;;  %v3701_v59 = vld [vmem:[%s4890_s1 + $0x288] sm:$0xff]   ;;  %v2931_v3 = vcombine.high %v34_v0, %v46_v1  ;;  %v60_v0 = vld [vmem:[%s4889_s0 + $0xf0] sm:$0xff] }
  0x36   :  { %3274 = vmatprep.subr.bf16.mxu1 %v3663_v5  ;;  %v47_v5 = vld [vmem:[%s4889_s0 + $0x88] sm:$0xff]  ;;  %v72_v1 = vld [vmem:[%s4889_s0 + $0x150] sm:$0xff] }
  0x38   :  { %3247 = vmatpush3.bf16.msra.mxu0 %v3664_v6  ;;  %v2932_v6 = vcombine.low %v35_v4, %v47_v5 }
  0x39   :  { %3275 = vmatpush3.bf16.msra.mxu1 %v3665_v7  ;;  %3248 = vmatprep.subr.bf16.mxu0 %v3666_v8  ;;  %v2933_v7 = vcombine.high %v35_v4, %v47_v5  ;;  %v3706_v8 = vld [vmem:[%s4890_s1 + $0x378] sm:$0xff]   ;;  %v3746_v4 = vld [vmem:[%s4890_s1 + $0x468] sm:$0xff]  }
  0x3a   :  { %3276 = vmatprep.subr.bf16.mxu1 %v3667_v9  ;;  %v3707_v9 = vld [vmem:[%s4890_s1 + $0x3f8] sm:$0xff]   ;;  %v3747_v5 = vld [vmem:[%s4890_s1 + $0x4e8] sm:$0xff]  }
  0x3c   :  { %3249 = vmatpush3.bf16.msra.mxu0 %v3668_v10  ;;  %v3708_v10 = vld [vmem:[%s4890_s1 + $0x338] sm:$0xff]  }
  0x3d   :  { %3277 = vmatpush3.bf16.msra.mxu1 %v3669_v11  ;;  %3250 = vmatprep.subr.bf16.mxu0 %v3670_v12  ;;  %v3709_v11 = vld [vmem:[%s4890_s1 + $0x3b8] sm:$0xff]   ;;  %v3710_v12 = vld [vmem:[%s4890_s1 + $0x370] sm:$0xff]  }
  0x3e   :  { %3278 = vmatprep.subr.bf16.mxu1 %v3671_v13  ;;  %v3711_v13 = vld [vmem:[%s4890_s1 + $0x3f0] sm:$0xff]  }
  0x40   :  { %3251 = vmatpush3.bf16.msra.mxu0 %v3672_v14  ;;  %v3712_v14 = vld [vmem:[%s4890_s1 + $0x330] sm:$0xff]  }
  0x41   :  { %3279 = vmatpush3.bf16.msra.mxu1 %v3673_v15  ;;  %3292 = vmatprep.subr.bf16.mxu0 %v3674_v24  ;;  %v3713_v15 = vld [vmem:[%s4890_s1 + $0x3b0] sm:$0xff]  }
  0x42   :  { %3320 = vmatprep.subr.bf16.mxu1 %v3675_v25  ;;  %v3716_v25 = vld [vmem:[%s4890_s1 + $0x328] sm:$0xff]  }
  0x43   :  { %1992 = vmatmul.mubr.bf16.vlgmr.msra.gmra.mxu0 %v2926_v20  ;;  %v3714_v20 = vld [vmem:[%s4890_s1 + $0x368] sm:$0xff]  }
  0x44   :  { %2041 = vmatmul.mubr.bf16.vlgmr.msra.gmra.mxu1 %v2928_v22  ;;  %3293 = vmatpush3.bf16.msra.mxu0 %v3676_v26  ;;  %v59_v22 = vld [vmem:[%s4889_s0 + $0xe8] sm:$0xff] }
  0x45   :  { %3321 = vmatpush3.bf16.msra.mxu1 %v3677_v27  ;;  %3294 = vmatprep.subr.bf16.mxu0 %v3678_v28  ;;  %v2957_v24 = vcombine.high %v59_v22, %v71_v23  ;;  %v2956_v26 = vcombine.low %v59_v22, %v71_v23  ;;  %v3717_v27 = vld [vmem:[%s4890_s1 + $0x3a8] sm:$0xff]   ;;  %v3718_v28 = vld [vmem:[%s4890_s1 + $0x360] sm:$0xff]   ;;  %v3760_v22 = vld [vmem:[%s4890_s1 + $0x410] sm:$0xff]  }
  0x46   :  { %3322 = vmatprep.subr.bf16.mxu1 %v3679_v29  ;;  %1999 = vmatprep.mubr.bf16.mxu0 %v2951_v34  ;;  %v3719_v29 = vld [vmem:[%s4890_s1 + $0x3e0] sm:$0xff]   ;;  %v3724_v34 = vld [vmem:[%s4890_s1 + $0x318] sm:$0xff]   ;;  %v3761_v23 = vld [vmem:[%s4890_s1 + $0x490] sm:$0xff]  }
  0x47   :  { %2048 = vmatprep.mubr.bf16.mxu1 %v2953_v40  ;;  %v3730_v40 = vld [vmem:[%s4890_s1 + $0x348] sm:$0xff]  }
  0x48   :  { %3295 = vmatpush3.bf16.msra.mxu0 %v3680_v30  ;;  %v3720_v30 = vld [vmem:[%s4890_s1 + $0x320] sm:$0xff]  }
  0x49   :  { %3323 = vmatpush3.bf16.msra.mxu1 %v3681_v31  ;;  %3296 = vmatprep.subr.bf16.mxu0 %v3682_v36  ;;  %v3721_v31 = vld [vmem:[%s4890_s1 + $0x3a0] sm:$0xff]   ;;  %v3726_v36 = vld [vmem:[%s4890_s1 + $0x350] sm:$0xff]  }
  0x4a   :  { %3324 = vmatprep.subr.bf16.mxu1 %v3683_v37  ;;  %v3727_v37 = vld [vmem:[%s4890_s1 + $0x3d0] sm:$0xff]  }
  0x4b   :  { %2000 = vmatmul.mubr.bf16.gmra.mxu0 %v2950_v35  ;;  %v3725_v35 = vld [vmem:[%s4890_s1 + $0x398] sm:$0xff]  }
  0x4c   :  { %3297 = vmatpush3.bf16.msra.mxu0 %v3684_v41  ;;  %2049 = vmatmul.mubr.bf16.gmra.mxu1 %v2952_v42  ;;  %v3731_v41 = vld [vmem:[%s4890_s1 + $0x3c8] sm:$0xff]  }
  0x4d   :  { %3325 = vmatpush3.bf16.msra.mxu1 %v3685_v43  ;;  %3298 = vmatprep.subr.bf16.mxu0 %v3686_v44  ;;  %v3732_v42 = vld [vmem:[%s4890_s1 + $0x308] sm:$0xff]   ;;  %v3734_v44 = vld [vmem:[%s4890_s1 + $0x340] sm:$0xff]  }
  0x4e   :  { %3326 = vmatprep.subr.bf16.mxu1 %v3687_v45  ;;  %2089 = vmatprep.mubr.bf16.mxu0 %v2931_v3  ;;  %v3733_v43 = vld [vmem:[%s4890_s1 + $0x388] sm:$0xff]   ;;  %v3735_v45 = vld [vmem:[%s4890_s1 + $0x3c0] sm:$0xff]   ;;  %v2958_v3 = vcombine.low %v60_v0, %v72_v1 }
  0x4f   :  { %2138 = vmatprep.mubr.bf16.mxu1 %v2933_v7  ;;  %v73_v7 = vld [vmem:[%s4889_s0 + $0x158] sm:$0xff] }
  0x50   :  { %3299 = vmatpush3.bf16.msra.mxu0 %v3688_v46  ;;  %v3736_v46 = vld [vmem:[%s4890_s1 + $0x300] sm:$0xff]  }
  0x51   :  { %3327 = vmatpush3.bf16.msra.mxu1 %v3689_v47  ;;  %3300 = vmatprep.subr.bf16.mxu0 %v3690_v48  ;;  %v3737_v47 = vld [vmem:[%s4890_s1 + $0x380] sm:$0xff]   ;;  %v36_v48 = vld [vmem:[%s4889_s0 + $0x30] sm:$0xff] }
  0x52   :  { %3328 = vmatprep.subr.bf16.mxu1 %v3691_v49  ;;  %v48_v49 = vld [vmem:[%s4889_s0 + $0x90] sm:$0xff] }
  0x54   :  { %3301 = vmatpush3.bf16.msra.mxu0 %v3692_v50  ;;  %v37_v50 = vld [vmem:[%s4889_s0 + $0x38] sm:$0xff] }
  0x55   :  { %3329 = vmatpush3.bf16.msra.mxu1 %v3693_v51  ;;  %3302 = vmatprep.subr.bf16.mxu0 %v3694_v52  ;;  %v2934_v51 = vcombine.low %v36_v48, %v48_v49  ;;  %v2935_v52 = vcombine.high %v36_v48, %v48_v49  ;;  %v62_v48 = vld [vmem:[%s4889_s0 + $0x100] sm:$0xff] }
  0x56   :  { %3330 = vmatprep.subr.bf16.mxu1 %v3695_v53  ;;  %v49_v53 = vld [vmem:[%s4889_s0 + $0x98] sm:$0xff]  ;;  %v74_v49 = vld [vmem:[%s4889_s0 + $0x160] sm:$0xff] }
  0x58   :  { %3303 = vmatpush3.bf16.msra.mxu0 %v3696_v54  ;;  %v2936_v54 = vcombine.low %v37_v50, %v49_v53 }
  0x59   :  { %3331 = vmatpush3.bf16.msra.mxu1 %v3697_v55  ;;  %3304 = vmatprep.subr.bf16.mxu0 %v3698_v56  ;;  %v2937_v55 = vcombine.high %v37_v50, %v49_v53  ;;  %v3738_v56 = vld [vmem:[%s4890_s1 + $0x478] sm:$0xff]   ;;  %v2963_v50 = vcombine.high %v62_v48, %v74_v49  ;;  %v3779_v53 = vld [vmem:[%s4890_s1 + $0x5e8] sm:$0xff]  }
  0x5a   :  { %3332 = vmatprep.subr.bf16.mxu1 %v3699_v57  ;;  %v3739_v57 = vld [vmem:[%s4890_s1 + $0x4f8] sm:$0xff]  }
  0x5c   :  { %3305 = vmatpush3.bf16.msra.mxu0 %v3700_v58  ;;  %v3740_v58 = vld [vmem:[%s4890_s1 + $0x438] sm:$0xff]  }
  0x5d   :  { %3333 = vmatpush3.bf16.msra.mxu1 %v3701_v59  ;;  %3306 = vmatprep.subr.bf16.mxu0 %v3702_v60  ;;  %v3741_v59 = vld [vmem:[%s4890_s1 + $0x4b8] sm:$0xff]   ;;  %v3742_v60 = vld [vmem:[%s4890_s1 + $0x470] sm:$0xff]  }
  0x5e   :  { %3334 = vmatprep.subr.bf16.mxu1 %v3703_v61  ;;  %v3743_v61 = vld [vmem:[%s4890_s1 + $0x4f0] sm:$0xff]  }
  0x60   :  { %3307 = vmatpush3.bf16.msra.mxu0 %v3704_v62  ;;  %v3744_v62 = vld [vmem:[%s4890_s1 + $0x430] sm:$0xff]  }
  0x61   :  { %3335 = vmatpush3.bf16.msra.mxu1 %v3705_v63  ;;  %3348 = vmatprep.subr.bf16.mxu0 %v3706_v8  ;;  %v3745_v63 = vld [vmem:[%s4890_s1 + $0x4b0] sm:$0xff]  }
  0x62   :  { %3376 = vmatprep.subr.bf16.mxu1 %v3707_v9  ;;  %v3748_v9 = vld [vmem:[%s4890_s1 + $0x428] sm:$0xff]  }
  0x63   :  { %2090 = vmatmul.mubr.bf16.vlgmr.msra.gmra.mxu0 %v2930_v2  ;;  %v2959_v2 = vcombine.high %v60_v0, %v72_v1  ;;  %v3786_v0 = vld [vmem:[%s4890_s1 + $0x558] sm:$0xff]  }
  0x64   :  { %2139 = vmatmul.mubr.bf16.vlgmr.msra.gmra.mxu1 %v2932_v6  ;;  %3349 = vmatpush3.bf16.msra.mxu0 %v3708_v10  ;;  %v61_v6 = vld [vmem:[%s4889_s0 + $0xf8] sm:$0xff] }
  0x65   :  { %3377 = vmatpush3.bf16.msra.mxu1 %v3709_v11  ;;  %3350 = vmatprep.subr.bf16.mxu0 %v3710_v12  ;;  %v2961_v8 = vcombine.high %v61_v6, %v73_v7  ;;  %v2960_v10 = vcombine.low %v61_v6, %v73_v7  ;;  %v3749_v11 = vld [vmem:[%s4890_s1 + $0x4a8] sm:$0xff]   ;;  %v3750_v12 = vld [vmem:[%s4890_s1 + $0x460] sm:$0xff]   ;;  %v3787_v1 = vld [vmem:[%s4890_s1 + $0x5d8] sm:$0xff]  }
  0x66   :  { %3378 = vmatprep.subr.bf16.mxu1 %v3711_v13  ;;  %2097 = vmatprep.mubr.bf16.mxu0 %v2955_v18  ;;  %v3751_v13 = vld [vmem:[%s4890_s1 + $0x4e0] sm:$0xff]   ;;  %v3756_v18 = vld [vmem:[%s4890_s1 + $0x418] sm:$0xff]   ;;  %v3792_v6 = vld [vmem:[%s4890_s1 + $0x510] sm:$0xff]  }
  0x67   :  { %2146 = vmatprep.mubr.bf16.mxu1 %v2957_v24  ;;  %v3762_v24 = vld [vmem:[%s4890_s1 + $0x448] sm:$0xff]   ;;  %v3793_v7 = vld [vmem:[%s4890_s1 + $0x590] sm:$0xff]  }
  0x68   :  { %3351 = vmatpush3.bf16.msra.mxu0 %v3712_v14  ;;  %v3752_v14 = vld [vmem:[%s4890_s1 + $0x420] sm:$0xff]  }
  0x69   :  { %3379 = vmatpush3.bf16.msra.mxu1 %v3713_v15  ;;  %3352 = vmatprep.subr.bf16.mxu0 %v3714_v20  ;;  %v3753_v15 = vld [vmem:[%s4890_s1 + $0x4a0] sm:$0xff]   ;;  %v3758_v20 = vld [vmem:[%s4890_s1 + $0x450] sm:$0xff]  }
  0x6a   :  { %3380 = vmatprep.subr.bf16.mxu1 %v3715_v21  ;;  %v3759_v21 = vld [vmem:[%s4890_s1 + $0x4d0] sm:$0xff]  }
  0x6b   :  { %2098 = vmatmul.mubr.bf16.gmra.mxu0 %v2954_v19  ;;  %v3757_v19 = vld [vmem:[%s4890_s1 + $0x498] sm:$0xff]  }
  0x6c   :  { %3353 = vmatpush3.bf16.msra.mxu0 %v3716_v25  ;;  %2147 = vmatmul.mubr.bf16.gmra.mxu1 %v2956_v26  ;;  %v3763_v25 = vld [vmem:[%s4890_s1 + $0x4c8] sm:$0xff]  }
  0x6d   :  { %3381 = vmatpush3.bf16.msra.mxu1 %v3717_v27  ;;  %3354 = vmatprep.subr.bf16.mxu0 %v3718_v28  ;;  %v3764_v26 = vld [vmem:[%s4890_s1 + $0x408] sm:$0xff]   ;;  %v3766_v28 = vld [vmem:[%s4890_s1 + $0x440] sm:$0xff]  }
  0x6e   :  { %3382 = vmatprep.subr.bf16.mxu1 %v3719_v29  ;;  %2187 = vmatprep.mubr.bf16.mxu0 %v2935_v52  ;;  %v3765_v27 = vld [vmem:[%s4890_s1 + $0x488] sm:$0xff]   ;;  %v3767_v29 = vld [vmem:[%s4890_s1 + $0x4c0] sm:$0xff]  }
  0x6f   :  { %2236 = vmatprep.mubr.bf16.mxu1 %v2937_v55  ;;  %v3778_v52 = vld [vmem:[%s4890_s1 + $0x568] sm:$0xff]  }
  0x70   :  { %3355 = vmatpush3.bf16.msra.mxu0 %v3720_v30  ;;  %v3768_v30 = vld [vmem:[%s4890_s1 + $0x400] sm:$0xff]   ;;  %v75_v55 = vld [vmem:[%s4889_s0 + $0x168] sm:$0xff] }
  0x71   :  { %3383 = vmatpush3.bf16.msra.mxu1 %v3721_v31  ;;  %3356 = vmatprep.subr.bf16.mxu0 %v3722_v32  ;;  %v3769_v31 = vld [vmem:[%s4890_s1 + $0x480] sm:$0xff]  }
  0x72   :  { %3384 = vmatprep.subr.bf16.mxu1 %v3723_v33  ;;  %v38_v32 = vld [vmem:[%s4889_s0 + $0x40] sm:$0xff] }
  0x73   :  { %v50_v33 = vld [vmem:[%s4889_s0 + $0xa0] sm:$0xff] }
  0x74   :  { %3357 = vmatpush3.bf16.msra.mxu0 %v3724_v34  ;;  %v39_v34 = vld [vmem:[%s4889_s0 + $0x48] sm:$0xff] }
  0x75   :  { %3385 = vmatpush3.bf16.msra.mxu1 %v3725_v35  ;;  %3358 = vmatprep.subr.bf16.mxu0 %v3726_v36  ;;  %v51_v35 = vld [vmem:[%s4889_s0 + $0xa8] sm:$0xff]  ;;  %v2938_v36 = vcombine.low %v38_v32, %v50_v33 }
  0x76   :  { %3386 = vmatprep.subr.bf16.mxu1 %v3727_v37  ;;  %v2939_v37 = vcombine.high %v38_v32, %v50_v33 }
  0x78   :  { %3359 = vmatpush3.bf16.msra.mxu0 %v3728_v38  ;;  %v2940_v38 = vcombine.low %v39_v34, %v51_v35 }
  0x79   :  { %3387 = vmatpush3.bf16.msra.mxu1 %v3729_v39  ;;  %3360 = vmatprep.subr.bf16.mxu0 %v3730_v40  ;;  %v2941_v39 = vcombine.high %v39_v34, %v51_v35  ;;  %v3770_v40 = vld [vmem:[%s4890_s1 + $0x578] sm:$0xff]  }
  0x7a   :  { %3388 = vmatprep.subr.bf16.mxu1 %v3731_v41  ;;  %v3771_v41 = vld [vmem:[%s4890_s1 + $0x5f8] sm:$0xff]  }
  0x7c   :  { %3361 = vmatpush3.bf16.msra.mxu0 %v3732_v42  ;;  %v3772_v42 = vld [vmem:[%s4890_s1 + $0x538] sm:$0xff]  }
  0x7d   :  { %3389 = vmatpush3.bf16.msra.mxu1 %v3733_v43  ;;  %3362 = vmatprep.subr.bf16.mxu0 %v3734_v44  ;;  %v3773_v43 = vld [vmem:[%s4890_s1 + $0x5b8] sm:$0xff]   ;;  %v3774_v44 = vld [vmem:[%s4890_s1 + $0x570] sm:$0xff]  }
  0x7e   :  { %3390 = vmatprep.subr.bf16.mxu1 %v3735_v45  ;;  %v3775_v45 = vld [vmem:[%s4890_s1 + $0x5f0] sm:$0xff]  }
  0x80   :  { %3363 = vmatpush3.bf16.msra.mxu0 %v3736_v46  ;;  %v3776_v46 = vld [vmem:[%s4890_s1 + $0x530] sm:$0xff]  }
  0x81   :  { %3391 = vmatpush3.bf16.msra.mxu1 %v3737_v47  ;;  %3404 = vmatprep.subr.bf16.mxu0 %v3738_v56  ;;  %v3777_v47 = vld [vmem:[%s4890_s1 + $0x5b0] sm:$0xff]  }
  0x82   :  { %3432 = vmatprep.subr.bf16.mxu1 %v3739_v57  ;;  %v3780_v57 = vld [vmem:[%s4890_s1 + $0x528] sm:$0xff]  }
  0x83   :  { %2188 = vmatmul.mubr.bf16.vlgmr.msra.gmra.mxu0 %v2934_v51  ;;  %v2962_v51 = vcombine.low %v62_v48, %v74_v49 }
  0x84   :  { %2237 = vmatmul.mubr.bf16.vlgmr.msra.gmra.mxu1 %v2936_v54  ;;  %3405 = vmatpush3.bf16.msra.mxu0 %v3740_v58  ;;  %v63_v54 = vld [vmem:[%s4889_s0 + $0x108] sm:$0xff] }
  0x85   :  { %3433 = vmatpush3.bf16.msra.mxu1 %v3741_v59  ;;  %3406 = vmatprep.subr.bf16.mxu0 %v3742_v60  ;;  %v2965_v56 = vcombine.high %v63_v54, %v75_v55  ;;  %v2964_v58 = vcombine.low %v63_v54, %v75_v55  ;;  %v3781_v59 = vld [vmem:[%s4890_s1 + $0x5a8] sm:$0xff]   ;;  %v3782_v60 = vld [vmem:[%s4890_s1 + $0x560] sm:$0xff]  }
  0x86   :  { %3434 = vmatprep.subr.bf16.mxu1 %v3743_v61  ;;  %2195 = vmatprep.mubr.bf16.mxu0 %v2959_v2  ;;  %v3783_v61 = vld [vmem:[%s4890_s1 + $0x5e0] sm:$0xff]   ;;  %v3788_v2 = vld [vmem:[%s4890_s1 + $0x518] sm:$0xff]  }
  0x87   :  { %2244 = vmatprep.mubr.bf16.mxu1 %v2961_v8  ;;  %v3794_v8 = vld [vmem:[%s4890_s1 + $0x548] sm:$0xff]  }
  0x88   :  { %3407 = vmatpush3.bf16.msra.mxu0 %v3744_v62  ;;  %v3784_v62 = vld [vmem:[%s4890_s1 + $0x520] sm:$0xff]  }
  0x89   :  { %3435 = vmatpush3.bf16.msra.mxu1 %v3745_v63  ;;  %3408 = vmatprep.subr.bf16.mxu0 %v3746_v4  ;;  %v3785_v63 = vld [vmem:[%s4890_s1 + $0x5a0] sm:$0xff]   ;;  %v3790_v4 = vld [vmem:[%s4890_s1 + $0x550] sm:$0xff]  }
  0x8a   :  { %3436 = vmatprep.subr.bf16.mxu1 %v3747_v5  ;;  %v3791_v5 = vld [vmem:[%s4890_s1 + $0x5d0] sm:$0xff]  }
  0x8b   :  { %2196 = vmatmul.mubr.bf16.gmra.mxu0 %v2958_v3  ;;  %v3789_v3 = vld [vmem:[%s4890_s1 + $0x598] sm:$0xff]  }
  0x8c   :  { %3409 = vmatpush3.bf16.msra.mxu0 %v3748_v9  ;;  %2245 = vmatmul.mubr.bf16.gmra.mxu1 %v2960_v10  ;;  %v3795_v9 = vld [vmem:[%s4890_s1 + $0x5c8] sm:$0xff]  }
  0x8d   :  { %3437 = vmatpush3.bf16.msra.mxu1 %v3749_v11  ;;  %3410 = vmatprep.subr.bf16.mxu0 %v3750_v12  ;;  %v3796_v10 = vld [vmem:[%s4890_s1 + $0x508] sm:$0xff]   ;;  %v3798_v12 = vld [vmem:[%s4890_s1 + $0x540] sm:$0xff]  }
  0x8e   :  { %3438 = vmatprep.subr.bf16.mxu1 %v3751_v13  ;;  %2285 = vmatprep.mubr.bf16.mxu0 %v2939_v37  ;;  %v3797_v11 = vld [vmem:[%s4890_s1 + $0x588] sm:$0xff]   ;;  %v3799_v13 = vld [vmem:[%s4890_s1 + $0x5c0] sm:$0xff]  }
  0x8f   :  { %2334 = vmatprep.mubr.bf16.mxu1 %v2941_v39 }
  0x90   :  { %3411 = vmatpush3.bf16.msra.mxu0 %v3752_v14  ;;  %v3800_v14 = vld [vmem:[%s4890_s1 + $0x500] sm:$0xff]  }
  0x91   :  { %3439 = vmatpush3.bf16.msra.mxu1 %v3753_v15  ;;  %3412 = vmatprep.subr.bf16.mxu0 %v3754_v16  ;;  %v3801_v15 = vld [vmem:[%s4890_s1 + $0x580] sm:$0xff]   ;;  %v40_v16 = vld [vmem:[%s4889_s0 + $0x50] sm:$0xff] }
  0x92   :  { %3440 = vmatprep.subr.bf16.mxu1 %v3755_v17  ;;  %v52_v17 = vld [vmem:[%s4889_s0 + $0xb0] sm:$0xff] }
  0x94   :  { %3413 = vmatpush3.bf16.msra.mxu0 %v3756_v18  ;;  %v2942_v18 = vcombine.low %v40_v16, %v52_v17 }
  0x95   :  { %3441 = vmatpush3.bf16.msra.mxu1 %v3757_v19  ;;  %3414 = vmatprep.subr.bf16.mxu0 %v3758_v20  ;;  %v2943_v19 = vcombine.high %v40_v16, %v52_v17  ;;  %v41_v20 = vld [vmem:[%s4889_s0 + $0x58] sm:$0xff] }
  0x96   :  { %3442 = vmatprep.subr.bf16.mxu1 %v3759_v21  ;;  %v53_v21 = vld [vmem:[%s4889_s0 + $0xb8] sm:$0xff] }
  0x98   :  { %3415 = vmatpush3.bf16.msra.mxu0 %v3760_v22  ;;  %v64_v22 = vld [vmem:[%s4889_s0 + $0x110] sm:$0xff] }
  0x99   :  { %3443 = vmatpush3.bf16.msra.mxu1 %v3761_v23  ;;  %3416 = vmatprep.subr.bf16.mxu0 %v3762_v24  ;;  %v2944_v23 = vcombine.low %v41_v20, %v53_v21  ;;  %v2945_v24 = vcombine.high %v41_v20, %v53_v21 }
  0x9a   :  { %3444 = vmatprep.subr.bf16.mxu1 %v3763_v25  ;;  %v76_v25 = vld [vmem:[%s4889_s0 + $0x170] sm:$0xff] }
  0x9c   :  { %3417 = vmatpush3.bf16.msra.mxu0 %v3764_v26  ;;  %v65_v26 = vld [vmem:[%s4889_s0 + $0x118] sm:$0xff] }
  0x9d   :  { %3445 = vmatpush3.bf16.msra.mxu1 %v3765_v27  ;;  %3418 = vmatprep.subr.bf16.mxu0 %v3766_v28  ;;  %v77_v27 = vld [vmem:[%s4889_s0 + $0x178] sm:$0xff]  ;;  %v2967_v28 = vcombine.high %v64_v22, %v76_v25 }
  0x9e   :  { %3446 = vmatprep.subr.bf16.mxu1 %v3767_v29  ;;  %v2969_v29 = vcombine.high %v65_v26, %v77_v27 }
  0xa0   :  { %3419 = vmatpush3.bf16.msra.mxu0 %v3768_v30  ;;  %v2966_v30 = vcombine.low %v64_v22, %v76_v25 }
  0xa1   :  { %3447 = vmatpush3.bf16.msra.mxu1 %v3769_v31  ;;  %3460 = vmatprep.subr.bf16.mxu0 %v3770_v40  ;;  %v2968_v31 = vcombine.low %v65_v26, %v77_v27 }
  0xa2   :  { %3488 = vmatprep.subr.bf16.mxu1 %v3771_v41 }
  0xa3   :  { %2286 = vmatmul.mubr.bf16.vlgmr.msra.gmra.mxu0 %v2938_v36 }
  0xa4   :  { %2335 = vmatmul.mubr.bf16.vlgmr.msra.gmra.mxu1 %v2940_v38  ;;  %3461 = vmatpush3.bf16.msra.mxu0 %v3772_v42 }
  0xa5   :  { %3489 = vmatpush3.bf16.msra.mxu1 %v3773_v43  ;;  %3462 = vmatprep.subr.bf16.mxu0 %v3774_v44 }
  0xa6   :  { %3490 = vmatprep.subr.bf16.mxu1 %v3775_v45  ;;  %2293 = vmatprep.mubr.bf16.mxu0 %v2963_v50 }
  0xa7   :  { %2342 = vmatprep.mubr.bf16.mxu1 %v2965_v56 }
  0xa8   :  { %3463 = vmatpush3.bf16.msra.mxu0 %v3776_v46 }
  0xa9   :  { %3491 = vmatpush3.bf16.msra.mxu1 %v3777_v47  ;;  %3464 = vmatprep.subr.bf16.mxu0 %v3778_v52 }
  0xaa   :  { %3492 = vmatprep.subr.bf16.mxu1 %v3779_v53 }
  0xab   :  { %2294 = vmatmul.mubr.bf16.gmra.mxu0 %v2962_v51 }
  0xac   :  { %3465 = vmatpush3.bf16.msra.mxu0 %v3780_v57  ;;  %2343 = vmatmul.mubr.bf16.gmra.mxu1 %v2964_v58 }
  0xad   :  { %3493 = vmatpush3.bf16.msra.mxu1 %v3781_v59  ;;  %3466 = vmatprep.subr.bf16.mxu0 %v3782_v60 }
  0xae   :  { %3494 = vmatprep.subr.bf16.mxu1 %v3783_v61  ;;  %2383 = vmatprep.mubr.bf16.mxu0 %v2943_v19 }
  0xaf   :  { %2432 = vmatprep.mubr.bf16.mxu1 %v2945_v24 }
  0xb0   :  { %3467 = vmatpush3.bf16.msra.mxu0 %v3784_v62 }
  0xb1   :  { %3495 = vmatpush3.bf16.msra.mxu1 %v3785_v63  ;;  %3468 = vmatprep.subr.bf16.mxu0 %v3786_v0 }
  0xb2   :  { %3496 = vmatprep.subr.bf16.mxu1 %v3787_v1 }
  0xb4   :  { %3469 = vmatpush3.bf16.msra.mxu0 %v3788_v2 }
  0xb5   :  { %3497 = vmatpush3.bf16.msra.mxu1 %v3789_v3  ;;  %3470 = vmatprep.subr.bf16.mxu0 %v3790_v4 }
  0xb6   :  { %3498 = vmatprep.subr.bf16.mxu1 %v3791_v5 }
  0xb8   :  { %3471 = vmatpush3.bf16.msra.mxu0 %v3792_v6 }
  0xb9   :  { %3499 = vmatpush3.bf16.msra.mxu1 %v3793_v7  ;;  %3472 = vmatprep.subr.bf16.mxu0 %v3794_v8 }
  0xba   :  { %3500 = vmatprep.subr.bf16.mxu1 %v3795_v9 }
  0xbc   :  { %3473 = vmatpush3.bf16.msra.mxu0 %v3796_v10 }
  0xbd   :  { %3501 = vmatpush3.bf16.msra.mxu1 %v3797_v11  ;;  %3474 = vmatprep.subr.bf16.mxu0 %v3798_v12 }
  0xbe   :  { %3502 = vmatprep.subr.bf16.mxu1 %v3799_v13 }
  0xc0   :  { %3475 = vmatpush3.bf16.msra.mxu0 %v3800_v14 }
  0xc1   :  { %3503 = vmatpush3.bf16.msra.mxu1 %v3801_v15 }
  0xc3   :  { %2384 = vmatmul.mubr.bf16.vlgmr.msra.gmra.mxu0 %v2942_v18 }
  0xc4   :  { %2433 = vmatmul.mubr.bf16.vlgmr.msra.gmra.mxu1 %v2944_v23  ;;  %2391 = vmatprep.mubr.bf16.mxu0 %v2967_v28 }
  0xc5   :  { %2440 = vmatprep.mubr.bf16.mxu1 %v2969_v29 }
  0xcb   :  { %2392 = vmatmul.mubr.bf16.gmra.mxu0 %v2966_v30 }
  0xcc   :  { %2441 = vmatmul.mubr.bf16.gmra.mxu1 %v2968_v31 }
  0xcd   :  { %14 = vsyncpa [#allocation3], 0  ;;  %v4633_v34 = vld [vmem:[%s4891_s2] ss:$0 sm:$0xff]  ;;  %v3802_v53 = vld [vmem:[%s4892_s3 + $0x38] sm:$0xff]   ;;  %vm3861_vm0 = vmmov 0  }
  0xce   :  { %v3803_v54 = vld [vmem:[%s4892_s3 + $0x30] sm:$0xff]   ;;  %3545 = vmatprep.subr.bf16.mxu0 %v3802_v53  ;;  %v3804_v56 = vld [vmem:[%s4892_s3 + $0x28] sm:$0xff]   ;;  %v3805_v58 = vld [vmem:[%s4892_s3 + $0x20] sm:$0xff]   ;;  %vm2749_vm1 = vcmask 1043456   ;;  %vm2838_vm2 = vcmask 1041409   ;;  %vm2840_vm3 = vcmask 1042434  }
  0xcf   :  { %3546 = vmatpush3.bf16.msra.mxu0 %v3802_v53  ;;  %v3806_v60 = vld [vmem:[%s4892_s3 + $0x18] sm:$0xff]   ;;  %v3807_v63 = vld [vmem:[%s4892_s3 + $0x10] sm:$0xff]   ;;  %v3808_v3 = vld [vmem:[%s4892_s3 + $0x8] sm:$0xff]   ;;  %vm2842_vm4 = vcmask 1043459   ;;  %vm2844_vm5 = vcmask 1044484   ;;  %vm2846_vm6 = vcmask 1045509  }
  0xd0   :  { %3547 = vmatprep.subr.bf16.mxu0 %v3803_v54  ;;  %v3809_v6 = vld [vmem:[%s4892_s3] sm:$0xff]   ;;  %v4700_v9 = vld [vmem:[%s4894_s5 + $0x38] sm:$0xff]   ;;  %v4705_v10 = vld [vmem:[%s4894_s5 + $0x30] sm:$0xff]   ;;  %vm2848_vm7 = vcmask 1046534   ;;  %vm2850_vm8 = vcmask 1047559  }
  0xd1   :  { %4902 = vst [vmem:[#allocation5_spill] sm:$0xff] %v4700_v9  ;;  %4903 = vst [vmem:[#allocation6_spill] sm:$0xff] %v4705_v10  ;;  %3565 = vmatprep.subr.bf16.mxu1 %v4700_v9  ;;  %v4719_v14 = vld [vmem:[%s4894_s5 + $0x28] sm:$0xff]   ;;  %v4730_v17 = vld [vmem:[%s4894_s5 + $0x20] sm:$0xff]  }
  0xd2   :  { %3566 = vmatpush3.bf16.msra.mxu1 %v4700_v9  ;;  %4904 = vst [vmem:[#allocation7_spill] sm:$0xff] %v4719_v14  ;;  %4905 = vst [vmem:[#allocation8_spill] sm:$0xff] %v4730_v17 }
  0xd3   :  { %3548 = vmatpush3.bf16.msra.mxu0 %v3803_v54  ;;  %3567 = vmatprep.subr.bf16.mxu1 %v4705_v10 }
  0xd4   :  { %3549 = vmatprep.subr.bf16.mxu0 %v3804_v56 }
  0xd6   :  { %3568 = vmatpush3.bf16.msra.mxu1 %v4705_v10 }
  0xd7   :  { %3550 = vmatpush3.bf16.msra.mxu0 %v3804_v56  ;;  %3569 = vmatprep.subr.bf16.mxu1 %v4719_v14 }
  0xd8   :  { %3551 = vmatprep.subr.bf16.mxu0 %v3805_v58 }
  0xda   :  { %3570 = vmatpush3.bf16.msra.mxu1 %v4719_v14 }
  0xdb   :  { %3552 = vmatpush3.bf16.msra.mxu0 %v3805_v58  ;;  %3571 = vmatprep.subr.bf16.mxu1 %v4730_v17 }
  0xdc   :  { %3553 = vmatprep.subr.bf16.mxu0 %v3806_v60 }
  0xde   :  { %3572 = vmatpush3.bf16.msra.mxu1 %v4730_v17 }
  0xdf   :  { %3554 = vmatpush3.bf16.msra.mxu0 %v3806_v60 }
  0xe0   :  { %3555 = vmatprep.subr.bf16.mxu0 %v3807_v63 }
  0xe3   :  { %v3196_v32 = vpop.f32.mrf.mxu0  ;;  %3556 = vmatpush3.bf16.msra.mxu0 %v3807_v63 }
  0xe4   :  { %v3224_v33 = vpop.f32.mrf.mxu1  ;;  %3557 = vmatprep.subr.bf16.mxu0 %v3808_v3 }
  0xe5   :  { %v3197_v35 = vpop.f32.mrf.mxu0 }
  0xe6   :  { %v3198_v36 = vadd.f32 %v3197_v35, %v3196_v32  ;;  %v3225_v37 = vpop.f32.mrf.mxu1 }
  0xe7   :  { %v3226_v38 = vadd.f32 %v3225_v37, %v3224_v33  ;;  %v4638_v41 = vpop.f32.mrf.mxu0  ;;  %3558 = vmatpush3.bf16.msra.mxu0 %v3808_v3 }
  0xe8   :  { %v1896_v39 = vadd.f32 %v3198_v36, %v4633_v34  ;;  %v4640_v42 = vpop.f32.mrf.mxu1  ;;  %3559 = vmatprep.subr.bf16.mxu0 %v3809_v6 }
  0xe9   :  { %v4642_v43 = vpop.f32.mrf.mxu0 }
  0xea   :  { %v4636_v40 = vadd.f32 %v3226_v38, %v1896_v39  ;;  %v4644_v44 = vpop.f32.mrf.mxu1  ;;  %v3201_v14 = vadd.f32 %v4642_v43, %v4638_v41 }
  0xeb   :  { %v3202_v45 = vpop.f32.mrf.mxu0  ;;  %3560 = vmatpush3.bf16.msra.mxu0 %v3809_v6 }
  0xec   :  { %v3230_v47 = vpop.f32.mrf.mxu1 }
  0xed   :  { %v3203_v46 = vpop.f32.mrf.mxu0 }
  0xee   :  { %v3204_v48 = vadd.f32 %v3203_v46, %v3202_v45  ;;  %v3231_v49 = vpop.f32.mrf.mxu1 }
  0xef   :  { %v3232_v51 = vadd.f32 %v3231_v49, %v3230_v47  ;;  %v4655_v55 = vpop.f32.mrf.mxu0 }
  0xf0   :  { %v1904_v50 = vadd.f32 %v3204_v48, %v4633_v34  ;;  %v4670_v61 = vpop.f32.mrf.mxu1 }
  0xf1   :  { %v4660_v57 = vpop.f32.mrf.mxu0 }
  0xf2   :  { %v4647_v52 = vadd.f32 %v3232_v51, %v1904_v50  ;;  %v4677_v0 = vpop.f32.mrf.mxu1 }
 0x103   :  { %v4665_v59 = vpop.f32.mrf.mxu0 }
 0x104   :  { %v4681_v2 = vpop.f32.mrf.mxu1 }
 0x105   :  { %v4672_v62 = vpop.f32.mrf.mxu0 }
 0x106   :  { %v4688_v5 = vpop.f32.mrf.mxu1  ;;  %v3254_v9 = vadd.f32 %v4672_v62, %v4665_v59  ;;  %v3207_v59 = vadd.f32 %v4660_v57, %v4655_v55 }
 0x107   :  { %v4679_v1 = vpop.f32.mrf.mxu0 }
 0x108   :  { %v4695_v8 = vpop.f32.mrf.mxu1 }
 0x109   :  { %v4686_v4 = vpop.f32.mrf.mxu0 }
 0x10a   :  { %v4709_v12 = vpop.f32.mrf.mxu1 }
 0x10b   :  { %v4693_v7 = vpop.f32.mrf.mxu0 }
 0x10c   :  { %v4713_v13 = vpop.f32.mrf.mxu1 }
 0x10d   :  { %v4707_v11 = vpop.f32.mrf.mxu0 }
 0x10e   :  { %v4724_v16 = vpop.f32.mrf.mxu1 }
 0x10f   :  { %v4721_v15 = vpop.f32.mrf.mxu0 }
 0x110   :  { %v4735_v20 = vpop.f32.mrf.mxu1 }
 0x111   :  { %v4732_v18 = vpop.f32.mrf.mxu0 }
 0x112   :  { %v4739_v22 = vpop.f32.mrf.mxu1 }
 0x123   :  { %v3308_v19 = vpop.f32.mrf.mxu0 }
 0x124   :  { %v3336_v23 = vpop.f32.mrf.mxu1 }
 0x125   :  { %v3309_v21 = vpop.f32.mrf.mxu0 }
 0x126   :  { %v3337_v25 = vpop.f32.mrf.mxu1 }
 0x127   :  { %v3311_v24 = vpop.f32.mrf.mxu0  ;;  %v3338_v55 = vadd.f32 %v3337_v25, %v3336_v23  ;;  %v3291_v25 = vadd.f32 %v4739_v22, %v4735_v20 }
 0x128   :  { %v4741_v27 = vpop.f32.mrf.mxu1 }
 0x129   :  { %v3312_v26 = vpop.f32.mrf.mxu0 }
 0x12a   :  { %v4745_v29 = vpop.f32.mrf.mxu1 }
 0x12b   :  { %v4743_v28 = vpop.f32.mrf.mxu0 }
 0x12c   :  { %v4747_v31 = vpop.f32.mrf.mxu1 }
 0x12d   :  { %v3315_v30 = vpop.f32.mrf.mxu0 }
 0x12e   :  { %v4751_v33 = vpop.f32.mrf.mxu1 }
 0x12f   :  { %v4749_v32 = vpop.f32.mrf.mxu0 }
 0x130   :  { %v4755_v36 = vpop.f32.mrf.mxu1 }
 0x131   :  { %v4753_v35 = vpop.f32.mrf.mxu0 }
 0x132   :  { %v4757_v38 = vpop.f32.mrf.mxu1 }
 0x143   :  { %v3364_v37 = vpop.f32.mrf.mxu0 }
 0x144   :  { %v3392_v45 = vpop.f32.mrf.mxu1 }
 0x145   :  { %v3365_v39 = vpop.f32.mrf.mxu0 }
 0x146   :  { %v3393_v47 = vpop.f32.mrf.mxu1 }
 0x147   :  { %v3367_v46 = vpop.f32.mrf.mxu0 }
 0x148   :  { %v4759_v49 = vpop.f32.mrf.mxu1 }
 0x149   :  { %v3368_v48 = vpop.f32.mrf.mxu0  ;;  %4906 = vst [vmem:[#allocation9_spill] sm:$0xff] %v4759_v49 }
 0x14a   :  { %v4763_v51 = vpop.f32.mrf.mxu1 }
 0x14b   :  { %v4761_v50 = vpop.f32.mrf.mxu0  ;;  %4907 = vst [vmem:[#allocation10_spill] sm:$0xff] %v4763_v51 }
 0x14c   :  { %v4765_v53 = vpop.f32.mrf.mxu1 }
 0x14d   :  { %4908 = vst [vmem:[#allocation11_spill] sm:$0xff] %v4765_v53  ;;  %v4767_v54 = vpop.f32.mrf.mxu0 }
 0x14e   :  { %v4769_v56 = vpop.f32.mrf.mxu1 }
 0x14f   :  { %4909 = vst [vmem:[#allocation12_spill] sm:$0xff] %v4769_v56  ;;  %v4771_v58 = vpop.f32.mrf.mxu0  ;;  %v1899_v56 = vadd.f32 %v3201_v14, %v4633_v34  ;;  %v3310_v14 = vadd.f32 %v3309_v21, %v3308_v19 }
 0x150   :  { %4910 = vst [vmem:[#allocation13_spill] sm:$0xff] %v4771_v58  ;;  %v4773_v60 = vpop.f32.mrf.mxu1 }
 0x151   :  { %4911 = vst [vmem:[#allocation14_spill] sm:$0xff] %v4773_v60  ;;  %v4775_v63 = vpop.f32.mrf.mxu0  ;;  %v3229_v60 = vadd.f32 %v4644_v44, %v4640_v42  ;;  %v3260_v42 = vadd.f32 %v4707_v11, %v4693_v7  ;;  %v3366_v11 = vadd.f32 %v3365_v39, %v3364_v37 }
 0x152   :  { %4912 = vst [vmem:[#allocation15_spill] sm:$0xff] %v4775_v63  ;;  %v4777_v6 = vpop.f32.mrf.mxu1  ;;  %v3257_v63 = vadd.f32 %v4686_v4, %v4679_v1  ;;  %v1907_v1 = vadd.f32 %v3207_v59, %v4633_v34  ;;  %v3313_v4 = vadd.f32 %v3312_v26, %v3311_v24  ;;  %v3288_v34 = vadd.f32 %v4724_v16, %v4713_v13 }
 0x153   :  { %4913 = vst [vmem:[#allocation16_spill] sm:$0xff] %v4777_v6  ;;  %v1994_v6 = vadd.f32 %v3254_v9, %v4636_v40  ;;  %v1948_v43 = vadd.f32 %v3229_v60, %v1899_v56  ;;  %v3235_v40 = vadd.f32 %v4677_v0, %v4670_v61  ;;  %v2002_v7 = vadd.f32 %v3260_v42, %v4647_v52 }
 0x154   :  { %v3319_v16 = vadd.f32 %v4753_v35, %v4749_v32 }
 0x155   :  { %v1997_v51 = vadd.f32 %v3257_v63, %v1948_v43  ;;  %v1956_v61 = vadd.f32 %v3235_v40, %v1907_v1  ;;  %v2051_v52 = vadd.f32 %v3288_v34, %v2002_v7 }
 0x156   :  { %v4921_v42 = vld [vmem:[#allocation12_spill] sm:$0xff] }
 0x159   :  { %v4919_v43 = vld [vmem:[#allocation15_spill] sm:$0xff] }
 0x163   :  { %v3420_v3 = vpop.f32.mrf.mxu0 }
 0x164   :  { %v4779_v17 = vpop.f32.mrf.mxu1 }
 0x165   :  { %4914 = vst [vmem:[#allocation17_spill] sm:$0xff] %v4779_v17  ;;  %v3421_v10 = vpop.f32.mrf.mxu0  ;;  %v3282_v17 = vadd.f32 %v4688_v5, %v4681_v2  ;;  %v3285_v2 = vadd.f32 %v4709_v12, %v4695_v8  ;;  %v3316_v12 = vadd.f32 %v3315_v30, %v4743_v28  ;;  %v3344_v28 = vadd.f32 %v4751_v33, %v4747_v31 }
 0x166   :  { %v3449_v53 = vpop.f32.mrf.mxu1  ;;  %v3422_v30 = vadd.f32 %v3421_v10, %v3420_v3 }
 0x167   :  { %v3423_v58 = vpop.f32.mrf.mxu0  ;;  %v2043_v49 = vadd.f32 %v3282_v17, %v1994_v6  ;;  %v2046_v19 = vadd.f32 %v3285_v2, %v1997_v51  ;;  %v3263_v17 = vadd.f32 %v4732_v18, %v4721_v15  ;;  %v3341_v15 = vadd.f32 %v4745_v29, %v4741_v27  ;;  %v4918_v6 = vld [vmem:[#allocation13_spill] sm:$0xff] }
 0x168   :  { %v4793_v41 = vpop.f32.mrf.mxu1  ;;  %v3369_v18 = vadd.f32 %v3368_v48, %v3367_v46  ;;  %v2100_v39 = vadd.f32 %v3316_v12, %v2051_v52  ;;  %v3372_v27 = vadd.f32 %v4767_v54, %v4761_v50  ;;  %v4915_v46 = vld [vmem:[#allocation9_spill] sm:$0xff]  ;;  %v3375_v59 = vadd.f32 %v4919_v43, %v4918_v6  ;;  %v4920_v54 = vld [vmem:[#allocation11_spill] sm:$0xff] }
 0x169   :  { %v3424_v62 = vpop.f32.mrf.mxu0  ;;  %v2092_v9 = vadd.f32 %v3310_v14, %v2043_v49  ;;  %v2095_v0 = vadd.f32 %v3313_v4, %v2046_v19  ;;  %v2005_v23 = vadd.f32 %v3263_v17, %v1956_v61  ;;  %v3394_v49 = vadd.f32 %v3393_v47, %v3392_v45  ;;  %v4916_v47 = vld [vmem:[#allocation10_spill] sm:$0xff]  ;;  %v4923_v19 = vld [vmem:[#allocation16_spill] sm:$0xff] }
 0x16a   :  { %v3452_v44 = vpop.f32.mrf.mxu1  ;;  %v3347_v45 = vadd.f32 %v4757_v38, %v4755_v36  ;;  %v3397_v32 = vadd.f32 %v4916_v47, %v4915_v46  ;;  %v3425_v35 = vadd.f32 %v3424_v62, %v3423_v58  ;;  %v2149_v60 = vadd.f32 %v3344_v28, %v2100_v39 }
 0x16b   :  { %v3426_v5 = vpop.f32.mrf.mxu0  ;;  %v2141_v8 = vadd.f32 %v3338_v55, %v2092_v9  ;;  %v2144_v13 = vadd.f32 %v3341_v15, %v2095_v0  ;;  %v2054_v56 = vadd.f32 %v3291_v25, %v2005_v23  ;;  %v3400_v1 = vadd.f32 %v4921_v42, %v4920_v54  ;;  %v3815_v54 = vld [vmem:[%s4894_s5 + $0x10] sm:$0xff]   ;;  %v3816_v42 = vld [vmem:[%s4894_s5 + $0x8] sm:$0xff]  }
 0x16c   :  { %v4804_v57 = vpop.f32.mrf.mxu1  ;;  %v4917_v31 = vld [vmem:[#allocation17_spill] sm:$0xff]  ;;  %v2198_v50 = vadd.f32 %v3372_v27, %v2149_v60  ;;  %v3453_v7 = vadd.f32 %v3452_v44, %v4793_v41 }
 0x16d   :  { %v3427_v21 = vpop.f32.mrf.mxu0  ;;  %v2190_v26 = vadd.f32 %v3366_v11, %v2141_v8  ;;  %v2193_v20 = vadd.f32 %v3369_v18, %v2144_v13  ;;  %v2103_v29 = vadd.f32 %v3319_v16, %v2054_v56  ;;  %v3450_v10 = vadd.f32 %v3449_v53, %v4917_v31  ;;  %v4922_v53 = vld [vmem:[#allocation14_spill] sm:$0xff] }
 0x16e   :  { %v3455_v24 = vpop.f32.mrf.mxu1  ;;  %v3428_v62 = vadd.f32 %v3427_v21, %v3426_v5  ;;  %v3403_v17 = vadd.f32 %v4923_v19, %v4922_v53  ;;  %v2247_v11 = vadd.f32 %v3400_v1, %v2198_v50  ;;  %v3814_v50 = vld [vmem:[%s4894_s5 + $0x18] sm:$0xff]   ;;  %v3860_v1 = vmov 0.0  }
 0x16f   :  { %v3429_v37 = vpop.f32.mrf.mxu0  ;;  %v2239_v22 = vadd.f32 %v3394_v49, %v2190_v26  ;;  %v2242_v3 = vadd.f32 %v3397_v32, %v2193_v20  ;;  %v2152_v38 = vadd.f32 %v3347_v45, %v2103_v29  ;;  %v3456_v18 = vadd.f32 %v3455_v24, %v4804_v57  ;;  %3573 = vmatprep.subr.bf16.mxu1 %v3814_v50 }
 0x170   :  { %v3457_v51 = vpop.f32.mrf.mxu1  ;;  %v2296_v15 = vadd.f32 %v3428_v62, %v2247_v11  ;;  %3574 = vmatpush3.bf16.msra.mxu1 %v3814_v50  ;;  %3585 = vmatprep.subr.bf16.mxu0 %v3860_v1  ;;  %v3162_v62 = vld [vmem:[%s4893_s4] ss:$0 sm:$0xff] }
 0x171   :  { %v3430_v48 = vpop.f32.mrf.mxu0  ;;  %v2288_v63 = vadd.f32 %v3422_v30, %v2239_v22  ;;  %v2291_v40 = vadd.f32 %v3425_v35, %v2242_v3  ;;  %v2201_v55 = vadd.f32 %v3375_v59, %v2152_v38  ;;  %3575 = vmatprep.subr.bf16.mxu1 %v3815_v54  ;;  %v3817_v38 = vld [vmem:[%s4894_s5] sm:$0xff]  }
 0x172   :  { %v3458_v33 = vpop.f32.mrf.mxu1  ;;  %v3431_v23 = vadd.f32 %v3430_v48, %v3429_v37  ;;  %v2345_v30 = vadd.f32 %v3456_v18, %v2296_v15 }
 0x173   :  { %v2337_v58 = vadd.f32 %v3450_v10, %v2288_v63  ;;  %v2340_v12 = vadd.f32 %v3453_v7, %v2291_v40  ;;  %v2250_v26 = vadd.f32 %v3403_v17, %v2201_v55  ;;  %v3459_v44 = vadd.f32 %v3458_v33, %v3457_v51  ;;  %v4925_v40 = vld [vmem:[#allocation6_spill] sm:$0xff] }
 0x174   :  { %3576 = vmatpush3.bf16.msra.mxu1 %v3815_v54 }
 0x175   :  { %v2299_v41 = vadd.f32 %v3431_v23, %v2250_v26  ;;  %3577 = vmatprep.subr.bf16.mxu1 %v3816_v42 }
 0x177   :  { %v2348_v46 = vadd.f32 %v3459_v44, %v2299_v41 }
 0x178   :  { %3578 = vmatpush3.bf16.msra.mxu1 %v3816_v42 }
 0x179   :  { %3579 = vmatprep.subr.bf16.mxu1 %v3817_v38 }
 0x17c   :  { %3580 = vmatpush3.bf16.msra.mxu1 %v3817_v38 }
 0x183   :  { %v3476_v14 = vpop.f32.mrf.mxu0 }
 0x184   :  { %v3504_v36 = vpop.f32.mrf.mxu1 }
 0x185   :  { %v3477_v2 = vpop.f32.mrf.mxu0 }
 0x186   :  { %v3478_v4 = vadd.f32 %v3477_v2, %v3476_v14  ;;  %v3505_v9 = vpop.f32.mrf.mxu1  ;;  %v4926_v2 = vld [vmem:[#allocation7_spill] sm:$0xff] }
 0x187   :  { %v3479_v34 = vpop.f32.mrf.mxu0  ;;  %v3506_v0 = vadd.f32 %v3505_v9, %v3504_v36  ;;  %v4924_v36 = vld [vmem:[#allocation5_spill] sm:$0xff] }
 0x188   :  { %v2386_v61 = vadd.f32 %v3478_v4, %v2337_v58  ;;  %v3507_v8 = vpop.f32.mrf.mxu1  ;;  %v4927_v58 = vld [vmem:[#allocation8_spill] sm:$0xff] }
 0x189   :  { %v3480_v25 = vpop.f32.mrf.mxu0 }
 0x18a   :  { %v2435_v5 = vadd.f32 %v3506_v0, %v2386_v61  ;;  %v3481_v21 = vadd.f32 %v3480_v25, %v3479_v34  ;;  %v3508_v52 = vpop.f32.mrf.mxu1 }
 0x18b   :  { %v3482_v49 = vpop.f32.mrf.mxu0  ;;  %v3509_v16 = vadd.f32 %v3508_v52, %v3507_v8 }
 0x18c   :  { %v2389_v13 = vadd.f32 %v3481_v21, %v2340_v12  ;;  %v3510_v39 = vpop.f32.mrf.mxu1  ;;  %v2449_v56 = vmax.f32 %v2435_v5, 0.0 }
 0x18d   :  { %v3483_v28 = vpop.f32.mrf.mxu0 }
 0x18e   :  { %v2438_v20 = vadd.f32 %v3509_v16, %v2389_v13  ;;  %v3484_v22 = vadd.f32 %v3483_v28, %v3482_v49  ;;  %v3511_v37 = vpop.f32.mrf.mxu1  ;;  %v2453_v32 = vmin.f32 %v2449_v56, 6.0 }
 0x18f   :  { %v3485_v27 = vpop.f32.mrf.mxu0  ;;  %v3512_v57 = vadd.f32 %v3511_v37, %v3510_v39 }
 0x190   :  { %v2450_v29 = vmax.f32 %v2438_v20, 0.0  ;;  %v2394_v45 = vadd.f32 %v3484_v22, %v2345_v30  ;;  %v3513_v24 = vpop.f32.mrf.mxu1 }
 0x191   :  { %v3486_v47 = vpop.f32.mrf.mxu0 }
 0x192   :  { %v2454_v35 = vmin.f32 %v2450_v29, 6.0  ;;  %v2443_v48 = vadd.f32 %v3512_v57, %v2394_v45  ;;  %v3487_v60 = vadd.f32 %v3486_v47, %v3485_v27  ;;  %v3514_v63 = vpop.f32.mrf.mxu1 }
 0x193   :  { %v3515_v51 = vadd.f32 %v3514_v63, %v3513_v24 }
 0x194   :  { %v2397_v31 = vadd.f32 %v3487_v60, %v2348_v46  ;;  %v2457_v10 = vpack.c.bf16 %v2454_v35, %v2453_v32  ;;  %v2451_v33 = vmax.f32 %v2443_v48, 0.0 }
 0x196   :  { %v2446_v3 = vadd.f32 %v3515_v51, %v2397_v31  ;;  %3561 = vmatprep.mubr.bf16.mxu0 %v2457_v10  ;;  %v2455_v43 = vmin.f32 %v2451_v33, 6.0 }
 0x198   :  { %v2452_v6 = vmax.f32 %v2446_v3, 0.0 }
 0x19a   :  { %v2456_v59 = vmin.f32 %v2452_v6, 6.0 }
 0x19c   :  { %v2458_v14 = vpack.c.bf16 %v2456_v59, %v2455_v43 }
 0x19e   :  { %3562 = vmatmul.mubr.bf16.vlgmr.msra.gmra.mxu0 %v2458_v14 }
 0x19f   :  { %3586 = vmatpush3.bf16.msra.mxu0 %v4924_v36  ;;  %3601 = vmatprep.mubr.msk.bf16.mxu0 %vm3861_vm0, %v3860_v1 }
 0x1a0   :  { %3587 = vmatprep.subr.bf16.mxu0 %v3860_v1 }
 0x1a3   :  { %3588 = vmatpush3.bf16.msra.mxu0 %v4925_v40 }
 0x1a4   :  { %3589 = vmatprep.subr.bf16.mxu0 %v3860_v1 }
 0x1a7   :  { %3590 = vmatpush3.bf16.msra.mxu0 %v4926_v2 }
 0x1a8   :  { %3591 = vmatprep.subr.bf16.mxu0 %v3860_v1 }
 0x1ab   :  { %3592 = vmatpush3.bf16.msra.mxu0 %v4927_v58 }
 0x1ac   :  { %3593 = vmatprep.subr.bf16.mxu0 %v3860_v1 }
 0x1af   :  { %3594 = vmatpush3.bf16.msra.mxu0 %v3814_v50 }
 0x1b0   :  { %3595 = vmatprep.subr.bf16.mxu0 %v3860_v1 }
 0x1b3   :  { %3596 = vmatpush3.bf16.msra.mxu0 %v3815_v54 }
 0x1b4   :  { %3597 = vmatprep.subr.bf16.mxu0 %v3860_v1 }
 0x1b7   :  { %3598 = vmatpush3.bf16.msra.mxu0 %v3816_v42 }
 0x1b8   :  { %3599 = vmatprep.subr.bf16.mxu0 %v3860_v1 }
 0x1bb   :  { %3600 = vmatpush3.bf16.msra.mxu0 %v3817_v38 }
 0x25e   :  { %v3563_v4 = vpop.f32.mrf.mxu0 }
 0x25f   :  { %v2573_v9 = vadd.f32 %v3563_v4, %v3162_v62 }
 0x260   :  { %v2564_v55 = vpop.f32.mrf.mxu0 }
 0x261   :  { %v2581_v53 = vmax.f32 %v2573_v9, 0.0  ;;  %v2565_v19 = vadd.f32 %v3162_v62, %v2564_v55 }
 0x262   :  { %v3564_v17 = vpop.f32.mrf.mxu0 }
 0x263   :  { %v4854_v7 = vmin.f32 %v2581_v53, 6.0  ;;  %v2579_v34 = vmax.f32 %v2565_v19, 0.0  ;;  %v2576_v11 = vadd.f32 %v3564_v17, %v3162_v62 }
 0x264   :  { %v2567_v61 = vpop.f32.mrf.mxu0 }
 0x265   :  { %v2743_v0 = vcombine.high %v4854_v7, %v4854_v7  ;;  %v2778_v8 = vsel %vm2749_vm1, %v4854_v7, 0.0  ;;  %v4860_v12 = vmin.f32 %v2579_v34, 6.0  ;;  %v2582_v23 = vmax.f32 %v2576_v11, 0.0 }
 0x266   :  { %v2779_v25 = vrot.slane %v2778_v8, 4  ;;  %v2568_v15 = vadd.f32 %v3162_v62, %v2567_v61 }
 0x267   :  { %v2785_v18 = vsel %vm2749_vm1, %v2743_v0, 0.0  ;;  %v2741_v5 = vcombine.high %v4860_v12, %v4860_v12  ;;  %v2750_v21 = vsel %vm2749_vm1, %v4860_v12, 0.0  ;;  %v4867_v52 = vmin.f32 %v2582_v23, 6.0 }
 0x268   :  { %v2780_v26 = vadd.f32 %v2779_v25, %v2778_v8  ;;  %v2786_v49 = vrot.slane %v2785_v18, 4  ;;  %v2751_v13 = vrot.slane %v2750_v21, 4  ;;  %v2580_v16 = vmax.f32 %v2568_v15, 0.0 }
 0x269   :  { %v2757_v39 = vsel %vm2749_vm1, %v2741_v5, 0.0  ;;  %v2744_v41 = vcombine.high %v4867_v52, %v4867_v52  ;;  %v2792_v44 = vsel %vm2749_vm1, %v4867_v52, 0.0  ;;  %v2605_v15 = vpack.c.bf16 %v4867_v52, %v4854_v7 }
 0x26a   :  { %v2781_v28 = vrot.slane %v2780_v26, 2  ;;  %v2787_v30 = vadd.f32 %v2786_v49, %v2785_v18  ;;  %v2752_v56 = vadd.f32 %v2751_v13, %v2750_v21  ;;  %v2758_v20 = vrot.slane %v2757_v39, 4 }
 0x26b   :  { %v2793_v22 = vrot.slane %v2792_v44, 4  ;;  %v2799_v37 = vsel %vm2749_vm1, %v2744_v41, 0.0  ;;  %v2584_v27 = vmin.f32 %v2580_v16, 6.0 }
 0x26c   :  { %v2788_v29 = vrot.slane %v2787_v30, 2  ;;  %v2753_v45 = vrot.slane %v2752_v56, 2  ;;  %v2759_v57 = vadd.f32 %v2758_v20, %v2757_v39  ;;  %v2800_v46 = vrot.slane %v2799_v37, 4 }
 0x26d   :  { %v2794_v24 = vadd.f32 %v2793_v22, %v2792_v44  ;;  %v2742_v47 = vcombine.high %v2584_v27, %v2584_v27  ;;  %v2764_v32 = vsel %vm2749_vm1, %v2584_v27, 0.0  ;;  %v2782_v35 = vadd.f32 %v2781_v28, %v2780_v26 }
 0x26e   :  { %v2789_v48 = vadd.f32 %v2788_v29, %v2787_v30  ;;  %v2754_v60 = vadd.f32 %v2753_v45, %v2752_v56  ;;  %v2760_v63 = vrot.slane %v2759_v57, 2  ;;  %v2801_v51 = vadd.f32 %v2800_v46, %v2799_v37 }
 0x26f   :  { %v2795_v31 = vrot.slane %v2794_v24, 2  ;;  %v2765_v10 = vrot.slane %v2764_v32, 4  ;;  %v2771_v33 = vsel %vm2749_vm1, %v2742_v47, 0.0  ;;  %v2783_v54 = vrot.slane %v2782_v35, 1 }
 0x270   :  { %v2755_v3 = vrot.slane %v2754_v60, 1  ;;  %v2761_v6 = vadd.f32 %v2760_v63, %v2759_v57  ;;  %v2802_v59 = vrot.slane %v2801_v51, 2  ;;  %v2772_v50 = vrot.slane %v2771_v33, 4 }
 0x271   :  { %v2796_v43 = vadd.f32 %v2795_v31, %v2794_v24  ;;  %v2766_v14 = vadd.f32 %v2765_v10, %v2764_v32  ;;  %v2790_v36 = vrot.slane %v2789_v48, 1  ;;  %v2784_v19 = vadd.f32 %v2783_v54, %v2782_v35 }
 0x272   :  { %v2756_v42 = vadd.f32 %v2755_v3, %v2754_v60  ;;  %v2762_v1 = vrot.slane %v2761_v6, 1  ;;  %v2803_v38 = vadd.f32 %v2802_v59, %v2801_v51  ;;  %v2773_v2 = vadd.f32 %v2772_v50, %v2771_v33  ;;  %v3171_v51 = vld [vmem:[%s4895_s6] ss:$0 sm:$0xff]  ;;  %s3862_s6 = smov [#allocation2]  }
 0x273   :  { %v2767_v40 = vrot.slane %v2766_v14, 2  ;;  %v2797_v4 = vrot.slane %v2796_v43, 1  ;;  %v2791_v34 = vadd.f32 %v2790_v36, %v2789_v48  ;;  %v2604_v25 = vpack.c.bf16 %v2584_v27, %v4860_v12  ;;  %s2908_s30 = sshll.u32 %s3862_s6, 4  ;;  %s2909_s30 = int_to_ptr.vmem [resolvable:$true] %s2908_s30 }
 0x274   :  { %v2763_v58 = vadd.f32 %v2762_v1, %v2761_v6  ;;  %v2806_v62 = vmul.f32 0.25, %v2756_v42  ;;  %v2804_v9 = vrot.slane %v2803_v38, 1  ;;  %v2774_v53 = vrot.slane %v2773_v2, 2  ;;  %s3838_s9 = scalar_lea.vmem %s2909_s30, 512  ;;  %p3843_p1 = scmp.lt.s32.totalorder %s2909_s30, %s2909_s30 }
 0x275   :  { %v2768_v55 = vadd.f32 %v2767_v40, %v2766_v14  ;;  %v2798_v23 = vadd.f32 %v2797_v4, %v2796_v43  ;;  %v2810_v26 = vmul.f32 0.25, %v2784_v19  ;;  %3581 = vmatprep.mubr.bf16.mxu1 %v2604_v25  ;;  %v2811_v13 = vmul.f32 0.25, %v2791_v34  ;;  %p3839_p0 = scmp.ne.s32.totalorder %s2909_s30, %s3838_s9  ;;  %p3844_p2 = scmp.lt.s32.totalorder %s3838_s9, %s3838_s9 }
 0x276   :  { %v2807_v17 = vmul.f32 0.25, %v2763_v58  ;;  %v2775_v61 = vadd.f32 %v2774_v53, %v2773_v2  ;;  %v2814_v0 = vpack.c.bf16 %v2806_v62, %v2806_v62  ;;  %v2805_v18 = vadd.f32 %v2804_v9, %v2803_v38  ;;  %3582 = vmatmul.mubr.bf16.vlgmr.msra.gmra.mxu1 %v2605_v15 }
 0x277   :  { %v2769_v11 = vrot.slane %v2768_v55, 1  ;;  %v2812_v44 = vmul.f32 0.25, %v2798_v23  ;;  %v2818_v12 = vpack.c.bf16 %v2810_v26, %v2810_v26  ;;  %v2819_v7 = vpack.c.bf16 %v2811_v13, %v2811_v13  ;;  %p3845_p3 = por %p3844_p2, %p3843_p1 }
 0x278   :  { %v2815_v8 = vpack.c.bf16 %v2807_v17, %v2807_v17  ;;  %v2776_v21 = vrot.slane %v2775_v61, 1  ;;  %v2830_v41 = vunpack.c.l.b16 %v2814_v0  ;;  %v2813_v56 = vmul.f32 0.25, %v2805_v18 }
 0x279   :  { %v2770_v5 = vadd.f32 %v2769_v11, %v2768_v55  ;;  %v2820_v37 = vpack.c.bf16 %v2812_v44, %v2812_v44  ;;  %v2834_v57 = vunpack.c.l.b16 %v2818_v12  ;;  %v2835_v24 = vunpack.c.l.b16 %v2819_v7  ;;  %p3846_p4 = pnand %p3845_p3, %p3839_p0 }
 0x27a   :  { %v2831_v49 = vunpack.c.l.b16 %v2815_v8  ;;  %v2777_v16 = vadd.f32 %v2776_v21, %v2775_v61  ;;  %v2821_v45 = vpack.c.bf16 %v2813_v56, %v2813_v56 }
 0x27b   :  { %v2808_v39 = vmul.f32 0.25, %v2770_v5  ;;  %v2836_v47 = vunpack.c.l.b16 %v2820_v37 }
 0x27c   :  { %v2809_v28 = vmul.f32 0.25, %v2777_v16  ;;  %v2839_v20 = vsel %vm2838_vm2, %v2831_v49, %v2830_v41  ;;  %v2837_v35 = vunpack.c.l.b16 %v2821_v45 }
 0x27d   :  { %v2816_v30 = vpack.c.bf16 %v2808_v39, %v2808_v39 }
 0x27e   :  { %v2817_v52 = vpack.c.bf16 %v2809_v28, %v2809_v28 }
 0x27f   :  { %v2832_v22 = vunpack.c.l.b16 %v2816_v30 }
 0x280   :  { %v2833_v27 = vunpack.c.l.b16 %v2817_v52 }
 0x281   :  { %v2841_v29 = vsel %vm2840_vm3, %v2832_v22, %v2839_v20 }
 0x282   :  { %v2843_v46 = vsel %vm2842_vm4, %v2833_v27, %v2841_v29 }
 0x283   :  { %v2845_v32 = vsel %vm2844_vm5, %v2834_v57, %v2843_v46 }
 0x284   :  { %v2847_v48 = vsel %vm2846_vm6, %v2835_v24, %v2845_v32 }
 0x285   :  { %v2849_v60 = vsel %vm2848_vm7, %v2836_v47, %v2847_v48 }
 0x286   :  { %v2851_v63 = vsel %vm2850_vm8, %v2837_v35, %v2849_v60 }
 0x287   :  { %v2852_v31 = vpack.c.b16 %v2851_v63, %v2851_v63 }
 0x289   :  { %3602 = vmatmul.mubr.bf16.vlgmr.msra.gmra.mxu0 %v2852_v31 }
 0x336   :  { %v3583_v10 = vpop.f32.mrf.mxu1 }
 0x337   :  { %v2703_v33 = vadd.f32 %v3583_v10, %v3171_v51 }
 0x338   :  { %v2694_v3 = vpop.f32.mrf.mxu1 }
 0x339   :  { %v2711_v6 = vsub.f32 0.0, %v2703_v33  ;;  %v2695_v43 = vadd.f32 %v3171_v51, %v2694_v3 }
 0x33a   :  { %v3584_v59 = vpop.f32.mrf.mxu1 }
 0x33b   :  { %v2717_v14 = vmul.f32 1.442695, %v2711_v6  ;;  %v2709_v50 = vsub.f32 0.0, %v2695_v43  ;;  %v2706_v54 = vadd.f32 %v3584_v59, %v3171_v51 }
 0x33c   :  { %v2697_v42 = vpop.f32.mrf.mxu1 }
 0x33d   :  { %3818 = vpow2.f32 %v2717_v14  ;;  %v2713_v1 = vmul.f32 1.442695, %v2709_v50  ;;  %v2712_v36 = vsub.f32 0.0, %v2706_v54  ;;  %v2698_v38 = vadd.f32 %v3171_v51, %v2697_v42 }
 0x33f   :  { %3820 = vpow2.f32 %v2713_v1  ;;  %v2719_v40 = vmul.f32 1.442695, %v2712_v36  ;;  %v2710_v2 = vsub.f32 0.0, %v2698_v38 }
 0x341   :  { %3822 = vpow2.f32 %v2719_v40  ;;  %v2715_v58 = vmul.f32 1.442695, %v2710_v2 }
 0x343   :  { %3824 = vpow2.f32 %v2715_v58 }
 0x349   :  { %v2888_v62 = vpop.f32.mrf.mxu0 }
 0x34a   :  { %v2889_v4 = vadd.f32 %v3171_v51, %v2888_v62  ;;  %v3819_v19 = vpop.eup %3818 }
 0x34b   :  { %v3603_v9 = vpop.f32.mrf.mxu0  ;;  %v2723_v34 = vadd.f32 1.0, %v3819_v19 }
 0x34c   :  { %v2894_v55 = vsub.f32 0.0, %v2889_v4  ;;  %v3821_v61 = vpop.eup %3820 }
 0x34d   :  { %v2891_v53 = vpop.f32.mrf.mxu0  ;;  %v2721_v0 = vadd.f32 1.0, %v3821_v61 }
 0x34e   :  { %v2895_v17 = vmul.f32 1.442695, %v2894_v55  ;;  %v3823_v8 = vpop.eup %3822 }
 0x34f   :  { %v3604_v11 = vpop.f32.mrf.mxu0  ;;  %v2724_v23 = vadd.f32 1.0, %v3823_v8 }
 0x350   :  { %3826 = vpow2.f32 %v2895_v17  ;;  %v3825_v25 = vpop.eup %3824 }
 0x351   :  { %3828 = vrcp.f32 %v2723_v34  ;;  %v2722_v15 = vadd.f32 1.0, %v3825_v25 }
 0x352   :  { %3830 = vrcp.f32 %v2721_v0 }
 0x353   :  { %3832 = vrcp.f32 %v2724_v23 }
 0x354   :  { %3834 = vrcp.f32 %v2722_v15 }
 0x35d   :  { %v3827_v18 = vpop.eup %3826 }
 0x35e   :  { %v3829_v5 = vpop.eup %3828  ;;  %v2897_v21 = vadd.f32 1.0, %v3827_v18 }
 0x35f   :  { %2735 = vst [vmem:[#allocation2 + $0x10] sm:$0xff] %v3829_v5  ;;  %v3831_v26 = vpop.eup %3830 }
 0x360   :  { %3836 = vrcp.f32 %v2897_v21  ;;  %2733 = vst [vmem:[#allocation2] sm:$0xff] %v3831_v26  ;;  %v3833_v49 = vpop.eup %3832 }
 0x361   :  { %2736 = vst [vmem:[#allocation2 + $0x18] sm:$0xff] %v3833_v49  ;;  %v3835_v13 = vpop.eup %3834 }
 0x362   :  { %2734 = vst [vmem:[#allocation2 + $0x8] sm:$0xff] %v3835_v13 }
 0x363   :  { %3849 = shalt.err (!%p3846_p4)
}
 0x364   :  { %s3863_s10 = smov 128   ;;  %s3864_s11 = smov 8  }
 0x365   :  { %2914 = dma.vmem_to_hbm [thread:$0]  %s2909_s30, 512, %s4897_s8, [#allocation3], %s3863_s10, %s3863_s10, %s3864_s11  }
 0x36d   :  { %v3837_v16 = vpop.eup %3836 }
 0x36e   :  { %2900 = vst [vmem:[%s4896_s7] sm:$0xff] %v3837_v16 }
 0x36f   :  { %3858 = dma.done.wait [#allocation3], 512  }
 0x370   :  { %3859 = vsyncadd [#allocation3], 4294966784 }
 0x371   :  { %2920 = vsyncpa [#allocation3], 1 }

</bundles_post_ra>
